<compile_context>
chip_gen: v5e
topology: v5e:2x2
jax: 0.10.0
libtpu: 0.0.40
codegen_flags: <defaults>
</compile_context>

<pallas_src>
import jax
import jax.numpy as jnp
from jax.experimental import pallas as pl
from jax.experimental.pallas import tpu as pltpu


def _lstm_recurrence_kernel(proj_ref, whh_ref, out_ref, h_sc, c_sc):
    """One grid step == one chunk of time steps (recurrence runs inside via fori_loop).

    proj_ref : (Tc, Bp, 4*Hp) f32  precomputed x@W_ih^T + bias in gate-padded layout
    whh_ref  : (Hp, 4*Hp)     bf16 recurrent weight (constant block index -> resident)
    out_ref  : (Tc, Bp, Hp)   f32  h_t for every step of the chunk (lane-dense slab)
    h_sc/c_sc: (Bp, Hp)       f32  recurrent state, persists across grid steps
    """

    @pl.when(pl.program_id(0) == 0)
    def _():
        h_sc[...] = jnp.zeros_like(h_sc)
        c_sc[...] = jnp.zeros_like(c_sc)

    hp = h_sc.shape[-1]
    t_chunk = proj_ref.shape[0]

    def step(t, carry):
        # Single recurrent MXU matmul per step (input projection + bias already hoisted).
        gates = proj_ref[t] + jnp.dot(
            h_sc[...].astype(whh_ref.dtype), whh_ref[...],
            preferred_element_type=jnp.float32)
        # Gate blocks live at Hp (multiple of 128) boundaries -> lane-tile aligned slices.
        i = jax.nn.sigmoid(gates[:, 0 * hp:1 * hp])
        f = jax.nn.sigmoid(gates[:, 1 * hp:2 * hp])
        g = jnp.tanh(gates[:, 2 * hp:3 * hp])
        o = jax.nn.sigmoid(gates[:, 3 * hp:4 * hp])
        c_new = f * c_sc[...] + i * g
        h_new = o * jnp.tanh(c_new)
        c_sc[...] = c_new
        h_sc[...] = h_new
        out_ref[t] = h_new.astype(out_ref.dtype)   # VMEM-resident; HBM writeback once per chunk
        return carry

    jax.lax.fori_loop(0, t_chunk, step, 0, unroll=True if t_chunk <= 32 else 8)


def _round_up(x, m):
    return (x + m - 1) // m * m


def lstm_forward(x, w_ih, w_hh, b_ih, b_hh, *, t_chunk=128):
    """x: (B, T, D) float32 (batch_first, like torch.nn.LSTM). Returns (B, T, H)."""
    B, T, D = x.shape
    H = w_hh.shape[1]
    assert w_ih.shape == (4 * H, D) and w_hh.shape == (4 * H, H)

    Hp = _round_up(H, 128)                 # lane-pad hidden: each gate owns whole 128-lane tiles
    Bp = _round_up(B, 8)                   # sublane-pad batch
    Tc = min(_round_up(T, 8), t_chunk)     # time chunk per grid step
    Tp = _round_up(T, Tc)

    # --- gate-padded weight/bias layout: columns [k*Hp, k*Hp+H) hold gate k in (i, f, g, o) order ---
    wih_t = jnp.transpose(w_ih.reshape(4, H, D), (2, 0, 1))                     # (D, 4, H)
    wih_t = jnp.pad(wih_t, ((0, 0), (0, 0), (0, Hp - H))).reshape(D, 4 * Hp)    # (D, 4Hp)
    whh_t = jnp.transpose(w_hh.reshape(4, H, H), (2, 0, 1))                     # (H, 4, H)
    whh_t = jnp.pad(whh_t, ((0, Hp - H), (0, 0), (0, Hp - H))).reshape(Hp, 4 * Hp)
    whh_t = whh_t.astype(jnp.bfloat16)                                          # MXU-native
    bias = jnp.pad((b_ih + b_hh).reshape(4, H), ((0, 0), (0, Hp - H))).reshape(4 * Hp)

    # --- hoisted input projection: one big matmul over all time steps, outside the recurrence ---
    proj = jnp.einsum("btd,dg->btg", x, wih_t) + bias                           # (B, T, 4Hp) f32
    proj = jnp.transpose(proj, (1, 0, 2))                                       # time-major
    proj = jnp.pad(proj, ((0, Tp - T), (0, Bp - B), (0, 0)))                    # (Tp, Bp, 4Hp)

    n_chunks = Tp // Tc

    out_tm = pl.pallas_call(
        _lstm_recurrence_kernel,
        out_shape=jax.ShapeDtypeStruct((Tp, Bp, Hp), jnp.float32),
        grid_spec=pltpu.PrefetchScalarGridSpec(
            num_scalar_prefetch=0,
            grid=(n_chunks,),
            in_specs=[
                pl.BlockSpec((Tc, Bp, 4 * Hp), lambda c: (c, 0, 0)),   # proj chunk (pipelined)
                # Constant block index -> not re-DMA'd per chunk. TODO(synk): at production H,
                # single-buffer this spec / raise vmem_limit_bytes for v7x's 64 MiB VMEM.
                pl.BlockSpec((Hp, 4 * Hp), lambda c: (0, 0)),          # W_hh^T (resident)
            ],
            out_specs=pl.BlockSpec((Tc, Bp, Hp), lambda c: (c, 0, 0)),
            scratch_shapes=[
                pltpu.VMEM((Bp, Hp), jnp.float32),   # h state
                pltpu.VMEM((Bp, Hp), jnp.float32),   # c state
            ],
        ),
        compiler_params=pltpu.CompilerParams(
            dimension_semantics=("arbitrary",),      # recurrence is sequential over chunks
        ),
    )(proj, whh_t)

    return jnp.transpose(out_tm[:T, :B, :H], (1, 0, 2))                         # (B, T, H)


def lstm_reference(x, w_ih, w_hh, b_ih, b_hh):
    """Pure-JAX f32 reference matching torch.nn.LSTM semantics (zero initial state)."""
    B, T, D = x.shape
    H = w_hh.shape[1]
    wih_t = jnp.transpose(w_ih)
    whh_t = jnp.transpose(w_hh)
    bias = (b_ih + b_hh)[None, :]

    def step(carry, x_t):
        h, c = carry
        gates = x_t @ wih_t + h @ whh_t + bias
        i = jax.nn.sigmoid(gates[:, 0 * H:1 * H])
        f = jax.nn.sigmoid(gates[:, 1 * H:2 * H])
        g = jnp.tanh(gates[:, 2 * H:3 * H])
        o = jax.nn.sigmoid(gates[:, 3 * H:4 * H])
        c = f * c + i * g
        h = o * jnp.tanh(c)
        return (h, c), h

    init = (jnp.zeros((B, H), jnp.float32), jnp.zeros((B, H), jnp.float32))
    _, hs = jax.lax.scan(step, init, jnp.swapaxes(x, 0, 1))
    return jnp.swapaxes(hs, 0, 1)


if __name__ == "__main__":
    # Small shapes consistent with LstmNetwork(input_dims, lstm_hidden_size, ...).forward(x)
    # where x is (batch, seq, input_dims).
    B, T, D, H = 2, 8, 16, 32

    key = jax.random.PRNGKey(0)
    kx, k1, k2, k3, k4 = jax.random.split(key, 5)

    # Deterministic synthetic parameters (PyTorch-style uniform(-1/sqrt(H), 1/sqrt(H))).
    bound = 1.0 / jnp.sqrt(jnp.float32(H))
    x = jax.random.normal(kx, (B, T, D), dtype=jnp.float32)
    w_ih = jax.random.uniform(k1, (4 * H, D), jnp.float32, -bound, bound)
    w_hh = jax.random.uniform(k2, (4 * H, H), jnp.float32, -bound, bound)
    b_ih = jax.random.uniform(k3, (4 * H,), jnp.float32, -bound, bound)
    b_hh = jax.random.uniform(k4, (4 * H,), jnp.float32, -bound, bound)

    out = lstm_forward(x, w_ih, w_hh, b_ih, b_hh)
    out = jax.block_until_ready(out)

    ref = lstm_reference(x, w_ih, w_hh, b_ih, b_hh)
    assert out.shape == (B, T, H), out.shape
    # Tolerance reflects the bf16 recurrent matmul (f32 state/accumulation); observed error ~1e-3.
    max_err = float(jnp.max(jnp.abs(out - ref)))
    assert max_err < 1e-2, max_err

    print("KERNEL_OK")
</pallas_src>

<mosaic_0001>
module attributes {stable_mosaic.version = 11 : i64} {
  func.func @_lstm_recurrence_kernel(%arg0: i32, %arg1: memref<8x8x512xf32, #tpu.memory_space<vmem>>, %arg2: memref<128x512xbf16, #tpu.memory_space<vmem>>, %arg3: memref<8x8x128xf32, #tpu.memory_space<vmem>>, %arg4: memref<8x128xf32, #tpu.memory_space<vmem>>, %arg5: memref<8x128xf32, #tpu.memory_space<vmem>>) attributes {dimension_semantics = [#tpu.dimension_semantics<arbitrary>], iteration_bounds = array<i64: 1>, scalar_prefetch = 0 : i64, scratch_operands = 2 : i64, tpu.core_type = #tpu.core_type<tc>, window_params = [{transform_indices = @transform_0, window_bounds = array<i64: 8, 8, 512>}, {pipeline_mode = #tpu.pipeline_mode<synchronous>, transform_indices = @transform_1, window_bounds = array<i64: 128, 512>}, {transform_indices = @transform_2, window_bounds = array<i64: 8, 8, 128>}]} {
    %c0_i32 = arith.constant 0 : i32
    %0 = arith.cmpi eq, %arg0, %c0_i32 : i32
    %1 = arith.extui %0 : i1 to i32
    %c0_i32_0 = arith.constant 0 : i32
    %2 = arith.cmpi ne, %1, %c0_i32_0 : i32
    scf.if %2 {
      %cst_144 = arith.constant 0.000000e+00 : f32
      %323 = vector.broadcast %cst_144 : f32 to vector<8x128xf32>
      %c0_145 = arith.constant 0 : index
      %c0_146 = arith.constant 0 : index
      %324 = vector.load %arg4[%c0_145, %c0_146] : memref<8x128xf32, #tpu.memory_space<vmem>>, vector<8x128xf32>
      tpu.vector_store %arg4[%c0_145, %c0_146], %323 {strides = array<i32>} : memref<8x128xf32, #tpu.memory_space<vmem>>, vector<8x128xf32>,
      %cst_147 = arith.constant 0.000000e+00 : f32
      %325 = vector.broadcast %cst_147 : f32 to vector<8x128xf32>
      %c0_148 = arith.constant 0 : index
      %c0_149 = arith.constant 0 : index
      %326 = vector.load %arg5[%c0_148, %c0_149] : memref<8x128xf32, #tpu.memory_space<vmem>>, vector<8x128xf32>
      tpu.vector_store %arg5[%c0_148, %c0_149], %325 {strides = array<i32>} : memref<8x128xf32, #tpu.memory_space<vmem>>, vector<8x128xf32>,
    } else {
    }
    %c0_i32_1 = arith.constant 0 : i32
    %3 = arith.index_cast %c0_i32_1 : i32 to index
    %c0 = arith.constant 0 : index
    %c0_2 = arith.constant 0 : index
    %4 = vector.load %arg1[%3, %c0, %c0_2] : memref<8x8x512xf32, #tpu.memory_space<vmem>>, vector<1x8x512xf32>
    %5 = vector.shape_cast %4 : vector<1x8x512xf32> to vector<8x512xf32>
    %c0_3 = arith.constant 0 : index
    %c0_4 = arith.constant 0 : index
    %6 = vector.load %arg4[%c0_3, %c0_4] : memref<8x128xf32, #tpu.memory_space<vmem>>, vector<8x128xf32>
    %7 = arith.truncf %6 : vector<8x128xf32> to vector<8x128xbf16>
    %c0_5 = arith.constant 0 : index
    %c0_6 = arith.constant 0 : index
    %8 = vector.load %arg2[%c0_5, %c0_6] : memref<128x512xbf16, #tpu.memory_space<vmem>>, vector<128x512xbf16>
    %cst = arith.constant dense<0.000000e+00> : vector<8x512xf32>
    %9 = tpu.matmul %7, %8, %cst {dimension_numbers = #tpu.dot_dimension_numbers<[1], [0], [0], [1], [0, 0, 1, 1], [], []>} : vector<8x128xbf16>, vector<128x512xbf16>, vector<8x512xf32> -> vector<8x512xf32>
    %10 = arith.addf %5, %9 : vector<8x512xf32>
    %11 = vector.extract_strided_slice %10 {offsets = [0, 0], sizes = [8, 128], strides = [1, 1]} : vector<8x512xf32> to vector<8x128xf32>
    %12 = arith.negf %11 : vector<8x128xf32>
    %13 = math.exp %12 : vector<8x128xf32>
    %cst_7 = arith.constant 1.000000e+00 : f32
    %14 = vector.broadcast %cst_7 : f32 to vector<8x128xf32>
    %15 = arith.addf %14, %13 : vector<8x128xf32>
    %16 = arith.divf %14, %15 : vector<8x128xf32>
    %17 = vector.extract_strided_slice %10 {offsets = [0, 128], sizes = [8, 128], strides = [1, 1]} : vector<8x512xf32> to vector<8x128xf32>
    %18 = arith.negf %17 : vector<8x128xf32>
    %19 = math.exp %18 : vector<8x128xf32>
    %cst_8 = arith.constant 1.000000e+00 : f32
    %20 = vector.broadcast %cst_8 : f32 to vector<8x128xf32>
    %21 = arith.addf %20, %19 : vector<8x128xf32>
    %22 = arith.divf %20, %21 : vector<8x128xf32>
    %23 = vector.extract_strided_slice %10 {offsets = [0, 256], sizes = [8, 128], strides = [1, 1]} : vector<8x512xf32> to vector<8x128xf32>
    %24 = math.tanh %23 : vector<8x128xf32>
    %25 = vector.extract_strided_slice %10 {offsets = [0, 384], sizes = [8, 128], strides = [1, 1]} : vector<8x512xf32> to vector<8x128xf32>
    %26 = arith.negf %25 : vector<8x128xf32>
    %27 = math.exp %26 : vector<8x128xf32>
    %cst_9 = arith.constant 1.000000e+00 : f32
    %28 = vector.broadcast %cst_9 : f32 to vector<8x128xf32>
    %29 = arith.addf %28, %27 : vector<8x128xf32>
    %30 = arith.divf %28, %29 : vector<8x128xf32>
    %c0_10 = arith.constant 0 : index
    %c0_11 = arith.constant 0 : index
    %31 = vector.load %arg5[%c0_10, %c0_11] : memref<8x128xf32, #tpu.memory_space<vmem>>, vector<8x128xf32>
    %32 = arith.mulf %22, %31 : vector<8x128xf32>
    %33 = arith.mulf %16, %24 : vector<8x128xf32>
    %34 = arith.addf %32, %33 : vector<8x128xf32>
    %35 = math.tanh %34 : vector<8x128xf32>
    %36 = arith.mulf %30, %35 : vector<8x128xf32>
    %c0_12 = arith.constant 0 : index
    %c0_13 = arith.constant 0 : index
    %37 = vector.load %arg5[%c0_12, %c0_13] : memref<8x128xf32, #tpu.memory_space<vmem>>, vector<8x128xf32>
    tpu.vector_store %arg5[%c0_12, %c0_13], %34 {strides = array<i32>} : memref<8x128xf32, #tpu.memory_space<vmem>>, vector<8x128xf32>,
    %c0_14 = arith.constant 0 : index
    %c0_15 = arith.constant 0 : index
    %38 = vector.load %arg4[%c0_14, %c0_15] : memref<8x128xf32, #tpu.memory_space<vmem>>, vector<8x128xf32>
    tpu.vector_store %arg4[%c0_14, %c0_15], %36 {strides = array<i32>} : memref<8x128xf32, #tpu.memory_space<vmem>>, vector<8x128xf32>,
    %39 = arith.index_cast %c0_i32_1 : i32 to index
    %c0_16 = arith.constant 0 : index
    %c0_17 = arith.constant 0 : index
    %40 = vector.load %arg3[%39, %c0_16, %c0_17] : memref<8x8x128xf32, #tpu.memory_space<vmem>>, vector<1x8x128xf32>
    %41 = vector.shape_cast %40 : vector<1x8x128xf32> to vector<8x128xf32>
    %42 = vector.shape_cast %36 : vector<8x128xf32> to vector<1x8x128xf32>
    tpu.vector_store %arg3[%39, %c0_16, %c0_17], %42 {strides = array<i32>} : memref<8x8x128xf32, #tpu.memory_space<vmem>>, vector<1x8x128xf32>,
    %c1_i32 = arith.constant 1 : i32
    %43 = arith.index_cast %c1_i32 : i32 to index
    %c0_18 = arith.constant 0 : index
    %c0_19 = arith.constant 0 : index
    %44 = vector.load %arg1[%43, %c0_18, %c0_19] : memref<8x8x512xf32, #tpu.memory_space<vmem>>, vector<1x8x512xf32>
    %45 = vector.shape_cast %44 : vector<1x8x512xf32> to vector<8x512xf32>
    %c0_20 = arith.constant 0 : index
    %c0_21 = arith.constant 0 : index
    %46 = vector.load %arg4[%c0_20, %c0_21] : memref<8x128xf32, #tpu.memory_space<vmem>>, vector<8x128xf32>
    %47 = arith.truncf %46 : vector<8x128xf32> to vector<8x128xbf16>
    %c0_22 = arith.constant 0 : index
    %c0_23 = arith.constant 0 : index
    %48 = vector.load %arg2[%c0_22, %c0_23] : memref<128x512xbf16, #tpu.memory_space<vmem>>, vector<128x512xbf16>
    %cst_24 = arith.constant dense<0.000000e+00> : vector<8x512xf32>
    %49 = tpu.matmul %47, %48, %cst_24 {dimension_numbers = #tpu.dot_dimension_numbers<[1], [0], [0], [1], [0, 0, 1, 1], [], []>} : vector<8x128xbf16>, vector<128x512xbf16>, vector<8x512xf32> -> vector<8x512xf32>
    %50 = arith.addf %45, %49 : vector<8x512xf32>
    %51 = vector.extract_strided_slice %50 {offsets = [0, 0], sizes = [8, 128], strides = [1, 1]} : vector<8x512xf32> to vector<8x128xf32>
    %52 = arith.negf %51 : vector<8x128xf32>
    %53 = math.exp %52 : vector<8x128xf32>
    %cst_25 = arith.constant 1.000000e+00 : f32
    %54 = vector.broadcast %cst_25 : f32 to vector<8x128xf32>
    %55 = arith.addf %54, %53 : vector<8x128xf32>
    %56 = arith.divf %54, %55 : vector<8x128xf32>
    %57 = vector.extract_strided_slice %50 {offsets = [0, 128], sizes = [8, 128], strides = [1, 1]} : vector<8x512xf32> to vector<8x128xf32>
    %58 = arith.negf %57 : vector<8x128xf32>
    %59 = math.exp %58 : vector<8x128xf32>
    %cst_26 = arith.constant 1.000000e+00 : f32
    %60 = vector.broadcast %cst_26 : f32 to vector<8x128xf32>
    %61 = arith.addf %60, %59 : vector<8x128xf32>
    %62 = arith.divf %60, %61 : vector<8x128xf32>
    %63 = vector.extract_strided_slice %50 {offsets = [0, 256], sizes = [8, 128], strides = [1, 1]} : vector<8x512xf32> to vector<8x128xf32>
    %64 = math.tanh %63 : vector<8x128xf32>
    %65 = vector.extract_strided_slice %50 {offsets = [0, 384], sizes = [8, 128], strides = [1, 1]} : vector<8x512xf32> to vector<8x128xf32>
    %66 = arith.negf %65 : vector<8x128xf32>
    %67 = math.exp %66 : vector<8x128xf32>
    %cst_27 = arith.constant 1.000000e+00 : f32
    %68 = vector.broadcast %cst_27 : f32 to vector<8x128xf32>
    %69 = arith.addf %68, %67 : vector<8x128xf32>
    %70 = arith.divf %68, %69 : vector<8x128xf32>
    %c0_28 = arith.constant 0 : index
    %c0_29 = arith.constant 0 : index
    %71 = vector.load %arg5[%c0_28, %c0_29] : memref<8x128xf32, #tpu.memory_space<vmem>>, vector<8x128xf32>
    %72 = arith.mulf %62, %71 : vector<8x128xf32>
    %73 = arith.mulf %56, %64 : vector<8x128xf32>
    %74 = arith.addf %72, %73 : vector<8x128xf32>
    %75 = math.tanh %74 : vector<8x128xf32>
    %76 = arith.mulf %70, %75 : vector<8x128xf32>
    %c0_30 = arith.constant 0 : index
    %c0_31 = arith.constant 0 : index
    %77 = vector.load %arg5[%c0_30, %c0_31] : memref<8x128xf32, #tpu.memory_space<vmem>>, vector<8x128xf32>
    tpu.vector_store %arg5[%c0_30, %c0_31], %74 {strides = array<i32>} : memref<8x128xf32, #tpu.memory_space<vmem>>, vector<8x128xf32>,
    %c0_32 = arith.constant 0 : index
    %c0_33 = arith.constant 0 : index
    %78 = vector.load %arg4[%c0_32, %c0_33] : memref<8x128xf32, #tpu.memory_space<vmem>>, vector<8x128xf32>
    tpu.vector_store %arg4[%c0_32, %c0_33], %76 {strides = array<i32>} : memref<8x128xf32, #tpu.memory_space<vmem>>, vector<8x128xf32>,
    %79 = arith.index_cast %c1_i32 : i32 to index
    %c0_34 = arith.constant 0 : index
    %c0_35 = arith.constant 0 : index
    %80 = vector.load %arg3[%79, %c0_34, %c0_35] : memref<8x8x128xf32, #tpu.memory_space<vmem>>, vector<1x8x128xf32>
    %81 = vector.shape_cast %80 : vector<1x8x128xf32> to vector<8x128xf32>
    %82 = vector.shape_cast %76 : vector<8x128xf32> to vector<1x8x128xf32>
    tpu.vector_store %arg3[%79, %c0_34, %c0_35], %82 {strides = array<i32>} : memref<8x8x128xf32, #tpu.memory_space<vmem>>, vector<1x8x128xf32>,
    %c2_i32 = arith.constant 2 : i32
    %83 = arith.index_cast %c2_i32 : i32 to index
    %c0_36 = arith.constant 0 : index
    %c0_37 = arith.constant 0 : index
    %84 = vector.load %arg1[%83, %c0_36, %c0_37] : memref<8x8x512xf32, #tpu.memory_space<vmem>>, vector<1x8x512xf32>
    %85 = vector.shape_cast %84 : vector<1x8x512xf32> to vector<8x512xf32>
    %c0_38 = arith.constant 0 : index
    %c0_39 = arith.constant 0 : index
    %86 = vector.load %arg4[%c0_38, %c0_39] : memref<8x128xf32, #tpu.memory_space<vmem>>, vector<8x128xf32>
    %87 = arith.truncf %86 : vector<8x128xf32> to vector<8x128xbf16>
    %c0_40 = arith.constant 0 : index
    %c0_41 = arith.constant 0 : index
    %88 = vector.load %arg2[%c0_40, %c0_41] : memref<128x512xbf16, #tpu.memory_space<vmem>>, vector<128x512xbf16>
    %cst_42 = arith.constant dense<0.000000e+00> : vector<8x512xf32>
    %89 = tpu.matmul %87, %88, %cst_42 {dimension_numbers = #tpu.dot_dimension_numbers<[1], [0], [0], [1], [0, 0, 1, 1], [], []>} : vector<8x128xbf16>, vector<128x512xbf16>, vector<8x512xf32> -> vector<8x512xf32>
    %90 = arith.addf %85, %89 : vector<8x512xf32>
    %91 = vector.extract_strided_slice %90 {offsets = [0, 0], sizes = [8, 128], strides = [1, 1]} : vector<8x512xf32> to vector<8x128xf32>
    %92 = arith.negf %91 : vector<8x128xf32>
    %93 = math.exp %92 : vector<8x128xf32>
    %cst_43 = arith.constant 1.000000e+00 : f32
    %94 = vector.broadcast %cst_43 : f32 to vector<8x128xf32>
    %95 = arith.addf %94, %93 : vector<8x128xf32>
    %96 = arith.divf %94, %95 : vector<8x128xf32>
    %97 = vector.extract_strided_slice %90 {offsets = [0, 128], sizes = [8, 128], strides = [1, 1]} : vector<8x512xf32> to vector<8x128xf32>
    %98 = arith.negf %97 : vector<8x128xf32>
    %99 = math.exp %98 : vector<8x128xf32>
    %cst_44 = arith.constant 1.000000e+00 : f32
    %100 = vector.broadcast %cst_44 : f32 to vector<8x128xf32>
    %101 = arith.addf %100, %99 : vector<8x128xf32>
    %102 = arith.divf %100, %101 : vector<8x128xf32>
    %103 = vector.extract_strided_slice %90 {offsets = [0, 256], sizes = [8, 128], strides = [1, 1]} : vector<8x512xf32> to vector<8x128xf32>
    %104 = math.tanh %103 : vector<8x128xf32>
    %105 = vector.extract_strided_slice %90 {offsets = [0, 384], sizes = [8, 128], strides = [1, 1]} : vector<8x512xf32> to vector<8x128xf32>
    %106 = arith.negf %105 : vector<8x128xf32>
    %107 = math.exp %106 : vector<8x128xf32>
    %cst_45 = arith.constant 1.000000e+00 : f32
    %108 = vector.broadcast %cst_45 : f32 to vector<8x128xf32>
    %109 = arith.addf %108, %107 : vector<8x128xf32>
    %110 = arith.divf %108, %109 : vector<8x128xf32>
    %c0_46 = arith.constant 0 : index
    %c0_47 = arith.constant 0 : index
    %111 = vector.load %arg5[%c0_46, %c0_47] : memref<8x128xf32, #tpu.memory_space<vmem>>, vector<8x128xf32>
    %112 = arith.mulf %102, %111 : vector<8x128xf32>
    %113 = arith.mulf %96, %104 : vector<8x128xf32>
    %114 = arith.addf %112, %113 : vector<8x128xf32>
    %115 = math.tanh %114 : vector<8x128xf32>
    %116 = arith.mulf %110, %115 : vector<8x128xf32>
    %c0_48 = arith.constant 0 : index
    %c0_49 = arith.constant 0 : index
    %117 = vector.load %arg5[%c0_48, %c0_49] : memref<8x128xf32, #tpu.memory_space<vmem>>, vector<8x128xf32>
    tpu.vector_store %arg5[%c0_48, %c0_49], %114 {strides = array<i32>} : memref<8x128xf32, #tpu.memory_space<vmem>>, vector<8x128xf32>,
    %c0_50 = arith.constant 0 : index
    %c0_51 = arith.constant 0 : index
    %118 = vector.load %arg4[%c0_50, %c0_51] : memref<8x128xf32, #tpu.memory_space<vmem>>, vector<8x128xf32>
    tpu.vector_store %arg4[%c0_50, %c0_51], %116 {strides = array<i32>} : memref<8x128xf32, #tpu.memory_space<vmem>>, vector<8x128xf32>,
    %119 = arith.index_cast %c2_i32 : i32 to index
    %c0_52 = arith.constant 0 : index
    %c0_53 = arith.constant 0 : index
    %120 = vector.load %arg3[%119, %c0_52, %c0_53] : memref<8x8x128xf32, #tpu.memory_space<vmem>>, vector<1x8x128xf32>
    %121 = vector.shape_cast %120 : vector<1x8x128xf32> to vector<8x128xf32>
    %122 = vector.shape_cast %116 : vector<8x128xf32> to vector<1x8x128xf32>
    tpu.vector_store %arg3[%119, %c0_52, %c0_53], %122 {strides = array<i32>} : memref<8x8x128xf32, #tpu.memory_space<vmem>>, vector<1x8x128xf32>,
    %c3_i32 = arith.constant 3 : i32
    %123 = arith.index_cast %c3_i32 : i32 to index
    %c0_54 = arith.constant 0 : index
    %c0_55 = arith.constant 0 : index
    %124 = vector.load %arg1[%123, %c0_54, %c0_55] : memref<8x8x512xf32, #tpu.memory_space<vmem>>, vector<1x8x512xf32>
    %125 = vector.shape_cast %124 : vector<1x8x512xf32> to vector<8x512xf32>
    %c0_56 = arith.constant 0 : index
    %c0_57 = arith.constant 0 : index
    %126 = vector.load %arg4[%c0_56, %c0_57] : memref<8x128xf32, #tpu.memory_space<vmem>>, vector<8x128xf32>
    %127 = arith.truncf %126 : vector<8x128xf32> to vector<8x128xbf16>
    %c0_58 = arith.constant 0 : index
    %c0_59 = arith.constant 0 : index
    %128 = vector.load %arg2[%c0_58, %c0_59] : memref<128x512xbf16, #tpu.memory_space<vmem>>, vector<128x512xbf16>
    %cst_60 = arith.constant dense<0.000000e+00> : vector<8x512xf32>
    %129 = tpu.matmul %127, %128, %cst_60 {dimension_numbers = #tpu.dot_dimension_numbers<[1], [0], [0], [1], [0, 0, 1, 1], [], []>} : vector<8x128xbf16>, vector<128x512xbf16>, vector<8x512xf32> -> vector<8x512xf32>
    %130 = arith.addf %125, %129 : vector<8x512xf32>
    %131 = vector.extract_strided_slice %130 {offsets = [0, 0], sizes = [8, 128], strides = [1, 1]} : vector<8x512xf32> to vector<8x128xf32>
    %132 = arith.negf %131 : vector<8x128xf32>
    %133 = math.exp %132 : vector<8x128xf32>
    %cst_61 = arith.constant 1.000000e+00 : f32
    %134 = vector.broadcast %cst_61 : f32 to vector<8x128xf32>
    %135 = arith.addf %134, %133 : vector<8x128xf32>
    %136 = arith.divf %134, %135 : vector<8x128xf32>
    %137 = vector.extract_strided_slice %130 {offsets = [0, 128], sizes = [8, 128], strides = [1, 1]} : vector<8x512xf32> to vector<8x128xf32>
    %138 = arith.negf %137 : vector<8x128xf32>
    %139 = math.exp %138 : vector<8x128xf32>
    %cst_62 = arith.constant 1.000000e+00 : f32
    %140 = vector.broadcast %cst_62 : f32 to vector<8x128xf32>
    %141 = arith.addf %140, %139 : vector<8x128xf32>
    %142 = arith.divf %140, %141 : vector<8x128xf32>
    %143 = vector.extract_strided_slice %130 {offsets = [0, 256], sizes = [8, 128], strides = [1, 1]} : vector<8x512xf32> to vector<8x128xf32>
    %144 = math.tanh %143 : vector<8x128xf32>
    %145 = vector.extract_strided_slice %130 {offsets = [0, 384], sizes = [8, 128], strides = [1, 1]} : vector<8x512xf32> to vector<8x128xf32>
    %146 = arith.negf %145 : vector<8x128xf32>
    %147 = math.exp %146 : vector<8x128xf32>
    %cst_63 = arith.constant 1.000000e+00 : f32
    %148 = vector.broadcast %cst_63 : f32 to vector<8x128xf32>
    %149 = arith.addf %148, %147 : vector<8x128xf32>
    %150 = arith.divf %148, %149 : vector<8x128xf32>
    %c0_64 = arith.constant 0 : index
    %c0_65 = arith.constant 0 : index
    %151 = vector.load %arg5[%c0_64, %c0_65] : memref<8x128xf32, #tpu.memory_space<vmem>>, vector<8x128xf32>
    %152 = arith.mulf %142, %151 : vector<8x128xf32>
    %153 = arith.mulf %136, %144 : vector<8x128xf32>
    %154 = arith.addf %152, %153 : vector<8x128xf32>
    %155 = math.tanh %154 : vector<8x128xf32>
    %156 = arith.mulf %150, %155 : vector<8x128xf32>
    %c0_66 = arith.constant 0 : index
    %c0_67 = arith.constant 0 : index
    %157 = vector.load %arg5[%c0_66, %c0_67] : memref<8x128xf32, #tpu.memory_space<vmem>>, vector<8x128xf32>
    tpu.vector_store %arg5[%c0_66, %c0_67], %154 {strides = array<i32>} : memref<8x128xf32, #tpu.memory_space<vmem>>, vector<8x128xf32>,
    %c0_68 = arith.constant 0 : index
    %c0_69 = arith.constant 0 : index
    %158 = vector.load %arg4[%c0_68, %c0_69] : memref<8x128xf32, #tpu.memory_space<vmem>>, vector<8x128xf32>
    tpu.vector_store %arg4[%c0_68, %c0_69], %156 {strides = array<i32>} : memref<8x128xf32, #tpu.memory_space<vmem>>, vector<8x128xf32>,
    %159 = arith.index_cast %c3_i32 : i32 to index
    %c0_70 = arith.constant 0 : index
    %c0_71 = arith.constant 0 : index
    %160 = vector.load %arg3[%159, %c0_70, %c0_71] : memref<8x8x128xf32, #tpu.memory_space<vmem>>, vector<1x8x128xf32>
    %161 = vector.shape_cast %160 : vector<1x8x128xf32> to vector<8x128xf32>
    %162 = vector.shape_cast %156 : vector<8x128xf32> to vector<1x8x128xf32>
    tpu.vector_store %arg3[%159, %c0_70, %c0_71], %162 {strides = array<i32>} : memref<8x8x128xf32, #tpu.memory_space<vmem>>, vector<1x8x128xf32>,
    %c4_i32 = arith.constant 4 : i32
    %163 = arith.index_cast %c4_i32 : i32 to index
    %c0_72 = arith.constant 0 : index
    %c0_73 = arith.constant 0 : index
    %164 = vector.load %arg1[%163, %c0_72, %c0_73] : memref<8x8x512xf32, #tpu.memory_space<vmem>>, vector<1x8x512xf32>
    %165 = vector.shape_cast %164 : vector<1x8x512xf32> to vector<8x512xf32>
    %c0_74 = arith.constant 0 : index
    %c0_75 = arith.constant 0 : index
    %166 = vector.load %arg4[%c0_74, %c0_75] : memref<8x128xf32, #tpu.memory_space<vmem>>, vector<8x128xf32>
    %167 = arith.truncf %166 : vector<8x128xf32> to vector<8x128xbf16>
    %c0_76 = arith.constant 0 : index
    %c0_77 = arith.constant 0 : index
    %168 = vector.load %arg2[%c0_76, %c0_77] : memref<128x512xbf16, #tpu.memory_space<vmem>>, vector<128x512xbf16>
    %cst_78 = arith.constant dense<0.000000e+00> : vector<8x512xf32>
    %169 = tpu.matmul %167, %168, %cst_78 {dimension_numbers = #tpu.dot_dimension_numbers<[1], [0], [0], [1], [0, 0, 1, 1], [], []>} : vector<8x128xbf16>, vector<128x512xbf16>, vector<8x512xf32> -> vector<8x512xf32>
    %170 = arith.addf %165, %169 : vector<8x512xf32>
    %171 = vector.extract_strided_slice %170 {offsets = [0, 0], sizes = [8, 128], strides = [1, 1]} : vector<8x512xf32> to vector<8x128xf32>
    %172 = arith.negf %171 : vector<8x128xf32>
    %173 = math.exp %172 : vector<8x128xf32>
    %cst_79 = arith.constant 1.000000e+00 : f32
    %174 = vector.broadcast %cst_79 : f32 to vector<8x128xf32>
    %175 = arith.addf %174, %173 : vector<8x128xf32>
    %176 = arith.divf %174, %175 : vector<8x128xf32>
    %177 = vector.extract_strided_slice %170 {offsets = [0, 128], sizes = [8, 128], strides = [1, 1]} : vector<8x512xf32> to vector<8x128xf32>
    %178 = arith.negf %177 : vector<8x128xf32>
    %179 = math.exp %178 : vector<8x128xf32>
    %cst_80 = arith.constant 1.000000e+00 : f32
    %180 = vector.broadcast %cst_80 : f32 to vector<8x128xf32>
    %181 = arith.addf %180, %179 : vector<8x128xf32>
    %182 = arith.divf %180, %181 : vector<8x128xf32>
    %183 = vector.extract_strided_slice %170 {offsets = [0, 256], sizes = [8, 128], strides = [1, 1]} : vector<8x512xf32> to vector<8x128xf32>
    %184 = math.tanh %183 : vector<8x128xf32>
    %185 = vector.extract_strided_slice %170 {offsets = [0, 384], sizes = [8, 128], strides = [1, 1]} : vector<8x512xf32> to vector<8x128xf32>
    %186 = arith.negf %185 : vector<8x128xf32>
    %187 = math.exp %186 : vector<8x128xf32>
    %cst_81 = arith.constant 1.000000e+00 : f32
    %188 = vector.broadcast %cst_81 : f32 to vector<8x128xf32>
    %189 = arith.addf %188, %187 : vector<8x128xf32>
    %190 = arith.divf %188, %189 : vector<8x128xf32>
    %c0_82 = arith.constant 0 : index
    %c0_83 = arith.constant 0 : index
    %191 = vector.load %arg5[%c0_82, %c0_83] : memref<8x128xf32, #tpu.memory_space<vmem>>, vector<8x128xf32>
    %192 = arith.mulf %182, %191 : vector<8x128xf32>
    %193 = arith.mulf %176, %184 : vector<8x128xf32>
    %194 = arith.addf %192, %193 : vector<8x128xf32>
    %195 = math.tanh %194 : vector<8x128xf32>
    %196 = arith.mulf %190, %195 : vector<8x128xf32>
    %c0_84 = arith.constant 0 : index
    %c0_85 = arith.constant 0 : index
    %197 = vector.load %arg5[%c0_84, %c0_85] : memref<8x128xf32, #tpu.memory_space<vmem>>, vector<8x128xf32>
    tpu.vector_store %arg5[%c0_84, %c0_85], %194 {strides = array<i32>} : memref<8x128xf32, #tpu.memory_space<vmem>>, vector<8x128xf32>,
    %c0_86 = arith.constant 0 : index
    %c0_87 = arith.constant 0 : index
    %198 = vector.load %arg4[%c0_86, %c0_87] : memref<8x128xf32, #tpu.memory_space<vmem>>, vector<8x128xf32>
    tpu.vector_store %arg4[%c0_86, %c0_87], %196 {strides = array<i32>} : memref<8x128xf32, #tpu.memory_space<vmem>>, vector<8x128xf32>,
    %199 = arith.index_cast %c4_i32 : i32 to index
    %c0_88 = arith.constant 0 : index
    %c0_89 = arith.constant 0 : index
    %200 = vector.load %arg3[%199, %c0_88, %c0_89] : memref<8x8x128xf32, #tpu.memory_space<vmem>>, vector<1x8x128xf32>
    %201 = vector.shape_cast %200 : vector<1x8x128xf32> to vector<8x128xf32>
    %202 = vector.shape_cast %196 : vector<8x128xf32> to vector<1x8x128xf32>
    tpu.vector_store %arg3[%199, %c0_88, %c0_89], %202 {strides = array<i32>} : memref<8x8x128xf32, #tpu.memory_space<vmem>>, vector<1x8x128xf32>,
    %c5_i32 = arith.constant 5 : i32
    %203 = arith.index_cast %c5_i32 : i32 to index
    %c0_90 = arith.constant 0 : index
    %c0_91 = arith.constant 0 : index
    %204 = vector.load %arg1[%203, %c0_90, %c0_91] : memref<8x8x512xf32, #tpu.memory_space<vmem>>, vector<1x8x512xf32>
    %205 = vector.shape_cast %204 : vector<1x8x512xf32> to vector<8x512xf32>
    %c0_92 = arith.constant 0 : index
    %c0_93 = arith.constant 0 : index
    %206 = vector.load %arg4[%c0_92, %c0_93] : memref<8x128xf32, #tpu.memory_space<vmem>>, vector<8x128xf32>
    %207 = arith.truncf %206 : vector<8x128xf32> to vector<8x128xbf16>
    %c0_94 = arith.constant 0 : index
    %c0_95 = arith.constant 0 : index
    %208 = vector.load %arg2[%c0_94, %c0_95] : memref<128x512xbf16, #tpu.memory_space<vmem>>, vector<128x512xbf16>
    %cst_96 = arith.constant dense<0.000000e+00> : vector<8x512xf32>
    %209 = tpu.matmul %207, %208, %cst_96 {dimension_numbers = #tpu.dot_dimension_numbers<[1], [0], [0], [1], [0, 0, 1, 1], [], []>} : vector<8x128xbf16>, vector<128x512xbf16>, vector<8x512xf32> -> vector<8x512xf32>
    %210 = arith.addf %205, %209 : vector<8x512xf32>
    %211 = vector.extract_strided_slice %210 {offsets = [0, 0], sizes = [8, 128], strides = [1, 1]} : vector<8x512xf32> to vector<8x128xf32>
    %212 = arith.negf %211 : vector<8x128xf32>
    %213 = math.exp %212 : vector<8x128xf32>
    %cst_97 = arith.constant 1.000000e+00 : f32
    %214 = vector.broadcast %cst_97 : f32 to vector<8x128xf32>
    %215 = arith.addf %214, %213 : vector<8x128xf32>
    %216 = arith.divf %214, %215 : vector<8x128xf32>
    %217 = vector.extract_strided_slice %210 {offsets = [0, 128], sizes = [8, 128], strides = [1, 1]} : vector<8x512xf32> to vector<8x128xf32>
    %218 = arith.negf %217 : vector<8x128xf32>
    %219 = math.exp %218 : vector<8x128xf32>
    %cst_98 = arith.constant 1.000000e+00 : f32
    %220 = vector.broadcast %cst_98 : f32 to vector<8x128xf32>
    %221 = arith.addf %220, %219 : vector<8x128xf32>
    %222 = arith.divf %220, %221 : vector<8x128xf32>
    %223 = vector.extract_strided_slice %210 {offsets = [0, 256], sizes = [8, 128], strides = [1, 1]} : vector<8x512xf32> to vector<8x128xf32>
    %224 = math.tanh %223 : vector<8x128xf32>
    %225 = vector.extract_strided_slice %210 {offsets = [0, 384], sizes = [8, 128], strides = [1, 1]} : vector<8x512xf32> to vector<8x128xf32>
    %226 = arith.negf %225 : vector<8x128xf32>
    %227 = math.exp %226 : vector<8x128xf32>
    %cst_99 = arith.constant 1.000000e+00 : f32
    %228 = vector.broadcast %cst_99 : f32 to vector<8x128xf32>
    %229 = arith.addf %228, %227 : vector<8x128xf32>
    %230 = arith.divf %228, %229 : vector<8x128xf32>
    %c0_100 = arith.constant 0 : index
    %c0_101 = arith.constant 0 : index
    %231 = vector.load %arg5[%c0_100, %c0_101] : memref<8x128xf32, #tpu.memory_space<vmem>>, vector<8x128xf32>
    %232 = arith.mulf %222, %231 : vector<8x128xf32>
    %233 = arith.mulf %216, %224 : vector<8x128xf32>
    %234 = arith.addf %232, %233 : vector<8x128xf32>
    %235 = math.tanh %234 : vector<8x128xf32>
    %236 = arith.mulf %230, %235 : vector<8x128xf32>
    %c0_102 = arith.constant 0 : index
    %c0_103 = arith.constant 0 : index
    %237 = vector.load %arg5[%c0_102, %c0_103] : memref<8x128xf32, #tpu.memory_space<vmem>>, vector<8x128xf32>
    tpu.vector_store %arg5[%c0_102, %c0_103], %234 {strides = array<i32>} : memref<8x128xf32, #tpu.memory_space<vmem>>, vector<8x128xf32>,
    %c0_104 = arith.constant 0 : index
    %c0_105 = arith.constant 0 : index
    %238 = vector.load %arg4[%c0_104, %c0_105] : memref<8x128xf32, #tpu.memory_space<vmem>>, vector<8x128xf32>
    tpu.vector_store %arg4[%c0_104, %c0_105], %236 {strides = array<i32>} : memref<8x128xf32, #tpu.memory_space<vmem>>, vector<8x128xf32>,
    %239 = arith.index_cast %c5_i32 : i32 to index
    %c0_106 = arith.constant 0 : index
    %c0_107 = arith.constant 0 : index
    %240 = vector.load %arg3[%239, %c0_106, %c0_107] : memref<8x8x128xf32, #tpu.memory_space<vmem>>, vector<1x8x128xf32>
    %241 = vector.shape_cast %240 : vector<1x8x128xf32> to vector<8x128xf32>
    %242 = vector.shape_cast %236 : vector<8x128xf32> to vector<1x8x128xf32>
    tpu.vector_store %arg3[%239, %c0_106, %c0_107], %242 {strides = array<i32>} : memref<8x8x128xf32, #tpu.memory_space<vmem>>, vector<1x8x128xf32>,
    %c6_i32 = arith.constant 6 : i32
    %243 = arith.index_cast %c6_i32 : i32 to index
    %c0_108 = arith.constant 0 : index
    %c0_109 = arith.constant 0 : index
    %244 = vector.load %arg1[%243, %c0_108, %c0_109] : memref<8x8x512xf32, #tpu.memory_space<vmem>>, vector<1x8x512xf32>
    %245 = vector.shape_cast %244 : vector<1x8x512xf32> to vector<8x512xf32>
    %c0_110 = arith.constant 0 : index
    %c0_111 = arith.constant 0 : index
    %246 = vector.load %arg4[%c0_110, %c0_111] : memref<8x128xf32, #tpu.memory_space<vmem>>, vector<8x128xf32>
    %247 = arith.truncf %246 : vector<8x128xf32> to vector<8x128xbf16>
    %c0_112 = arith.constant 0 : index
    %c0_113 = arith.constant 0 : index
    %248 = vector.load %arg2[%c0_112, %c0_113] : memref<128x512xbf16, #tpu.memory_space<vmem>>, vector<128x512xbf16>
    %cst_114 = arith.constant dense<0.000000e+00> : vector<8x512xf32>
    %249 = tpu.matmul %247, %248, %cst_114 {dimension_numbers = #tpu.dot_dimension_numbers<[1], [0], [0], [1], [0, 0, 1, 1], [], []>} : vector<8x128xbf16>, vector<128x512xbf16>, vector<8x512xf32> -> vector<8x512xf32>
    %250 = arith.addf %245, %249 : vector<8x512xf32>
    %251 = vector.extract_strided_slice %250 {offsets = [0, 0], sizes = [8, 128], strides = [1, 1]} : vector<8x512xf32> to vector<8x128xf32>
    %252 = arith.negf %251 : vector<8x128xf32>
    %253 = math.exp %252 : vector<8x128xf32>
    %cst_115 = arith.constant 1.000000e+00 : f32
    %254 = vector.broadcast %cst_115 : f32 to vector<8x128xf32>
    %255 = arith.addf %254, %253 : vector<8x128xf32>
    %256 = arith.divf %254, %255 : vector<8x128xf32>
    %257 = vector.extract_strided_slice %250 {offsets = [0, 128], sizes = [8, 128], strides = [1, 1]} : vector<8x512xf32> to vector<8x128xf32>
    %258 = arith.negf %257 : vector<8x128xf32>
    %259 = math.exp %258 : vector<8x128xf32>
    %cst_116 = arith.constant 1.000000e+00 : f32
    %260 = vector.broadcast %cst_116 : f32 to vector<8x128xf32>
    %261 = arith.addf %260, %259 : vector<8x128xf32>
    %262 = arith.divf %260, %261 : vector<8x128xf32>
    %263 = vector.extract_strided_slice %250 {offsets = [0, 256], sizes = [8, 128], strides = [1, 1]} : vector<8x512xf32> to vector<8x128xf32>
    %264 = math.tanh %263 : vector<8x128xf32>
    %265 = vector.extract_strided_slice %250 {offsets = [0, 384], sizes = [8, 128], strides = [1, 1]} : vector<8x512xf32> to vector<8x128xf32>
    %266 = arith.negf %265 : vector<8x128xf32>
    %267 = math.exp %266 : vector<8x128xf32>
    %cst_117 = arith.constant 1.000000e+00 : f32
    %268 = vector.broadcast %cst_117 : f32 to vector<8x128xf32>
    %269 = arith.addf %268, %267 : vector<8x128xf32>
    %270 = arith.divf %268, %269 : vector<8x128xf32>
    %c0_118 = arith.constant 0 : index
    %c0_119 = arith.constant 0 : index
    %271 = vector.load %arg5[%c0_118, %c0_119] : memref<8x128xf32, #tpu.memory_space<vmem>>, vector<8x128xf32>
    %272 = arith.mulf %262, %271 : vector<8x128xf32>
    %273 = arith.mulf %256, %264 : vector<8x128xf32>
    %274 = arith.addf %272, %273 : vector<8x128xf32>
    %275 = math.tanh %274 : vector<8x128xf32>
    %276 = arith.mulf %270, %275 : vector<8x128xf32>
    %c0_120 = arith.constant 0 : index
    %c0_121 = arith.constant 0 : index
    %277 = vector.load %arg5[%c0_120, %c0_121] : memref<8x128xf32, #tpu.memory_space<vmem>>, vector<8x128xf32>
    tpu.vector_store %arg5[%c0_120, %c0_121], %274 {strides = array<i32>} : memref<8x128xf32, #tpu.memory_space<vmem>>, vector<8x128xf32>,
    %c0_122 = arith.constant 0 : index
    %c0_123 = arith.constant 0 : index
    %278 = vector.load %arg4[%c0_122, %c0_123] : memref<8x128xf32, #tpu.memory_space<vmem>>, vector<8x128xf32>
    tpu.vector_store %arg4[%c0_122, %c0_123], %276 {strides = array<i32>} : memref<8x128xf32, #tpu.memory_space<vmem>>, vector<8x128xf32>,
    %279 = arith.index_cast %c6_i32 : i32 to index
    %c0_124 = arith.constant 0 : index
    %c0_125 = arith.constant 0 : index
    %280 = vector.load %arg3[%279, %c0_124, %c0_125] : memref<8x8x128xf32, #tpu.memory_space<vmem>>, vector<1x8x128xf32>
    %281 = vector.shape_cast %280 : vector<1x8x128xf32> to vector<8x128xf32>
    %282 = vector.shape_cast %276 : vector<8x128xf32> to vector<1x8x128xf32>
    tpu.vector_store %arg3[%279, %c0_124, %c0_125], %282 {strides = array<i32>} : memref<8x8x128xf32, #tpu.memory_space<vmem>>, vector<1x8x128xf32>,
    %c7_i32 = arith.constant 7 : i32
    %283 = arith.index_cast %c7_i32 : i32 to index
    %c0_126 = arith.constant 0 : index
    %c0_127 = arith.constant 0 : index
    %284 = vector.load %arg1[%283, %c0_126, %c0_127] : memref<8x8x512xf32, #tpu.memory_space<vmem>>, vector<1x8x512xf32>
    %285 = vector.shape_cast %284 : vector<1x8x512xf32> to vector<8x512xf32>
    %c0_128 = arith.constant 0 : index
    %c0_129 = arith.constant 0 : index
    %286 = vector.load %arg4[%c0_128, %c0_129] : memref<8x128xf32, #tpu.memory_space<vmem>>, vector<8x128xf32>
    %287 = arith.truncf %286 : vector<8x128xf32> to vector<8x128xbf16>
    %c0_130 = arith.constant 0 : index
    %c0_131 = arith.constant 0 : index
    %288 = vector.load %arg2[%c0_130, %c0_131] : memref<128x512xbf16, #tpu.memory_space<vmem>>, vector<128x512xbf16>
    %cst_132 = arith.constant dense<0.000000e+00> : vector<8x512xf32>
    %289 = tpu.matmul %287, %288, %cst_132 {dimension_numbers = #tpu.dot_dimension_numbers<[1], [0], [0], [1], [0, 0, 1, 1], [], []>} : vector<8x128xbf16>, vector<128x512xbf16>, vector<8x512xf32> -> vector<8x512xf32>
    %290 = arith.addf %285, %289 : vector<8x512xf32>
    %291 = vector.extract_strided_slice %290 {offsets = [0, 0], sizes = [8, 128], strides = [1, 1]} : vector<8x512xf32> to vector<8x128xf32>
    %292 = arith.negf %291 : vector<8x128xf32>
    %293 = math.exp %292 : vector<8x128xf32>
    %cst_133 = arith.constant 1.000000e+00 : f32
    %294 = vector.broadcast %cst_133 : f32 to vector<8x128xf32>
    %295 = arith.addf %294, %293 : vector<8x128xf32>
    %296 = arith.divf %294, %295 : vector<8x128xf32>
    %297 = vector.extract_strided_slice %290 {offsets = [0, 128], sizes = [8, 128], strides = [1, 1]} : vector<8x512xf32> to vector<8x128xf32>
    %298 = arith.negf %297 : vector<8x128xf32>
    %299 = math.exp %298 : vector<8x128xf32>
    %cst_134 = arith.constant 1.000000e+00 : f32
    %300 = vector.broadcast %cst_134 : f32 to vector<8x128xf32>
    %301 = arith.addf %300, %299 : vector<8x128xf32>
    %302 = arith.divf %300, %301 : vector<8x128xf32>
    %303 = vector.extract_strided_slice %290 {offsets = [0, 256], sizes = [8, 128], strides = [1, 1]} : vector<8x512xf32> to vector<8x128xf32>
    %304 = math.tanh %303 : vector<8x128xf32>
    %305 = vector.extract_strided_slice %290 {offsets = [0, 384], sizes = [8, 128], strides = [1, 1]} : vector<8x512xf32> to vector<8x128xf32>
    %306 = arith.negf %305 : vector<8x128xf32>
    %307 = math.exp %306 : vector<8x128xf32>
    %cst_135 = arith.constant 1.000000e+00 : f32
    %308 = vector.broadcast %cst_135 : f32 to vector<8x128xf32>
    %309 = arith.addf %308, %307 : vector<8x128xf32>
    %310 = arith.divf %308, %309 : vector<8x128xf32>
    %c0_136 = arith.constant 0 : index
    %c0_137 = arith.constant 0 : index
    %311 = vector.load %arg5[%c0_136, %c0_137] : memref<8x128xf32, #tpu.memory_space<vmem>>, vector<8x128xf32>
    %312 = arith.mulf %302, %311 : vector<8x128xf32>
    %313 = arith.mulf %296, %304 : vector<8x128xf32>
    %314 = arith.addf %312, %313 : vector<8x128xf32>
    %315 = math.tanh %314 : vector<8x128xf32>
    %316 = arith.mulf %310, %315 : vector<8x128xf32>
    %c0_138 = arith.constant 0 : index
    %c0_139 = arith.constant 0 : index
    %317 = vector.load %arg5[%c0_138, %c0_139] : memref<8x128xf32, #tpu.memory_space<vmem>>, vector<8x128xf32>
    tpu.vector_store %arg5[%c0_138, %c0_139], %314 {strides = array<i32>} : memref<8x128xf32, #tpu.memory_space<vmem>>, vector<8x128xf32>,
    %c0_140 = arith.constant 0 : index
    %c0_141 = arith.constant 0 : index
    %318 = vector.load %arg4[%c0_140, %c0_141] : memref<8x128xf32, #tpu.memory_space<vmem>>, vector<8x128xf32>
    tpu.vector_store %arg4[%c0_140, %c0_141], %316 {strides = array<i32>} : memref<8x128xf32, #tpu.memory_space<vmem>>, vector<8x128xf32>,
    %319 = arith.index_cast %c7_i32 : i32 to index
    %c0_142 = arith.constant 0 : index
    %c0_143 = arith.constant 0 : index
    %320 = vector.load %arg3[%319, %c0_142, %c0_143] : memref<8x8x128xf32, #tpu.memory_space<vmem>>, vector<1x8x128xf32>
    %321 = vector.shape_cast %320 : vector<1x8x128xf32> to vector<8x128xf32>
    %322 = vector.shape_cast %316 : vector<8x128xf32> to vector<1x8x128xf32>
    tpu.vector_store %arg3[%319, %c0_142, %c0_143], %322 {strides = array<i32>} : memref<8x8x128xf32, #tpu.memory_space<vmem>>, vector<1x8x128xf32>,
    %c8_i32 = arith.constant 8 : i32
    return
  }
  func.func @transform_0(%arg0: i32) -> (i32, i32, i32) {
    %c0_i32 = arith.constant 0 : i32
    %c0_i32_0 = arith.constant 0 : i32
    %c0_i32_1 = arith.constant 0 : i32
    return %arg0, %c0_i32, %c0_i32_0 : i32, i32, i32
  }
  func.func @transform_1(%arg0: i32) -> (i32, i32) {
    %c0_i32 = arith.constant 0 : i32
    %c0_i32_0 = arith.constant 0 : i32
    %c0_i32_1 = arith.constant 0 : i32
    return %c0_i32, %c0_i32_0 : i32, i32
  }
  func.func @transform_2(%arg0: i32) -> (i32, i32, i32) {
    %c0_i32 = arith.constant 0 : i32
    %c0_i32_0 = arith.constant 0 : i32
    %c0_i32_1 = arith.constant 0 : i32
    return %arg0, %c0_i32, %c0_i32_0 : i32, i32, i32
  }
}

</mosaic_0001>

<bundles_post_ra>
// kernel: tpu_custom_call.1
= control target key start
LH: loop header
LB: loop body
LE: loop exit
PB: predicated region body
PF: predicated region fallthrough
CT: control target
= control target key end

     0   :  { %7 = vsyncpa [#allocation5], 0  ;;  %s4234_s0 = inlined_call_operand.hbm [shape: f32[8,8,512], index: 0, kind: input, shape index: {}]   ;;  %s4235_s1 = inlined_call_operand.hbm [shape: bf16[128,512], index: 1, kind: input, shape index: {}]   ;;  %s4236_s2 = inlined_call_operand.hbm [shape: f32[8,8,128], index: 2, kind: output, shape index: {}]  }
   0x1   :  { %8 = vsyncpa [#allocation8], 0 }
   0x2   :  { %9 = vsyncpa [#allocation6], 0  ;;  %s14_s11 = sshll.u32 %s4234_s0, 4  ;;  %s4172_s12 = smov [#allocation4]   ;;  %s15_s11 = int_to_ptr.hbm [resolvable:$true] %s14_s11 }
   0x3   :  { %s16_s13 = sshll.u32 %s4172_s12, 4  ;;  %s27_s16 = sshll.u32 %s4235_s1, 4  ;;  %s17_s13 = int_to_ptr.vmem [resolvable:$true] %s16_s13  ;;  %s28_s16 = int_to_ptr.hbm [resolvable:$true] %s27_s16 }
   0x4   :  { %s4173_s17 = smov 512   ;;  %s4174_s18 = smov 32  }
   0x5   :  { %22 = dma.hbm_to_vmem [thread:$0]  %s15_s11, 4096, %s17_s13, [#allocation5], %s4173_s17, %s4173_s17, %s4174_s18  }
   0x6   :  { %s4175_s19 = smov [#allocation7]   ;;  %s4176_s21 = smov 256  }
   0x7   :  { %s29_s20 = sshll.u32 %s4175_s19, 4  ;;  %s4177_s22 = smov 16   ;;  %s30_s20 = int_to_ptr.vmem [resolvable:$true] %s29_s20 }
   0x8   :  { %35 = dma.hbm_to_vmem [thread:$0]  %s28_s16, 4096, %s30_s20, [#allocation8], %s4176_s21, %s4176_s21, %s4177_s22  }
   0x9   :  { %4166 = dma.done.wait [#allocation5], 4096  }
   0xa   :  { %4167 = vsyncadd [#allocation5], 4294963200 }
   0xb   :  { %4168 = dma.done.wait [#allocation8], 4096  }
   0xc   :  { %4169 = vsyncadd [#allocation8], 4294963200  ;;  %v2766_v0 = vld [vmem:[#allocation7 + $0xe0] sm:$0xf]  ;;  %v3730_v1 = vld [vmem:[#allocation7 + $0xec] sm:$0xf0] }
   0xd   :  { %v3728_v2 = vld [vmem:[#allocation7 + $0xe4] sm:$0xf]  ;;  %v2767_v3 = vor.u32 %v3730_v1, %v2766_v0  ;;  %v2768_v4 = vld [vmem:[#allocation7 + $0xf0] sm:$0xf0]  ;;  %v3729_v5 = vld [vmem:[#allocation7 + $0xec] sm:$0xf] }
   0xe   :  { %v2776_v6 = vld [vmem:[#allocation7 + $0xf8] sm:$0xf0]  ;;  %v2771_v7 = vor.u32 %v3728_v2, %v2768_v4  ;;  %v2750_v9 = vld [vmem:[#allocation7 + $0xc0] sm:$0xf]  ;;  %v3726_v10 = vld [vmem:[#allocation7 + $0xcc] sm:$0xf0] }
   0xf   :  { %v2779_v8 = vor.u32 %v3729_v5, %v2776_v6  ;;  %v3724_v11 = vld [vmem:[#allocation7 + $0xc4] sm:$0xf]  ;;  %248 = vmatpush.bf16.msra.mxu0 %v2767_v3  ;;  %v2751_v12 = vor.u32 %v3726_v10, %v2750_v9  ;;  %v2752_v13 = vld [vmem:[#allocation7 + $0xd0] sm:$0xf0]  ;;  %v3725_v14 = vld [vmem:[#allocation7 + $0xcc] sm:$0xf] }
  0x10   :  { %v2760_v15 = vld [vmem:[#allocation7 + $0xd8] sm:$0xf0]  ;;  %261 = vmatpush.bf16.msra.mxu1 %v2771_v7  ;;  %v2755_v16 = vor.u32 %v3724_v11, %v2752_v13  ;;  %v2774_v18 = vld [vmem:[#allocation7 + $0xe8] sm:$0xf]  ;;  %v3731_v19 = vld [vmem:[#allocation7 + $0xf4] sm:$0xf0] }
  0x11   :  { %287 = vmatpush.bf16.msra.mxu3 %v2779_v8  ;;  %v2763_v17 = vor.u32 %v3725_v14, %v2760_v15  ;;  %v2734_v20 = vld [vmem:[#allocation7 + $0xa0] sm:$0xf]  ;;  %v2775_v21 = vor.u32 %v3731_v19, %v2774_v18  ;;  %v3722_v22 = vld [vmem:[#allocation7 + $0xac] sm:$0xf0]  ;;  %v3720_v23 = vld [vmem:[#allocation7 + $0xa4] sm:$0xf] }
  0x12   :  { %v2736_v24 = vld [vmem:[#allocation7 + $0xb0] sm:$0xf0]  ;;  %v3721_v25 = vld [vmem:[#allocation7 + $0xac] sm:$0xf]  ;;  %v2744_v26 = vld [vmem:[#allocation7 + $0xb8] sm:$0xf0]  ;;  %v2735_v28 = vor.u32 %v3722_v22, %v2734_v20 }
  0x13   :  { %v2758_v27 = vld [vmem:[#allocation7 + $0xc8] sm:$0xf]  ;;  %249 = vmatpush.bf16.msra.mxu0 %v2751_v12  ;;  %274 = vmatpush.bf16.msra.mxu2 %v2775_v21  ;;  %v3727_v29 = vld [vmem:[#allocation7 + $0xd4] sm:$0xf0]  ;;  %v2718_v30 = vld [vmem:[#allocation7 + $0x80] sm:$0xf]  ;;  %v2739_v32 = vor.u32 %v3720_v23, %v2736_v24  ;;  %v2747_v33 = vor.u32 %v3721_v25, %v2744_v26 }
  0x14   :  { %v3718_v31 = vld [vmem:[#allocation7 + $0x8c] sm:$0xf0]  ;;  %262 = vmatpush.bf16.msra.mxu1 %v2755_v16  ;;  %v2759_v34 = vor.u32 %v3727_v29, %v2758_v27  ;;  %v3716_v35 = vld [vmem:[#allocation7 + $0x84] sm:$0xf]  ;;  %v2720_v36 = vld [vmem:[#allocation7 + $0x90] sm:$0xf0] }
  0x15   :  { %288 = vmatpush.bf16.msra.mxu3 %v2763_v17  ;;  %v3717_v37 = vld [vmem:[#allocation7 + $0x8c] sm:$0xf]  ;;  %v2728_v38 = vld [vmem:[#allocation7 + $0x98] sm:$0xf0]  ;;  %v2742_v39 = vld [vmem:[#allocation7 + $0xa8] sm:$0xf]  ;;  %v2719_v41 = vor.u32 %v3718_v31, %v2718_v30  ;;  %v2723_v45 = vor.u32 %v3716_v35, %v2720_v36 }
  0x16   :  { %v3723_v40 = vld [vmem:[#allocation7 + $0xb4] sm:$0xf0]  ;;  %v2702_v43 = vld [vmem:[#allocation7 + $0x60] sm:$0xf]  ;;  %v3714_v44 = vld [vmem:[#allocation7 + $0x6c] sm:$0xf0]  ;;  %v2731_v46 = vor.u32 %v3717_v37, %v2728_v38 }
  0x17   :  { %250 = vmatpush.bf16.msra.mxu0 %v2735_v28  ;;  %275 = vmatpush.bf16.msra.mxu2 %v2759_v34  ;;  %v2743_v42 = vor.u32 %v3723_v40, %v2742_v39  ;;  %v3712_v47 = vld [vmem:[#allocation7 + $0x64] sm:$0xf]  ;;  %v2726_v48 = vld [vmem:[#allocation7 + $0x88] sm:$0xf]  ;;  %v3719_v49 = vld [vmem:[#allocation7 + $0x94] sm:$0xf0]  ;;  %v2703_v53 = vor.u32 %v3714_v44, %v2702_v43 }
  0x18   :  { %263 = vmatpush.bf16.msra.mxu1 %v2739_v32  ;;  %v2704_v50 = vld [vmem:[#allocation7 + $0x70] sm:$0xf0]  ;;  %v3713_v51 = vld [vmem:[#allocation7 + $0x6c] sm:$0xf]  ;;  %v2712_v52 = vld [vmem:[#allocation7 + $0x78] sm:$0xf0]  ;;  %v2727_v54 = vor.u32 %v3719_v49, %v2726_v48 }
  0x19   :  { %289 = vmatpush.bf16.msra.mxu3 %v2747_v33  ;;  %v2686_v55 = vld [vmem:[#allocation7 + $0x40] sm:$0xf]  ;;  %v3710_v56 = vld [vmem:[#allocation7 + $0x4c] sm:$0xf0]  ;;  %v2707_v57 = vor.u32 %v3712_v47, %v2704_v50  ;;  %v2715_v58 = vor.u32 %v3713_v51, %v2712_v52  ;;  %v3708_v59 = vld [vmem:[#allocation7 + $0x44] sm:$0xf] }
  0x1a   :  { %v2710_v60 = vld [vmem:[#allocation7 + $0x68] sm:$0xf]  ;;  %v3715_v61 = vld [vmem:[#allocation7 + $0x74] sm:$0xf0]  ;;  %v2688_v62 = vld [vmem:[#allocation7 + $0x50] sm:$0xf0]  ;;  %v2687_v1 = vor.u32 %v3710_v56, %v2686_v55 }
  0x1b   :  { %251 = vmatpush.bf16.msra.mxu0 %v2719_v41  ;;  %276 = vmatpush.bf16.msra.mxu2 %v2743_v42  ;;  %v3709_v63 = vld [vmem:[#allocation7 + $0x4c] sm:$0xf]  ;;  %v2696_v0 = vld [vmem:[#allocation7 + $0x58] sm:$0xf0]  ;;  %v2711_v2 = vor.u32 %v3715_v61, %v2710_v60  ;;  %v2670_v3 = vld [vmem:[#allocation7 + $0x20] sm:$0xf]  ;;  %v2691_v5 = vor.u32 %v3708_v59, %v2688_v62 }
  0x1c   :  { %264 = vmatpush.bf16.msra.mxu1 %v2723_v45  ;;  %v3706_v4 = vld [vmem:[#allocation7 + $0x2c] sm:$0xf0]  ;;  %v2699_v6 = vor.u32 %v3709_v63, %v2696_v0  ;;  %v3704_v7 = vld [vmem:[#allocation7 + $0x24] sm:$0xf]  ;;  %v2694_v8 = vld [vmem:[#allocation7 + $0x48] sm:$0xf] }
  0x1d   :  { %290 = vmatpush.bf16.msra.mxu3 %v2731_v46  ;;  %v3711_v9 = vld [vmem:[#allocation7 + $0x54] sm:$0xf0]  ;;  %v2672_v10 = vld [vmem:[#allocation7 + $0x30] sm:$0xf0]  ;;  %v3705_v11 = vld [vmem:[#allocation7 + $0x2c] sm:$0xf]  ;;  %v2671_v13 = vor.u32 %v3706_v4, %v2670_v3 }
  0x1e   :  { %v2680_v12 = vld [vmem:[#allocation7 + $0x38] sm:$0xf0]  ;;  %v2695_v14 = vor.u32 %v3711_v9, %v2694_v8  ;;  %v2654_v15 = vld [vmem:[#allocation7] sm:$0xf]  ;;  %v3702_v16 = vld [vmem:[#allocation7 + $0xc] sm:$0xf0]  ;;  %v2675_v17 = vor.u32 %v3704_v7, %v2672_v10 }
  0x1f   :  { %252 = vmatpush.bf16.msra.mxu0 %v2703_v53  ;;  %277 = vmatpush.bf16.msra.mxu2 %v2727_v54  ;;  %v2683_v18 = vor.u32 %v3705_v11, %v2680_v12  ;;  %v3700_v19 = vld [vmem:[#allocation7 + $0x4] sm:$0xf]  ;;  %v2678_v20 = vld [vmem:[#allocation7 + $0x28] sm:$0xf]  ;;  %v3707_v21 = vld [vmem:[#allocation7 + $0x34] sm:$0xf0]  ;;  %v2655_v25 = vor.u32 %v3702_v16, %v2654_v15 }
  0x20   :  { %265 = vmatpush.bf16.msra.mxu1 %v2707_v57  ;;  %v2656_v22 = vld [vmem:[#allocation7 + $0x10] sm:$0xf0]  ;;  %v3701_v23 = vld [vmem:[#allocation7 + $0xc] sm:$0xf]  ;;  %v2664_v24 = vld [vmem:[#allocation7 + $0x18] sm:$0xf0]  ;;  %v2679_v26 = vor.u32 %v3707_v21, %v2678_v20 }
  0x21   :  { %291 = vmatpush.bf16.msra.mxu3 %v2715_v58  ;;  %v2659_v27 = vor.u32 %v3700_v19, %v2656_v22  ;;  %v2667_v28 = vor.u32 %v3701_v23, %v2664_v24  ;;  %v2662_v29 = vld [vmem:[#allocation7 + $0x8] sm:$0xf]  ;;  %v3703_v30 = vld [vmem:[#allocation7 + $0x14] sm:$0xf0]  ;;  %v4178_v32 = vmov 0.0|0.0   ;;  %v50_v16 = vld [vmem:[#allocation4] sm:$0xff] }
  0x22   :  { %v2663_v31 = vor.u32 %v3703_v30, %v2662_v29  ;;  %v2897_v33 = vld [vmem:[#allocation7 + $0xe0] sm:$0xf]  ;;  %v3762_v34 = vld [vmem:[#allocation7 + $0xec] sm:$0xf0]  ;;  %v3760_v35 = vld [vmem:[#allocation7 + $0xe4] sm:$0xf] }
  0x23   :  { %253 = vmatpush.bf16.msra.mxu0 %v2687_v1  ;;  %278 = vmatpush.bf16.msra.mxu2 %v2711_v2  ;;  %v2898_v36 = vor.u32 %v3762_v34, %v2897_v33  ;;  %v2899_v37 = vld [vmem:[#allocation7 + $0xf0] sm:$0xf0]  ;;  %v2905_v38 = vld [vmem:[#allocation7 + $0xe8] sm:$0xf]  ;;  %v3763_v39 = vld [vmem:[#allocation7 + $0xf4] sm:$0xf0] }
  0x24   :  { %266 = vmatpush.bf16.msra.mxu1 %v2691_v5  ;;  %v2902_v40 = vor.u32 %v3760_v35, %v2899_v37  ;;  %v2906_v41 = vor.u32 %v3763_v39, %v2905_v38  ;;  %v3761_v42 = vld [vmem:[#allocation7 + $0xec] sm:$0xf]  ;;  %v2907_v43 = vld [vmem:[#allocation7 + $0xf8] sm:$0xf0]  ;;  %v2881_v45 = vld [vmem:[#allocation7 + $0xc0] sm:$0xf] }
  0x25   :  { %292 = vmatpush.bf16.msra.mxu3 %v2699_v6  ;;  %v2910_v44 = vor.u32 %v3761_v42, %v2907_v43  ;;  %v3758_v46 = vld [vmem:[#allocation7 + $0xcc] sm:$0xf0]  ;;  %v3756_v47 = vld [vmem:[#allocation7 + $0xc4] sm:$0xf]  ;;  %v2883_v49 = vld [vmem:[#allocation7 + $0xd0] sm:$0xf0] }
  0x26   :  { %v2882_v48 = vor.u32 %v3758_v46, %v2881_v45  ;;  %v2889_v50 = vld [vmem:[#allocation7 + $0xc8] sm:$0xf]  ;;  %v3759_v51 = vld [vmem:[#allocation7 + $0xd4] sm:$0xf0]  ;;  %v2886_v52 = vor.u32 %v3756_v47, %v2883_v49  ;;  %v3757_v54 = vld [vmem:[#allocation7 + $0xcc] sm:$0xf] }
  0x27   :  { %254 = vmatpush.bf16.msra.mxu0 %v2671_v13  ;;  %279 = vmatpush.bf16.msra.mxu2 %v2695_v14  ;;  %v2890_v53 = vor.u32 %v3759_v51, %v2889_v50  ;;  %v2891_v55 = vld [vmem:[#allocation7 + $0xd8] sm:$0xf0]  ;;  %v2865_v57 = vld [vmem:[#allocation7 + $0xa0] sm:$0xf]  ;;  %v3754_v58 = vld [vmem:[#allocation7 + $0xac] sm:$0xf0] }
  0x28   :  { %267 = vmatpush.bf16.msra.mxu1 %v2675_v17  ;;  %v2894_v56 = vor.u32 %v3757_v54, %v2891_v55  ;;  %v3752_v59 = vld [vmem:[#allocation7 + $0xa4] sm:$0xf]  ;;  %v2866_v60 = vor.u32 %v3754_v58, %v2865_v57  ;;  %v2867_v61 = vld [vmem:[#allocation7 + $0xb0] sm:$0xf0]  ;;  %v2873_v62 = vld [vmem:[#allocation7 + $0xa8] sm:$0xf] }
  0x29   :  { %293 = vmatpush.bf16.msra.mxu3 %v2683_v18  ;;  %v2870_v63 = vor.u32 %v3752_v59, %v2867_v61  ;;  %v3755_v0 = vld [vmem:[#allocation7 + $0xb4] sm:$0xf0]  ;;  %v3753_v1 = vld [vmem:[#allocation7 + $0xac] sm:$0xf]  ;;  %v2875_v2 = vld [vmem:[#allocation7 + $0xb8] sm:$0xf0] }
  0x2a   :  { %v2874_v3 = vor.u32 %v3755_v0, %v2873_v62  ;;  %v2878_v4 = vor.u32 %v3753_v1, %v2875_v2  ;;  %v2849_v5 = vld [vmem:[#allocation7 + $0x80] sm:$0xf]  ;;  %v3750_v6 = vld [vmem:[#allocation7 + $0x8c] sm:$0xf0]  ;;  %v3748_v7 = vld [vmem:[#allocation7 + $0x84] sm:$0xf] }
  0x2b   :  { %255 = vmatpush.bf16.msra.mxu0 %v2655_v25  ;;  %280 = vmatpush.bf16.msra.mxu2 %v2679_v26  ;;  %v2850_v8 = vor.u32 %v3750_v6, %v2849_v5  ;;  %v2851_v9 = vld [vmem:[#allocation7 + $0x90] sm:$0xf0]  ;;  %v2857_v10 = vld [vmem:[#allocation7 + $0x88] sm:$0xf]  ;;  %v3751_v11 = vld [vmem:[#allocation7 + $0x94] sm:$0xf0] }
  0x2c   :  { %268 = vmatpush.bf16.msra.mxu1 %v2659_v27  ;;  %v2854_v12 = vor.u32 %v3748_v7, %v2851_v9  ;;  %v2858_v13 = vor.u32 %v3751_v11, %v2857_v10  ;;  %v3749_v14 = vld [vmem:[#allocation7 + $0x8c] sm:$0xf]  ;;  %v2859_v15 = vld [vmem:[#allocation7 + $0x98] sm:$0xf0]  ;;  %v2833_v18 = vld [vmem:[#allocation7 + $0x60] sm:$0xf] }
  0x2d   :  { %294 = vmatpush.bf16.msra.mxu3 %v2667_v28  ;;  %v2862_v17 = vor.u32 %v3749_v14, %v2859_v15  ;;  %v3746_v19 = vld [vmem:[#allocation7 + $0x6c] sm:$0xf0]  ;;  %v3744_v20 = vld [vmem:[#allocation7 + $0x64] sm:$0xf]  ;;  %v2835_v22 = vld [vmem:[#allocation7 + $0x70] sm:$0xf0] }
  0x2e   :  { %256 = vmatmul.bf16.vlgmr.msra.gmra.mxu0 %v4178_v32  ;;  %v2834_v21 = vor.u32 %v3746_v19, %v2833_v18  ;;  %v2841_v23 = vld [vmem:[#allocation7 + $0x68] sm:$0xf]  ;;  %v3747_v24 = vld [vmem:[#allocation7 + $0x74] sm:$0xf0]  ;;  %v2838_v26 = vor.u32 %v3744_v20, %v2835_v22  ;;  %v3745_v28 = vld [vmem:[#allocation7 + $0x6c] sm:$0xf] }
  0x2f   :  { %269 = vmatmul.bf16.vlgmr.msra.gmra.mxu1 %v4178_v32  ;;  %281 = vmatpush.bf16.msra.mxu2 %v2663_v31  ;;  %v51_v25 = vld [vmem:[#allocation4 + $0x8] sm:$0xff]  ;;  %v2842_v27 = vor.u32 %v3747_v24, %v2841_v23  ;;  %v2843_v29 = vld [vmem:[#allocation7 + $0x78] sm:$0xf0]  ;;  %v2817_v34 = vld [vmem:[#allocation7 + $0x40] sm:$0xf]  ;;  %s4179_s0 = smov [#allocation9]  }
  0x30   :  { %295 = vmatmul.bf16.vlgmr.msra.gmra.mxu3 %v4178_v32  ;;  %570 = vmatpush.bf16.msrb.mxu0 %v2898_v36  ;;  %v2846_v31 = vor.u32 %v3745_v28, %v2843_v29  ;;  %v3742_v35 = vld [vmem:[#allocation7 + $0x4c] sm:$0xf0]  ;;  %v3740_v36 = vld [vmem:[#allocation7 + $0x44] sm:$0xf]  ;;  %v2819_v39 = vld [vmem:[#allocation7 + $0x50] sm:$0xf0] }
  0x31   :  { %583 = vmatpush.bf16.msrb.mxu1 %v2902_v40  ;;  %609 = vmatpush.bf16.msrb.mxu3 %v2910_v44  ;;  %v2818_v38 = vor.u32 %v3742_v35, %v2817_v34  ;;  %v2825_v40 = vld [vmem:[#allocation7 + $0x48] sm:$0xf]  ;;  %v53_v43 = vld [vmem:[#allocation4 + $0x18] sm:$0xff]  ;;  %v2822_v44 = vor.u32 %v3740_v36, %v2819_v39  ;;  %v3741_v46 = vld [vmem:[#allocation7 + $0x4c] sm:$0xf]  ;;  %s2636_s1 = sshll.u32 %s4179_s0, 4  ;;  %s2637_s1 = int_to_ptr.vmem [resolvable:$true] %s2636_s1 }
  0x32   :  { %282 = vmatmul.bf16.vlgmr.msra.gmra.mxu2 %v4178_v32  ;;  %v2827_v47 = vld [vmem:[#allocation7 + $0x58] sm:$0xf0]  ;;  %v2801_v50 = vld [vmem:[#allocation7 + $0x20] sm:$0xf]  ;;  %v3738_v51 = vld [vmem:[#allocation7 + $0x2c] sm:$0xf0] }
  0x33   :  { %596 = vmatpush.bf16.msrb.mxu2 %v2906_v41  ;;  %v3743_v41 = vld [vmem:[#allocation7 + $0x54] sm:$0xf0]  ;;  %v2830_v49 = vor.u32 %v3741_v46, %v2827_v47  ;;  %v2803_v54 = vld [vmem:[#allocation7 + $0x30] sm:$0xf0]  ;;  %v2809_v55 = vld [vmem:[#allocation7 + $0x28] sm:$0xf] }
  0x34   :  { %571 = vmatpush.bf16.msrb.mxu0 %v2882_v48  ;;  %v2826_v45 = vor.u32 %v3743_v41, %v2825_v40  ;;  %v3739_v57 = vld [vmem:[#allocation7 + $0x34] sm:$0xf0]  ;;  %v3737_v58 = vld [vmem:[#allocation7 + $0x2c] sm:$0xf]  ;;  %v2811_v59 = vld [vmem:[#allocation7 + $0x38] sm:$0xf0] }
  0x35   :  { %584 = vmatpush.bf16.msrb.mxu1 %v2886_v52  ;;  %610 = vmatpush.bf16.msrb.mxu3 %v2894_v56  ;;  %v2802_v52 = vor.u32 %v3738_v51, %v2801_v50  ;;  %v2810_v61 = vor.u32 %v3739_v57, %v2809_v55  ;;  %v2814_v62 = vor.u32 %v3737_v58, %v2811_v59  ;;  %v3734_v0 = vld [vmem:[#allocation7 + $0xc] sm:$0xf0]  ;;  %v3732_v1 = vld [vmem:[#allocation7 + $0x4] sm:$0xf]  ;;  %v2787_v5 = vld [vmem:[#allocation7 + $0x10] sm:$0xf0] }
  0x36   :  { %v2793_v6 = vld [vmem:[#allocation7 + $0x8] sm:$0xf]  ;;  %v3735_v7 = vld [vmem:[#allocation7 + $0x14] sm:$0xf0]  ;;  %v2790_v9 = vor.u32 %v3732_v1, %v2787_v5  ;;  %v3733_v10 = vld [vmem:[#allocation7 + $0xc] sm:$0xf] }
  0x37   :  { %597 = vmatpush.bf16.msrb.mxu2 %v2890_v53  ;;  %v3736_v53 = vld [vmem:[#allocation7 + $0x24] sm:$0xf]  ;;  %v2795_v11 = vld [vmem:[#allocation7 + $0x18] sm:$0xf0]  ;;  %v52_v20 = vld [vmem:[#allocation4 + $0x10] sm:$0xff]  ;;  %s2638_s25 = sshll.u32 %s4236_s2, 4  ;;  %s2639_s25 = int_to_ptr.hbm [resolvable:$true] %s2638_s25 }
  0x38   :  { %572 = vmatpush.bf16.msrb.mxu0 %v2866_v60  ;;  %v2806_v56 = vor.u32 %v3736_v53, %v2803_v54  ;;  %v2798_v14 = vor.u32 %v3733_v10, %v2795_v11  ;;  %v3792_v1 = vld [vmem:[#allocation7 + $0xe4] sm:$0xf]  ;;  %v3795_v5 = vld [vmem:[#allocation7 + $0xf4] sm:$0xf0]  ;;  %v3012_v11 = vld [vmem:[#allocation7 + $0xc0] sm:$0xf] }
  0x39   :  { %585 = vmatpush.bf16.msrb.mxu1 %v2870_v63  ;;  %611 = vmatpush.bf16.msrb.mxu3 %v2878_v4  ;;  %v2785_v63 = vld [vmem:[#allocation7] sm:$0xf]  ;;  %s4180_s26 = smov 128   ;;  %s4181_s27 = smov 8  }
  0x3a   :  { %v2786_v4 = vor.u32 %v3734_v0, %v2785_v63  ;;  %v3028_v63 = vld [vmem:[#allocation7 + $0xe0] sm:$0xf]  ;;  %v3794_v0 = vld [vmem:[#allocation7 + $0xec] sm:$0xf0] }
  0x3b   :  { %598 = vmatpush.bf16.msrb.mxu2 %v2874_v3 }
  0x3c   :  { %573 = vmatpush.bf16.msrb.mxu0 %v2850_v8 }
  0x3d   :  { %586 = vmatpush.bf16.msrb.mxu1 %v2854_v12  ;;  %612 = vmatpush.bf16.msrb.mxu3 %v2862_v17 }
  0x3f   :  { %599 = vmatpush.bf16.msrb.mxu2 %v2858_v13  ;;  %v2794_v13 = vor.u32 %v3735_v7, %v2793_v6 }
  0x40   :  { %574 = vmatpush.bf16.msrb.mxu0 %v2834_v21 }
  0x41   :  { %587 = vmatpush.bf16.msrb.mxu1 %v2838_v26  ;;  %613 = vmatpush.bf16.msrb.mxu3 %v2846_v31 }
  0x43   :  { %600 = vmatpush.bf16.msrb.mxu2 %v2842_v27 }
  0x44   :  { %575 = vmatpush.bf16.msrb.mxu0 %v2818_v38 }
  0x45   :  { %588 = vmatpush.bf16.msrb.mxu1 %v2822_v44  ;;  %614 = vmatpush.bf16.msrb.mxu3 %v2830_v49 }
  0x47   :  { %601 = vmatpush.bf16.msrb.mxu2 %v2826_v45 }
  0x48   :  { %576 = vmatpush.bf16.msrb.mxu0 %v2802_v52 }
  0x49   :  { %589 = vmatpush.bf16.msrb.mxu1 %v2806_v56  ;;  %615 = vmatpush.bf16.msrb.mxu3 %v2814_v62 }
  0x4b   :  { %602 = vmatpush.bf16.msrb.mxu2 %v2810_v61 }
  0x4c   :  { %577 = vmatpush.bf16.msrb.mxu0 %v2786_v4  ;;  %v3036_v4 = vld [vmem:[#allocation7 + $0xe8] sm:$0xf] }
  0x4d   :  { %590 = vmatpush.bf16.msrb.mxu1 %v2790_v9  ;;  %616 = vmatpush.bf16.msrb.mxu3 %v2798_v14  ;;  %v3037_v7 = vor.u32 %v3795_v5, %v3036_v4  ;;  %v3038_v9 = vld [vmem:[#allocation7 + $0xf8] sm:$0xf0]  ;;  %v3772_v4 = vld [vmem:[#allocation7 + $0x44] sm:$0xf] }
  0x4f   :  { %603 = vmatpush.bf16.msrb.mxu2 %v2794_v13  ;;  %v3788_v13 = vld [vmem:[#allocation7 + $0xc4] sm:$0xf] }
  0x53   :  { %919 = vmatpush.bf16.msra.mxu2 %v3037_v7  ;;  %v2956_v7 = vld [vmem:[#allocation7 + $0x48] sm:$0xf] }
  0xab   :  { %v257_v30 = vpop.f32.mrf.mxu0 }
  0xac   :  { %v300_v32 = vadd.f32 %v257_v30, %v50_v16  ;;  %v270_v33 = vpop.f32.mrf.mxu1 }
  0xad   :  { %v301_v37 = vadd.f32 %v270_v33, %v51_v25 }
  0xae   :  { %v2780_v42 = vmul.f32 -1.442695, %v300_v32 }
  0xaf   :  { %v2781_v48 = vmul.f32 -1.442695, %v301_v37 }
  0xb0   :  { %3966 = vpow2.f32 %v2780_v42 }
  0xb1   :  { %3968 = vpow2.f32 %v2781_v48 }
  0xb3   :  { %v296_v60 = vpop.f32.mrf.mxu3  ;;  %v259_v3 = vpop.f32.mrf.mxu0 }
  0xb4   :  { %v303_v2 = vadd.f32 %v296_v60, %v53_v43  ;;  %v272_v8 = vpop.f32.mrf.mxu1  ;;  %v3030_v3 = vld [vmem:[#allocation7 + $0xf0] sm:$0xf0] }
  0xb5   :  { %v283_v16 = vpop.f32.mrf.mxu2  ;;  %v3033_v6 = vor.u32 %v3792_v1, %v3030_v3  ;;  %v3793_v8 = vld [vmem:[#allocation7 + $0xec] sm:$0xf]  ;;  %v3774_v3 = vld [vmem:[#allocation7 + $0x4c] sm:$0xf0] }
  0xb6   :  { %v2782_v12 = vmul.f32 -1.442695, %v303_v2  ;;  %v3967_v15 = vpop.eup %3966  ;;  %v302_v23 = vadd.f32 %v283_v16, %v52_v20  ;;  %v3029_v2 = vor.u32 %v3794_v0, %v3028_v63  ;;  %v3041_v10 = vor.u32 %v3793_v8, %v3038_v9  ;;  %v3020_v16 = vld [vmem:[#allocation7 + $0xc8] sm:$0xf]  ;;  %v3789_v20 = vld [vmem:[#allocation7 + $0xcc] sm:$0xf] }
  0xb7   :  { %v3969_v17 = vpop.eup %3968  ;;  %v307_v18 = vadd.f32 1.0, %v3967_v15  ;;  %906 = vmatpush.bf16.msra.mxu1 %v3033_v6  ;;  %v3014_v15 = vld [vmem:[#allocation7 + $0xd0] sm:$0xf0]  ;;  %v3775_v8 = vld [vmem:[#allocation7 + $0x54] sm:$0xf0] }
  0xb8   :  { %3970 = vpow2.f32 %v2782_v12  ;;  %v326_v19 = vadd.f32 1.0, %v3969_v17  ;;  %893 = vmatpush.bf16.msra.mxu0 %v3029_v2  ;;  %v3790_v12 = vld [vmem:[#allocation7 + $0xcc] sm:$0xf0]  ;;  %932 = vmatpush.bf16.msra.mxu3 %v3041_v10  ;;  %v3791_v17 = vld [vmem:[#allocation7 + $0xd4] sm:$0xf0] }
  0xb9   :  { %3972 = vrcp.f32 %v307_v18  ;;  %v319_v32 = vand.u32 2147483648, %v307_v18  ;;  %v317_v35 = vand.u32 2147483647, %v307_v18  ;;  %vm313_vm2 = vweird.f32 %v307_v18  ;;  %v2948_v2 = vld [vmem:[#allocation7 + $0x40] sm:$0xf] }
  0xba   :  { %3974 = vrcp.f32 %v326_v19  ;;  %v338_v33 = vand.u32 2147483648, %v326_v19  ;;  %v336_v37 = vand.u32 2147483647, %v326_v19  ;;  %vm332_vm3 = vweird.f32 %v326_v19  ;;  %v2950_v6 = vld [vmem:[#allocation7 + $0x50] sm:$0xf0] }
  0xbb   :  { %v298_v21 = vpop.f32.mrf.mxu3  ;;  %v320_v42 = vor.u32 1.1754944e-38, %v319_v32  ;;  %vm318_vm5 = vcmp.eq.f32.partialorder %v317_v35, 8.507059e+37  ;;  %v3013_v14 = vor.u32 %v3790_v12, %v3012_v11  ;;  %v3785_v32 = vld [vmem:[#allocation7 + $0xac] sm:$0xf]  ;;  %v2980_v35 = vld [vmem:[#allocation7 + $0x80] sm:$0xf]  ;;  %v2949_v5 = vor.u32 %v3774_v3, %v2948_v2 }
  0xbc   :  { %v339_v44 = vor.u32 1.1754944e-38, %v338_v33  ;;  %vm337_vm7 = vcmp.eq.f32.partialorder %v336_v37, 8.507059e+37  ;;  %v3022_v21 = vld [vmem:[#allocation7 + $0xd8] sm:$0xf0]  ;;  %v3780_v37 = vld [vmem:[#allocation7 + $0x84] sm:$0xf]  ;;  %v2953_v12 = vor.u32 %v3772_v4, %v2950_v6 }
  0xbd   :  { %v285_v25 = vpop.f32.mrf.mxu2  ;;  %894 = vmatpush.bf16.msra.mxu0 %v3013_v14  ;;  %v3006_v33 = vld [vmem:[#allocation7 + $0xb8] sm:$0xf0]  ;;  %v3773_v14 = vld [vmem:[#allocation7 + $0x4c] sm:$0xf] }
  0xbe   :  { %v3971_v22 = vpop.eup %3970  ;;  %v3784_v25 = vld [vmem:[#allocation7 + $0xa4] sm:$0xf]  ;;  %v375_v11 = vld [vmem:[#allocation4 + $0x38] sm:$0xff] }
  0xbf   :  { %v346_v24 = vadd.f32 1.0, %v3971_v22  ;;  %v3973_v26 = vpop.eup %3972  ;;  %v3025_v22 = vor.u32 %v3789_v20, %v3022_v21  ;;  %v3768_v20 = vld [vmem:[#allocation7 + $0x24] sm:$0xf]  ;;  %v2934_v21 = vld [vmem:[#allocation7 + $0x30] sm:$0xf0] }
  0xc0   :  { %v3975_v27 = vpop.eup %3974  ;;  %v309_v28 = vmul.f32 %v3973_v26, %v307_v18  ;;  %vm314_vm0 = vweird.f32 %v3973_v26  ;;  %v3017_v18 = vor.u32 %v3788_v13, %v3014_v15  ;;  %v2957_v13 = vor.u32 %v3775_v8, %v2956_v7  ;;  %v2958_v15 = vld [vmem:[#allocation7 + $0x58] sm:$0xf0] }
  0xc1   :  { %3976 = vrcp.f32 %v346_v24  ;;  %v328_v29 = vmul.f32 %v3975_v27, %v326_v19  ;;  %vm333_vm1 = vweird.f32 %v3975_v27  ;;  %vm315_vm4 = vmor %vm313_vm2, %vm314_vm0  ;;  %v358_v55 = vand.u32 2147483648, %v346_v24  ;;  %933 = vmatpush.bf16.msra.mxu3 %v3025_v22  ;;  %v2940_v22 = vld [vmem:[#allocation7 + $0x28] sm:$0xf] }
  0xc2   :  { %3978 = vtanh.f32 %v302_v23  ;;  %v310_v30 = vsub.f32 1.0, %v309_v28  ;;  %vm334_vm6 = vmor %vm332_vm3, %vm333_vm1  ;;  %vm352_vm9 = vweird.f32 %v346_v24  ;;  %v356_v56 = vand.u32 2147483647, %v346_v24  ;;  %907 = vmatpush.bf16.msra.mxu1 %v3017_v18  ;;  %v2996_v23 = vld [vmem:[#allocation7 + $0xa0] sm:$0xf] }
  0xc3   :  { %v329_v31 = vsub.f32 1.0, %v328_v29  ;;  %v359_v58 = vor.u32 1.1754944e-38, %v358_v55  ;;  %v3021_v19 = vor.u32 %v3791_v17, %v3020_v16  ;;  %v3004_v28 = vld [vmem:[#allocation7 + $0xa8] sm:$0xf]  ;;  %v3787_v29 = vld [vmem:[#allocation7 + $0xb4] sm:$0xf0]  ;;  %v2961_v18 = vor.u32 %v3773_v14, %v2958_v15 }
  0xc4   :  { %v311_v34 = vmul.f32 %v3973_v26, %v310_v30  ;;  %vm357_vm11 = vcmp.eq.f32.partialorder %v356_v56, 8.507059e+37  ;;  %v2972_v55 = vld [vmem:[#allocation7 + $0x68] sm:$0xf]  ;;  %v3779_v56 = vld [vmem:[#allocation7 + $0x74] sm:$0xf0] }
  0xc5   :  { %v330_v36 = vmul.f32 %v3975_v27, %v329_v31  ;;  %920 = vmatpush.bf16.msra.mxu2 %v3021_v19  ;;  %v3005_v31 = vor.u32 %v3787_v29, %v3004_v28  ;;  %v2932_v16 = vld [vmem:[#allocation7 + $0x20] sm:$0xf]  ;;  %v3770_v17 = vld [vmem:[#allocation7 + $0x2c] sm:$0xf0] }
  0xc6   :  { %v312_v39 = vadd.f32 %v3973_v26, %v311_v34  ;;  %v3009_v34 = vor.u32 %v3785_v32, %v3006_v33  ;;  %v2933_v19 = vor.u32 %v3770_v17, %v2932_v16  ;;  %v3766_v32 = vld [vmem:[#allocation7 + $0xc] sm:$0xf0]  ;;  %v3764_v33 = vld [vmem:[#allocation7 + $0x4] sm:$0xf] }
  0xc7   :  { %v3977_v38 = vpop.eup %3976  ;;  %v331_v43 = vadd.f32 %v3975_v27, %v330_v36  ;;  %v3782_v36 = vld [vmem:[#allocation7 + $0x8c] sm:$0xf0] }
  0xc8   :  { %v3979_v40 = vpop.eup %3978  ;;  %v348_v41 = vmul.f32 %v3977_v38, %v346_v24  ;;  %v316_v45 = vsel %vm315_vm4, %v3973_v26, %v312_v39  ;;  %vm353_vm8 = vweird.f32 %v3977_v38  ;;  %v3786_v24 = vld [vmem:[#allocation7 + $0xac] sm:$0xf0]  ;;  %934 = vmatpush.bf16.msra.mxu3 %v3009_v34  ;;  %v2982_v39 = vld [vmem:[#allocation7 + $0x90] sm:$0xf0] }
  0xc9   :  { %v321_v47 = vsel %vm318_vm5, %v320_v42, %v316_v45  ;;  %v335_v48 = vsel %vm334_vm6, %v3975_v27, %v331_v43  ;;  %vm354_vm10 = vmor %vm352_vm9, %vm353_vm8  ;;  %v2997_v26 = vor.u32 %v3786_v24, %v2996_v23  ;;  %v2998_v27 = vld [vmem:[#allocation7 + $0xb0] sm:$0xf0]  ;;  %921 = vmatpush.bf16.msra.mxu2 %v3005_v31  ;;  %v2985_v42 = vor.u32 %v3780_v37, %v2982_v39  ;;  %v2990_v45 = vld [vmem:[#allocation7 + $0x98] sm:$0xf0] }
  0xca   :  { %v349_v46 = vsub.f32 1.0, %v348_v41  ;;  %v340_v49 = vsel %vm337_vm7, %v339_v44, %v335_v48  ;;  %v364_v50 = vmul.f32 %v3979_v40, %v321_v47  ;;  %v3001_v30 = vor.u32 %v3784_v25, %v2998_v27  ;;  %v2988_v40 = vld [vmem:[#allocation7 + $0x88] sm:$0xf]  ;;  %v3783_v41 = vld [vmem:[#allocation7 + $0x94] sm:$0xf0] }
  0xcb   :  { %v363_v52 = vmul.f32 0.0, %v340_v49  ;;  %895 = vmatpush.bf16.msra.mxu0 %v2997_v26  ;;  %v2989_v43 = vor.u32 %v3783_v41, %v2988_v40  ;;  %v3781_v44 = vld [vmem:[#allocation7 + $0x8c] sm:$0xf]  ;;  %v2964_v49 = vld [vmem:[#allocation7 + $0x60] sm:$0xf]  ;;  %v2937_v23 = vor.u32 %v3768_v20, %v2934_v21 }
  0xcc   :  { %v350_v51 = vmul.f32 %v3977_v38, %v349_v46  ;;  %908 = vmatpush.bf16.msra.mxu1 %v3001_v30  ;;  %v372_v46 = vld [vmem:[#allocation4 + $0x20] sm:$0xff]  ;;  %v373_v47 = vld [vmem:[#allocation4 + $0x28] sm:$0xff]  ;;  %v2993_v48 = vor.u32 %v3781_v44, %v2990_v45  ;;  %v3771_v24 = vld [vmem:[#allocation7 + $0x34] sm:$0xf0] }
  0xcd   :  { %v4203_v53 = vadd.f32 %v364_v50, %v363_v52  ;;  %922 = vmatpush.bf16.msra.mxu2 %v2989_v43  ;;  %v3778_v50 = vld [vmem:[#allocation7 + $0x6c] sm:$0xf0]  ;;  %v3769_v25 = vld [vmem:[#allocation7 + $0x2c] sm:$0xf]  ;;  %v2942_v26 = vld [vmem:[#allocation7 + $0x38] sm:$0xf0]  ;;  %v2941_v29 = vor.u32 %v3771_v24, %v2940_v22 }
  0xce   :  { %v351_v54 = vadd.f32 %v3977_v38, %v350_v51  ;;  %v3776_v51 = vld [vmem:[#allocation7 + $0x64] sm:$0xf]  ;;  %935 = vmatpush.bf16.msra.mxu3 %v2993_v48  ;;  %v2965_v52 = vor.u32 %v3778_v50, %v2964_v49  ;;  %v2945_v30 = vor.u32 %v3769_v25, %v2942_v26  ;;  %v2916_v31 = vld [vmem:[#allocation7] sm:$0xf]  ;;  %v2924_v39 = vld [vmem:[#allocation7 + $0x8] sm:$0xf] }
  0xcf   :  { %3980 = vtanh.f32 %v4203_v53  ;;  %v2917_v37 = vor.u32 %v3766_v32, %v2916_v31  ;;  %v3767_v40 = vld [vmem:[#allocation7 + $0x14] sm:$0xf0]  ;;  %v3765_v43 = vld [vmem:[#allocation7 + $0xc] sm:$0xf]  ;;  %v2926_v44 = vld [vmem:[#allocation7 + $0x18] sm:$0xf0] }
  0xd0   :  { %v355_v57 = vsel %vm354_vm10, %v3977_v38, %v351_v54  ;;  %v2981_v38 = vor.u32 %v3782_v36, %v2980_v35  ;;  %909 = vmatpush.bf16.msra.mxu1 %v2985_v42  ;;  %v2966_v54 = vld [vmem:[#allocation7 + $0x70] sm:$0xf0]  ;;  %v2925_v42 = vor.u32 %v3767_v40, %v2924_v39  ;;  %v3826_v31 = vld [vmem:[#allocation7 + $0xec] sm:$0xf0]  ;;  %v3824_v32 = vld [vmem:[#allocation7 + $0xe4] sm:$0xf] }
  0xd1   :  { %v360_v60 = vsel %vm357_vm11, %v359_v58, %v355_v57  ;;  %v2969_v57 = vor.u32 %v3776_v51, %v2966_v54  ;;  %v2973_v58 = vor.u32 %v3779_v56, %v2972_v55  ;;  %v374_v54 = vld [vmem:[#allocation4 + $0x30] sm:$0xff]  ;;  %v3825_v39 = vld [vmem:[#allocation7 + $0xec] sm:$0xf]  ;;  %v3169_v40 = vld [vmem:[#allocation7 + $0xf8] sm:$0xf0] }
  0xd2   :  { %896 = vmatpush.bf16.msra.mxu0 %v2981_v38  ;;  %v2918_v38 = vld [vmem:[#allocation7 + $0x10] sm:$0xf0] }
  0xd3   :  { %923 = vmatpush.bf16.msra.mxu2 %v2973_v58  ;;  %v2921_v41 = vor.u32 %v3764_v33, %v2918_v38 }
  0xd4   :  { %910 = vmatpush.bf16.msra.mxu1 %v2969_v57 }
  0xd5   :  { %v3981_v59 = vpop.eup %3980 }
  0xd6   :  { %v367_v61 = vmul.f32 %v3981_v59, %v360_v60  ;;  %v3777_v59 = vld [vmem:[#allocation7 + $0x6c] sm:$0xf]  ;;  %v2974_v60 = vld [vmem:[#allocation7 + $0x78] sm:$0xf0]  ;;  %897 = vmatpush.bf16.msra.mxu0 %v2965_v52 }
  0xd7   :  { %v2977_v63 = vor.u32 %v3777_v59, %v2974_v60  ;;  %924 = vmatpush.bf16.msra.mxu2 %v2957_v13 }
  0xd8   :  { %370 = vst [vmem:[#allocation9] sm:$0xff] %v367_v61  ;;  %v377_v62 = vpack.c.bf16 %v367_v61, %v367_v61  ;;  %911 = vmatpush.bf16.msra.mxu1 %v2953_v12 }
  0xd9   :  { %936 = vmatpush.bf16.msra.mxu3 %v2977_v63 }
  0xda   :  { %578 = vmatmul.bf16.vlgmr.msrb.gmra.mxu0 %v377_v62  ;;  %591 = vmatmul.bf16.vlgmr.msrb.gmra.mxu1 %v377_v62 }
  0xdb   :  { %604 = vmatmul.bf16.vlgmr.msrb.gmra.mxu2 %v377_v62  ;;  %617 = vmatmul.bf16.vlgmr.msrb.gmra.mxu3 %v377_v62 }
  0xdc   :  { %898 = vmatpush.bf16.msra.mxu0 %v2949_v5  ;;  %912 = vmatpush.bf16.msra.mxu1 %v2937_v23 }
  0xdd   :  { %937 = vmatpush.bf16.msra.mxu3 %v2961_v18  ;;  %925 = vmatpush.bf16.msra.mxu2 %v2941_v29 }
  0xe0   :  { %899 = vmatpush.bf16.msra.mxu0 %v2933_v19  ;;  %913 = vmatpush.bf16.msra.mxu1 %v2921_v41  ;;  %v3172_v41 = vor.u32 %v3825_v39, %v3169_v40  ;;  %v3807_v39 = vld [vmem:[#allocation7 + $0x54] sm:$0xf0] }
  0xe1   :  { %938 = vmatpush.bf16.msra.mxu3 %v2945_v30  ;;  %926 = vmatpush.bf16.msra.mxu2 %v2925_v42  ;;  %v3143_v42 = vld [vmem:[#allocation7 + $0xc0] sm:$0xf] }
  0xe4   :  { %900 = vmatpush.bf16.msra.mxu0 %v2917_v37 }
 0x157   :  { %v579_v61 = vpop.f32.mrf.mxu0  ;;  %v592_v62 = vpop.f32.mrf.mxu1 }
 0x158   :  { %v622_v0 = vadd.f32 %v579_v61, %v372_v46  ;;  %v623_v1 = vadd.f32 %v592_v62, %v373_v47  ;;  %v2929_v47 = vor.u32 %v3765_v43, %v2926_v44  ;;  %v3822_v43 = vld [vmem:[#allocation7 + $0xcc] sm:$0xf0]  ;;  %v3820_v44 = vld [vmem:[#allocation7 + $0xc4] sm:$0xf] }
 0x15a   :  { %v2911_v9 = vmul.f32 -1.442695, %v622_v0  ;;  %v2912_v10 = vmul.f32 -1.442695, %v623_v1  ;;  %939 = vmatpush.bf16.msra.mxu3 %v2929_v47  ;;  %v3151_v47 = vld [vmem:[#allocation7 + $0xc8] sm:$0xf] }
 0x15c   :  { %3982 = vpow2.f32 %v2911_v9 }
 0x15d   :  { %3984 = vpow2.f32 %v2912_v10 }
 0x15e   :  { %v605_v27 = vpop.f32.mrf.mxu2  ;;  %v618_v28 = vpop.f32.mrf.mxu3  ;;  %1255 = vmatpush.bf16.msrb.mxu3 %v3172_v41 }
 0x15f   :  { %v625_v34 = vadd.f32 %v618_v28, %v375_v11  ;;  %v581_v35 = vpop.f32.mrf.mxu0  ;;  %v594_v36 = vpop.f32.mrf.mxu1  ;;  %v624_v58 = vadd.f32 %v605_v27, %v374_v54 }
 0x160   :  { %v3167_v35 = vld [vmem:[#allocation7 + $0xe8] sm:$0xf]  ;;  %v3827_v36 = vld [vmem:[#allocation7 + $0xf4] sm:$0xf0] }
 0x161   :  { %v2913_v45 = vmul.f32 -1.442695, %v625_v34  ;;  %v3161_v34 = vld [vmem:[#allocation7 + $0xf0] sm:$0xf0]  ;;  %v3168_v38 = vor.u32 %v3827_v36, %v3167_v35  ;;  %v3804_v35 = vld [vmem:[#allocation7 + $0x44] sm:$0xf] }
 0x162   :  { %v3983_v46 = vpop.eup %3982  ;;  %v3164_v37 = vor.u32 %v3824_v32, %v3161_v34  ;;  %v3806_v34 = vld [vmem:[#allocation7 + $0x4c] sm:$0xf0] }
 0x163   :  { %v3985_v48 = vpop.eup %3984  ;;  %v629_v49 = vadd.f32 1.0, %v3983_v46  ;;  %3986 = vpow2.f32 %v2913_v45  ;;  %1242 = vmatpush.bf16.msrb.mxu2 %v3168_v38  ;;  %v3144_v45 = vor.u32 %v3822_v43, %v3143_v42  ;;  %v3145_v46 = vld [vmem:[#allocation7 + $0xd0] sm:$0xf0]  ;;  %v3087_v38 = vld [vmem:[#allocation7 + $0x48] sm:$0xf]  ;;  %v698_v42 = vld [vmem:[#allocation4 + $0x58] sm:$0xff] }
 0x164   :  { %v648_v50 = vadd.f32 1.0, %v3985_v48  ;;  %1229 = vmatpush.bf16.msrb.mxu1 %v3164_v37  ;;  %v3823_v48 = vld [vmem:[#allocation7 + $0xd4] sm:$0xf0]  ;;  %v3081_v37 = vld [vmem:[#allocation7 + $0x50] sm:$0xf0] }
 0x165   :  { %3988 = vrcp.f32 %v629_v49  ;;  %v641_v0 = vand.u32 2147483648, %v629_v49  ;;  %v639_v3 = vand.u32 2147483647, %v629_v49  ;;  %vm635_vm14 = vweird.f32 %v629_v49 }
 0x166   :  { %3990 = vrcp.f32 %v648_v50  ;;  %v607_v51 = vpop.f32.mrf.mxu2  ;;  %v620_v52 = vpop.f32.mrf.mxu3  ;;  %v660_v1 = vand.u32 2147483648, %v648_v50  ;;  %v658_v5 = vand.u32 2147483647, %v648_v50  ;;  %vm654_vm15 = vweird.f32 %v648_v50 }
 0x167   :  { %v642_v8 = vor.u32 1.1754944e-38, %v641_v0  ;;  %vm640_vm2 = vcmp.eq.f32.partialorder %v639_v3, 8.507059e+37  ;;  %v3821_v51 = vld [vmem:[#allocation7 + $0xcc] sm:$0xf]  ;;  %v3153_v52 = vld [vmem:[#allocation7 + $0xd8] sm:$0xf0]  ;;  %v3084_v43 = vor.u32 %v3804_v35, %v3081_v37 }
 0x168   :  { %v661_v11 = vor.u32 1.1754944e-38, %v660_v1  ;;  %vm659_vm3 = vcmp.eq.f32.partialorder %v658_v5, 8.507059e+37  ;;  %v3156_v54 = vor.u32 %v3821_v51, %v3153_v52  ;;  %v3817_v0 = vld [vmem:[#allocation7 + $0xac] sm:$0xf]  ;;  %v3137_v1 = vld [vmem:[#allocation7 + $0xb8] sm:$0xf0] }
 0x169   :  { %v3987_v55 = vpop.eup %3986  ;;  %v3111_v3 = vld [vmem:[#allocation7 + $0x80] sm:$0xf]  ;;  %v3812_v5 = vld [vmem:[#allocation7 + $0x84] sm:$0xf]  ;;  %v3065_v52 = vld [vmem:[#allocation7 + $0x30] sm:$0xf0] }
 0x16a   :  { %v668_v56 = vadd.f32 1.0, %v3987_v55  ;;  %v3127_v55 = vld [vmem:[#allocation7 + $0xa0] sm:$0xf]  ;;  %1256 = vmatpush.bf16.msrb.mxu3 %v3156_v54  ;;  %v3800_v51 = vld [vmem:[#allocation7 + $0x24] sm:$0xf] }
 0x16b   :  { %v3989_v57 = vpop.eup %3988  ;;  %v3071_v54 = vld [vmem:[#allocation7 + $0x28] sm:$0xf] }
 0x16c   :  { %v3991_v59 = vpop.eup %3990  ;;  %v631_v60 = vmul.f32 %v3989_v57, %v629_v49  ;;  %3992 = vrcp.f32 %v668_v56  ;;  %vm636_vm12 = vweird.f32 %v3989_v57  ;;  %v680_v23 = vand.u32 2147483648, %v668_v56 }
 0x16d   :  { %v650_v61 = vmul.f32 %v3991_v59, %v648_v50  ;;  %3994 = vtanh.f32 %v624_v58  ;;  %vm655_vm13 = vweird.f32 %v3991_v59  ;;  %vm637_vm0 = vmor %vm635_vm14, %vm636_vm12  ;;  %vm674_vm5 = vweird.f32 %v668_v56 }
 0x16e   :  { %v632_v62 = vsub.f32 1.0, %v631_v60  ;;  %vm656_vm1 = vmor %vm654_vm15, %vm655_vm13  ;;  %v678_v24 = vand.u32 2147483647, %v668_v56  ;;  %v681_v26 = vor.u32 1.1754944e-38, %v680_v23  ;;  %v3148_v49 = vor.u32 %v3820_v44, %v3145_v46  ;;  %v3135_v60 = vld [vmem:[#allocation7 + $0xa8] sm:$0xf] }
 0x16f   :  { %v651_v63 = vsub.f32 1.0, %v650_v61  ;;  %v3152_v50 = vor.u32 %v3823_v48, %v3151_v47  ;;  %v3819_v61 = vld [vmem:[#allocation7 + $0xb4] sm:$0xf0]  ;;  %v3103_v23 = vld [vmem:[#allocation7 + $0x68] sm:$0xf]  ;;  %v3088_v44 = vor.u32 %v3807_v39, %v3087_v38 }
 0x170   :  { %v633_v2 = vmul.f32 %v3989_v57, %v632_v62  ;;  %vm679_vm7 = vcmp.eq.f32.partialorder %v678_v24, 8.507059e+37  ;;  %1230 = vmatpush.bf16.msrb.mxu1 %v3148_v49  ;;  %v3811_v24 = vld [vmem:[#allocation7 + $0x74] sm:$0xf0]  ;;  %v3089_v46 = vld [vmem:[#allocation7 + $0x58] sm:$0xf0] }
 0x171   :  { %v652_v4 = vmul.f32 %v3991_v59, %v651_v63  ;;  %1243 = vmatpush.bf16.msrb.mxu2 %v3152_v50  ;;  %v3136_v63 = vor.u32 %v3819_v61, %v3135_v60  ;;  %v3063_v47 = vld [vmem:[#allocation7 + $0x20] sm:$0xf]  ;;  %v3802_v48 = vld [vmem:[#allocation7 + $0x2c] sm:$0xf0] }
 0x172   :  { %v3993_v6 = vpop.eup %3992  ;;  %v634_v7 = vadd.f32 %v3989_v57, %v633_v2  ;;  %v3140_v2 = vor.u32 %v3817_v0, %v3137_v1  ;;  %v3064_v50 = vor.u32 %v3802_v48, %v3063_v47  ;;  %v3798_v0 = vld [vmem:[#allocation7 + $0xc] sm:$0xf0]  ;;  %v3796_v1 = vld [vmem:[#allocation7 + $0x4] sm:$0xf] }
 0x173   :  { %v653_v9 = vadd.f32 %v3991_v59, %v652_v4  ;;  %v670_v10 = vmul.f32 %v3993_v6, %v668_v56  ;;  %v3995_v13 = vpop.eup %3994  ;;  %vm675_vm4 = vweird.f32 %v3993_v6  ;;  %v3818_v56 = vld [vmem:[#allocation7 + $0xac] sm:$0xf0] }
 0x174   :  { %v638_v12 = vsel %vm637_vm0, %v3989_v57, %v634_v7  ;;  %vm676_vm6 = vmor %vm674_vm5, %vm675_vm4  ;;  %v3816_v57 = vld [vmem:[#allocation7 + $0xa4] sm:$0xf]  ;;  %v3128_v58 = vor.u32 %v3818_v56, %v3127_v55  ;;  %v3814_v4 = vld [vmem:[#allocation7 + $0x8c] sm:$0xf0]  ;;  %1257 = vmatpush.bf16.msrb.mxu3 %v3140_v2  ;;  %v3068_v55 = vor.u32 %v3800_v51, %v3065_v52 }
 0x175   :  { %v643_v14 = vsel %vm640_vm2, %v642_v8, %v638_v12  ;;  %v657_v15 = vsel %vm656_vm1, %v3991_v59, %v653_v9  ;;  %v671_v16 = vsub.f32 1.0, %v670_v10  ;;  %v3129_v59 = vld [vmem:[#allocation7 + $0xb0] sm:$0xf0]  ;;  %1244 = vmatpush.bf16.msrb.mxu2 %v3136_v63  ;;  %v3119_v8 = vld [vmem:[#allocation7 + $0x88] sm:$0xf] }
 0x176   :  { %v662_v17 = vsel %vm659_vm3, %v661_v11, %v657_v15  ;;  %v686_v18 = vmul.f32 %v3995_v13, %v643_v14  ;;  %v3132_v62 = vor.u32 %v3816_v57, %v3129_v59  ;;  %v3113_v7 = vld [vmem:[#allocation7 + $0x90] sm:$0xf0]  ;;  %v3815_v9 = vld [vmem:[#allocation7 + $0x94] sm:$0xf0]  ;;  %v3813_v12 = vld [vmem:[#allocation7 + $0x8c] sm:$0xf] }
 0x177   :  { %v685_v19 = vmul.f32 %v662_v17, %v4203_v53  ;;  %v672_v20 = vmul.f32 %v3993_v6, %v671_v16  ;;  %v3159_v53 = vld [vmem:[#allocation7 + $0xe0] sm:$0xf]  ;;  %v3116_v10 = vor.u32 %v3812_v5, %v3113_v7  ;;  %v3120_v11 = vor.u32 %v3815_v9, %v3119_v8  ;;  %v3121_v13 = vld [vmem:[#allocation7 + $0x98] sm:$0xf0]  ;;  %v696_v15 = vld [vmem:[#allocation4 + $0x48] sm:$0xff] }
 0x178   :  { %v3160_v33 = vor.u32 %v3826_v31, %v3159_v53  ;;  %1231 = vmatpush.bf16.msrb.mxu1 %v3132_v62  ;;  %v695_v14 = vld [vmem:[#allocation4 + $0x40] sm:$0xff]  ;;  %v3124_v16 = vor.u32 %v3813_v12, %v3121_v13  ;;  %v3803_v56 = vld [vmem:[#allocation7 + $0x34] sm:$0xf0]  ;;  %v3801_v57 = vld [vmem:[#allocation7 + $0x2c] sm:$0xf] }
 0x179   :  { %v4207_v21 = vadd.f32 %v686_v18, %v685_v19  ;;  %v673_v22 = vadd.f32 %v3993_v6, %v672_v20  ;;  %1245 = vmatpush.bf16.msrb.mxu2 %v3120_v11  ;;  %v3095_v17 = vld [vmem:[#allocation7 + $0x60] sm:$0xf]  ;;  %v3810_v18 = vld [vmem:[#allocation7 + $0x6c] sm:$0xf0]  ;;  %v3808_v19 = vld [vmem:[#allocation7 + $0x64] sm:$0xf]  ;;  %v3072_v61 = vor.u32 %v3803_v56, %v3071_v54 }
 0x17a   :  { %1216 = vmatpush.bf16.msrb.mxu0 %v3160_v33  ;;  %1258 = vmatpush.bf16.msrb.mxu3 %v3124_v16  ;;  %v3096_v20 = vor.u32 %v3810_v18, %v3095_v17  ;;  %v3079_v33 = vld [vmem:[#allocation7 + $0x40] sm:$0xf]  ;;  %v3055_v7 = vld [vmem:[#allocation7 + $0x8] sm:$0xf]  ;;  %v3799_v8 = vld [vmem:[#allocation7 + $0x14] sm:$0xf0] }
 0x17b   :  { %3996 = vtanh.f32 %v4207_v21  ;;  %v677_v25 = vsel %vm676_vm6, %v3993_v6, %v673_v22  ;;  %v3112_v6 = vor.u32 %v3814_v4, %v3111_v3  ;;  %v3097_v22 = vld [vmem:[#allocation7 + $0x70] sm:$0xf0]  ;;  %v3080_v36 = vor.u32 %v3806_v34, %v3079_v33  ;;  %v3047_v63 = vld [vmem:[#allocation7] sm:$0xf]  ;;  %v3797_v11 = vld [vmem:[#allocation7 + $0xc] sm:$0xf] }
 0x17c   :  { %v682_v28 = vsel %vm679_vm7, %v681_v26, %v677_v25  ;;  %1232 = vmatpush.bf16.msrb.mxu1 %v3116_v10  ;;  %v3100_v25 = vor.u32 %v3808_v19, %v3097_v22  ;;  %v3104_v26 = vor.u32 %v3811_v24, %v3103_v23  ;;  %v3048_v5 = vor.u32 %v3798_v0, %v3047_v63  ;;  %v3057_v12 = vld [vmem:[#allocation7 + $0x18] sm:$0xf0]  ;;  %v697_v22 = vld [vmem:[#allocation4 + $0x50] sm:$0xff]  ;;  %v3856_v0 = vld [vmem:[#allocation7 + $0xe4] sm:$0xf] }
 0x17d   :  { %v3056_v10 = vor.u32 %v3799_v8, %v3055_v7  ;;  %v3858_v63 = vld [vmem:[#allocation7 + $0xec] sm:$0xf0]  ;;  %v3857_v7 = vld [vmem:[#allocation7 + $0xec] sm:$0xf]  ;;  %v3300_v8 = vld [vmem:[#allocation7 + $0xf8] sm:$0xf0] }
 0x17e   :  { %1217 = vmatpush.bf16.msrb.mxu0 %v3144_v45  ;;  %1246 = vmatpush.bf16.msrb.mxu2 %v3104_v26  ;;  %v3805_v45 = vld [vmem:[#allocation7 + $0x4c] sm:$0xf] }
 0x17f   :  { %v3092_v49 = vor.u32 %v3805_v45, %v3089_v46 }
 0x180   :  { %1233 = vmatpush.bf16.msrb.mxu1 %v3100_v25 }
 0x181   :  { %v3997_v27 = vpop.eup %3996 }
 0x182   :  { %v689_v29 = vmul.f32 %v3997_v27, %v682_v28  ;;  %1218 = vmatpush.bf16.msrb.mxu0 %v3128_v58  ;;  %v3809_v27 = vld [vmem:[#allocation7 + $0x6c] sm:$0xf]  ;;  %v3105_v28 = vld [vmem:[#allocation7 + $0x78] sm:$0xf0]  ;;  %1247 = vmatpush.bf16.msrb.mxu2 %v3088_v44 }
 0x183   :  { %v3108_v53 = vor.u32 %v3809_v27, %v3105_v28  ;;  %v3073_v58 = vld [vmem:[#allocation7 + $0x38] sm:$0xf0] }
 0x184   :  { %693 = vst [vmem:[#allocation9 + $0x8] sm:$0xff] %v689_v29  ;;  %v700_v30 = vpack.c.bf16 %v689_v29, %v689_v29  ;;  %1234 = vmatpush.bf16.msrb.mxu1 %v3084_v43  ;;  %v3076_v62 = vor.u32 %v3801_v57, %v3073_v58 }
 0x185   :  { %1259 = vmatpush.bf16.msrb.mxu3 %v3108_v53 }
 0x186   :  { %901 = vmatmul.bf16.vlgmr.msra.gmra.mxu0 %v700_v30  ;;  %914 = vmatmul.bf16.vlgmr.msra.gmra.mxu1 %v700_v30 }
 0x187   :  { %927 = vmatmul.bf16.vlgmr.msra.gmra.mxu2 %v700_v30  ;;  %940 = vmatmul.bf16.vlgmr.msra.gmra.mxu3 %v700_v30 }
 0x188   :  { %1219 = vmatpush.bf16.msrb.mxu0 %v3112_v6  ;;  %v3049_v6 = vld [vmem:[#allocation7 + $0x10] sm:$0xf0]  ;;  %1235 = vmatpush.bf16.msrb.mxu1 %v3068_v55 }
 0x189   :  { %1260 = vmatpush.bf16.msrb.mxu3 %v3092_v49  ;;  %1248 = vmatpush.bf16.msrb.mxu2 %v3072_v61  ;;  %v3052_v9 = vor.u32 %v3796_v1, %v3049_v6 }
 0x18c   :  { %1220 = vmatpush.bf16.msrb.mxu0 %v3096_v20  ;;  %1236 = vmatpush.bf16.msrb.mxu1 %v3052_v9  ;;  %v3303_v9 = vor.u32 %v3857_v7, %v3300_v8  ;;  %v3839_v7 = vld [vmem:[#allocation7 + $0x54] sm:$0xf0] }
 0x18d   :  { %1261 = vmatpush.bf16.msrb.mxu3 %v3076_v62  ;;  %1249 = vmatpush.bf16.msrb.mxu2 %v3056_v10  ;;  %v3274_v10 = vld [vmem:[#allocation7 + $0xc0] sm:$0xf] }
 0x190   :  { %1221 = vmatpush.bf16.msrb.mxu0 %v3080_v36 }
 0x194   :  { %1222 = vmatpush.bf16.msrb.mxu0 %v3064_v50 }
 0x198   :  { %1223 = vmatpush.bf16.msrb.mxu0 %v3048_v5 }
 0x203   :  { %v902_v29 = vpop.f32.mrf.mxu0  ;;  %v915_v30 = vpop.f32.mrf.mxu1 }
 0x204   :  { %v945_v31 = vadd.f32 %v902_v29, %v695_v14  ;;  %v946_v32 = vadd.f32 %v915_v30, %v696_v15  ;;  %v3060_v15 = vor.u32 %v3797_v11, %v3057_v12  ;;  %v3854_v11 = vld [vmem:[#allocation7 + $0xcc] sm:$0xf0]  ;;  %v3852_v12 = vld [vmem:[#allocation7 + $0xc4] sm:$0xf] }
 0x206   :  { %v3042_v40 = vmul.f32 -1.442695, %v945_v31  ;;  %v3043_v41 = vmul.f32 -1.442695, %v946_v32  ;;  %1262 = vmatpush.bf16.msrb.mxu3 %v3060_v15  ;;  %v3282_v15 = vld [vmem:[#allocation7 + $0xc8] sm:$0xf] }
 0x208   :  { %3998 = vpow2.f32 %v3042_v40 }
 0x209   :  { %4000 = vpow2.f32 %v3043_v41 }
 0x20a   :  { %v928_v59 = vpop.f32.mrf.mxu2  ;;  %v941_v60 = vpop.f32.mrf.mxu3  ;;  %1578 = vmatpush.bf16.msra.mxu3 %v3303_v9 }
 0x20b   :  { %v948_v2 = vadd.f32 %v941_v60, %v698_v42  ;;  %v904_v3 = vpop.f32.mrf.mxu0  ;;  %v917_v4 = vpop.f32.mrf.mxu1  ;;  %v947_v26 = vadd.f32 %v928_v59, %v697_v22 }
 0x20c   :  { %v3298_v3 = vld [vmem:[#allocation7 + $0xe8] sm:$0xf]  ;;  %v3859_v4 = vld [vmem:[#allocation7 + $0xf4] sm:$0xf0] }
 0x20d   :  { %v3044_v13 = vmul.f32 -1.442695, %v948_v2  ;;  %v3292_v2 = vld [vmem:[#allocation7 + $0xf0] sm:$0xf0]  ;;  %v3299_v6 = vor.u32 %v3859_v4, %v3298_v3  ;;  %v3836_v3 = vld [vmem:[#allocation7 + $0x44] sm:$0xf] }
 0x20e   :  { %v3999_v14 = vpop.eup %3998  ;;  %v3295_v5 = vor.u32 %v3856_v0, %v3292_v2  ;;  %v3838_v2 = vld [vmem:[#allocation7 + $0x4c] sm:$0xf0] }
 0x20f   :  { %v4001_v16 = vpop.eup %4000  ;;  %v952_v17 = vadd.f32 1.0, %v3999_v14  ;;  %4002 = vpow2.f32 %v3044_v13  ;;  %1565 = vmatpush.bf16.msra.mxu2 %v3299_v6  ;;  %v3275_v13 = vor.u32 %v3854_v11, %v3274_v10  ;;  %v3276_v14 = vld [vmem:[#allocation7 + $0xd0] sm:$0xf0]  ;;  %v3218_v6 = vld [vmem:[#allocation7 + $0x48] sm:$0xf]  ;;  %v1021_v10 = vld [vmem:[#allocation4 + $0x78] sm:$0xff] }
 0x210   :  { %v971_v18 = vadd.f32 1.0, %v4001_v16  ;;  %1552 = vmatpush.bf16.msra.mxu1 %v3295_v5  ;;  %v3855_v16 = vld [vmem:[#allocation7 + $0xd4] sm:$0xf0]  ;;  %v3212_v5 = vld [vmem:[#allocation7 + $0x50] sm:$0xf0] }
 0x211   :  { %4004 = vrcp.f32 %v952_v17  ;;  %v964_v31 = vand.u32 2147483648, %v952_v17  ;;  %v962_v34 = vand.u32 2147483647, %v952_v17  ;;  %vm958_vm10 = vweird.f32 %v952_v17 }
 0x212   :  { %4006 = vrcp.f32 %v971_v18  ;;  %v930_v19 = vpop.f32.mrf.mxu2  ;;  %v943_v20 = vpop.f32.mrf.mxu3  ;;  %v983_v32 = vand.u32 2147483648, %v971_v18  ;;  %v981_v36 = vand.u32 2147483647, %v971_v18  ;;  %vm977_vm11 = vweird.f32 %v971_v18 }
 0x213   :  { %v965_v39 = vor.u32 1.1754944e-38, %v964_v31  ;;  %vm963_vm14 = vcmp.eq.f32.partialorder %v962_v34, 8.507059e+37  ;;  %v3853_v19 = vld [vmem:[#allocation7 + $0xcc] sm:$0xf]  ;;  %v3284_v20 = vld [vmem:[#allocation7 + $0xd8] sm:$0xf0]  ;;  %v3215_v11 = vor.u32 %v3836_v3, %v3212_v5 }
 0x214   :  { %v984_v42 = vor.u32 1.1754944e-38, %v983_v32  ;;  %vm982_vm15 = vcmp.eq.f32.partialorder %v981_v36, 8.507059e+37  ;;  %v3287_v22 = vor.u32 %v3853_v19, %v3284_v20  ;;  %v3849_v31 = vld [vmem:[#allocation7 + $0xac] sm:$0xf]  ;;  %v3268_v32 = vld [vmem:[#allocation7 + $0xb8] sm:$0xf0] }
 0x215   :  { %v4003_v23 = vpop.eup %4002  ;;  %v3242_v34 = vld [vmem:[#allocation7 + $0x80] sm:$0xf]  ;;  %v3844_v36 = vld [vmem:[#allocation7 + $0x84] sm:$0xf]  ;;  %v3196_v20 = vld [vmem:[#allocation7 + $0x30] sm:$0xf0] }
 0x216   :  { %v991_v24 = vadd.f32 1.0, %v4003_v23  ;;  %v3258_v23 = vld [vmem:[#allocation7 + $0xa0] sm:$0xf]  ;;  %1579 = vmatpush.bf16.msra.mxu3 %v3287_v22  ;;  %v3832_v19 = vld [vmem:[#allocation7 + $0x24] sm:$0xf] }
 0x217   :  { %v4005_v25 = vpop.eup %4004  ;;  %v3202_v22 = vld [vmem:[#allocation7 + $0x28] sm:$0xf] }
 0x218   :  { %v4007_v27 = vpop.eup %4006  ;;  %v954_v28 = vmul.f32 %v4005_v25, %v952_v17  ;;  %4008 = vrcp.f32 %v991_v24  ;;  %vm959_vm8 = vweird.f32 %v4005_v25  ;;  %v1003_v55 = vand.u32 2147483648, %v991_v24 }
 0x219   :  { %v973_v29 = vmul.f32 %v4007_v27, %v971_v18  ;;  %4010 = vtanh.f32 %v947_v26  ;;  %vm978_vm9 = vweird.f32 %v4007_v27  ;;  %vm960_vm12 = vmor %vm958_vm10, %vm959_vm8  ;;  %vm997_vm1 = vweird.f32 %v991_v24 }
 0x21a   :  { %v955_v30 = vsub.f32 1.0, %v954_v28  ;;  %vm979_vm13 = vmor %vm977_vm11, %vm978_vm9  ;;  %v1001_v56 = vand.u32 2147483647, %v991_v24  ;;  %v1004_v58 = vor.u32 1.1754944e-38, %v1003_v55  ;;  %v3279_v17 = vor.u32 %v3852_v12, %v3276_v14  ;;  %v3266_v28 = vld [vmem:[#allocation7 + $0xa8] sm:$0xf] }
 0x21b   :  { %v974_v53 = vsub.f32 1.0, %v973_v29  ;;  %v3283_v18 = vor.u32 %v3855_v16, %v3282_v15  ;;  %v3851_v29 = vld [vmem:[#allocation7 + $0xb4] sm:$0xf0]  ;;  %v3234_v55 = vld [vmem:[#allocation7 + $0x68] sm:$0xf]  ;;  %v3219_v12 = vor.u32 %v3839_v7, %v3218_v6 }
 0x21c   :  { %v956_v33 = vmul.f32 %v4005_v25, %v955_v30  ;;  %vm1002_vm3 = vcmp.eq.f32.partialorder %v1001_v56, 8.507059e+37  ;;  %1553 = vmatpush.bf16.msra.mxu1 %v3279_v17  ;;  %v3843_v56 = vld [vmem:[#allocation7 + $0x74] sm:$0xf0]  ;;  %v3220_v14 = vld [vmem:[#allocation7 + $0x58] sm:$0xf0] }
 0x21d   :  { %v975_v35 = vmul.f32 %v4007_v27, %v974_v53  ;;  %1566 = vmatpush.bf16.msra.mxu2 %v3283_v18  ;;  %v3267_v53 = vor.u32 %v3851_v29, %v3266_v28  ;;  %v3194_v15 = vld [vmem:[#allocation7 + $0x20] sm:$0xf]  ;;  %v3834_v16 = vld [vmem:[#allocation7 + $0x2c] sm:$0xf0] }
 0x21e   :  { %v4009_v37 = vpop.eup %4008  ;;  %v957_v38 = vadd.f32 %v4005_v25, %v956_v33  ;;  %v3271_v33 = vor.u32 %v3849_v31, %v3268_v32  ;;  %v3195_v18 = vor.u32 %v3834_v16, %v3194_v15  ;;  %v3830_v31 = vld [vmem:[#allocation7 + $0xc] sm:$0xf0]  ;;  %v3828_v32 = vld [vmem:[#allocation7 + $0x4] sm:$0xf] }
 0x21f   :  { %v976_v40 = vadd.f32 %v4007_v27, %v975_v35  ;;  %v993_v41 = vmul.f32 %v4009_v37, %v991_v24  ;;  %v4011_v44 = vpop.eup %4010  ;;  %vm998_vm0 = vweird.f32 %v4009_v37  ;;  %v3850_v24 = vld [vmem:[#allocation7 + $0xac] sm:$0xf0] }
 0x220   :  { %v961_v43 = vsel %vm960_vm12, %v4005_v25, %v957_v38  ;;  %vm999_vm2 = vmor %vm997_vm1, %vm998_vm0  ;;  %v3848_v25 = vld [vmem:[#allocation7 + $0xa4] sm:$0xf]  ;;  %v3259_v26 = vor.u32 %v3850_v24, %v3258_v23  ;;  %v3846_v35 = vld [vmem:[#allocation7 + $0x8c] sm:$0xf0]  ;;  %1580 = vmatpush.bf16.msra.mxu3 %v3271_v33  ;;  %v3199_v23 = vor.u32 %v3832_v19, %v3196_v20 }
 0x221   :  { %v966_v45 = vsel %vm963_vm14, %v965_v39, %v961_v43  ;;  %v980_v46 = vsel %vm979_vm13, %v4007_v27, %v976_v40  ;;  %v994_v47 = vsub.f32 1.0, %v993_v41  ;;  %v3260_v27 = vld [vmem:[#allocation7 + $0xb0] sm:$0xf0]  ;;  %1567 = vmatpush.bf16.msra.mxu2 %v3267_v53  ;;  %v3250_v39 = vld [vmem:[#allocation7 + $0x88] sm:$0xf] }
 0x222   :  { %v985_v48 = vsel %vm982_vm15, %v984_v42, %v980_v46  ;;  %v1009_v49 = vmul.f32 %v4011_v44, %v966_v45  ;;  %v3263_v30 = vor.u32 %v3848_v25, %v3260_v27  ;;  %v3244_v38 = vld [vmem:[#allocation7 + $0x90] sm:$0xf0]  ;;  %v3847_v40 = vld [vmem:[#allocation7 + $0x94] sm:$0xf0]  ;;  %v3845_v43 = vld [vmem:[#allocation7 + $0x8c] sm:$0xf] }
 0x223   :  { %v1008_v50 = vmul.f32 %v985_v48, %v4207_v21  ;;  %v995_v51 = vmul.f32 %v4009_v37, %v994_v47  ;;  %v3290_v21 = vld [vmem:[#allocation7 + $0xe0] sm:$0xf]  ;;  %v3247_v41 = vor.u32 %v3844_v36, %v3244_v38  ;;  %v3251_v42 = vor.u32 %v3847_v40, %v3250_v39  ;;  %v3252_v44 = vld [vmem:[#allocation7 + $0x98] sm:$0xf0]  ;;  %v1019_v46 = vld [vmem:[#allocation4 + $0x68] sm:$0xff] }
 0x224   :  { %v3291_v1 = vor.u32 %v3858_v63, %v3290_v21  ;;  %1554 = vmatpush.bf16.msra.mxu1 %v3263_v30  ;;  %v1018_v45 = vld [vmem:[#allocation4 + $0x60] sm:$0xff]  ;;  %v3255_v47 = vor.u32 %v3845_v43, %v3252_v44  ;;  %v3835_v24 = vld [vmem:[#allocation7 + $0x34] sm:$0xf0]  ;;  %v3833_v25 = vld [vmem:[#allocation7 + $0x2c] sm:$0xf] }
 0x225   :  { %v4211_v52 = vadd.f32 %v1009_v49, %v1008_v50  ;;  %v996_v54 = vadd.f32 %v4009_v37, %v995_v51  ;;  %1568 = vmatpush.bf16.msra.mxu2 %v3251_v42  ;;  %v3226_v48 = vld [vmem:[#allocation7 + $0x60] sm:$0xf]  ;;  %v3842_v49 = vld [vmem:[#allocation7 + $0x6c] sm:$0xf0]  ;;  %v3840_v50 = vld [vmem:[#allocation7 + $0x64] sm:$0xf]  ;;  %v3203_v29 = vor.u32 %v3835_v24, %v3202_v22 }
 0x226   :  { %1539 = vmatpush.bf16.msra.mxu0 %v3291_v1  ;;  %1581 = vmatpush.bf16.msra.mxu3 %v3255_v47  ;;  %v3227_v51 = vor.u32 %v3842_v49, %v3226_v48  ;;  %v3210_v1 = vld [vmem:[#allocation7 + $0x40] sm:$0xf]  ;;  %v3186_v38 = vld [vmem:[#allocation7 + $0x8] sm:$0xf]  ;;  %v3831_v39 = vld [vmem:[#allocation7 + $0x14] sm:$0xf0] }
 0x227   :  { %4012 = vtanh.f32 %v4211_v52  ;;  %v1000_v57 = vsel %vm999_vm2, %v4009_v37, %v996_v54  ;;  %v3243_v37 = vor.u32 %v3846_v35, %v3242_v34  ;;  %v3228_v54 = vld [vmem:[#allocation7 + $0x70] sm:$0xf0]  ;;  %v3211_v4 = vor.u32 %v3838_v2, %v3210_v1  ;;  %v3178_v53 = vld [vmem:[#allocation7] sm:$0xf]  ;;  %v3829_v42 = vld [vmem:[#allocation7 + $0xc] sm:$0xf] }
 0x228   :  { %v1005_v60 = vsel %vm1002_vm3, %v1004_v58, %v1000_v57  ;;  %1555 = vmatpush.bf16.msra.mxu1 %v3247_v41  ;;  %v3231_v57 = vor.u32 %v3840_v50, %v3228_v54  ;;  %v3235_v58 = vor.u32 %v3843_v56, %v3234_v55  ;;  %v3179_v36 = vor.u32 %v3830_v31, %v3178_v53  ;;  %v3188_v43 = vld [vmem:[#allocation7 + $0x18] sm:$0xf0]  ;;  %v1020_v54 = vld [vmem:[#allocation4 + $0x70] sm:$0xff]  ;;  %v3888_v31 = vld [vmem:[#allocation7 + $0xe4] sm:$0xf] }
 0x229   :  { %v3187_v41 = vor.u32 %v3831_v39, %v3186_v38  ;;  %v3890_v53 = vld [vmem:[#allocation7 + $0xec] sm:$0xf0]  ;;  %v3889_v38 = vld [vmem:[#allocation7 + $0xec] sm:$0xf]  ;;  %v3431_v39 = vld [vmem:[#allocation7 + $0xf8] sm:$0xf0] }
 0x22a   :  { %1540 = vmatpush.bf16.msra.mxu0 %v3275_v13  ;;  %1569 = vmatpush.bf16.msra.mxu2 %v3235_v58  ;;  %v3837_v13 = vld [vmem:[#allocation7 + $0x4c] sm:$0xf] }
 0x22b   :  { %v3223_v17 = vor.u32 %v3837_v13, %v3220_v14 }
 0x22c   :  { %1556 = vmatpush.bf16.msra.mxu1 %v3231_v57 }
 0x22d   :  { %v4013_v59 = vpop.eup %4012 }
 0x22e   :  { %v1012_v61 = vmul.f32 %v4013_v59, %v1005_v60  ;;  %1541 = vmatpush.bf16.msra.mxu0 %v3259_v26  ;;  %v3841_v59 = vld [vmem:[#allocation7 + $0x6c] sm:$0xf]  ;;  %v3236_v60 = vld [vmem:[#allocation7 + $0x78] sm:$0xf0]  ;;  %1570 = vmatpush.bf16.msra.mxu2 %v3219_v12 }
 0x22f   :  { %v3239_v21 = vor.u32 %v3841_v59, %v3236_v60  ;;  %v3204_v26 = vld [vmem:[#allocation7 + $0x38] sm:$0xf0] }
 0x230   :  { %1016 = vst [vmem:[#allocation9 + $0x10] sm:$0xff] %v1012_v61  ;;  %v1023_v62 = vpack.c.bf16 %v1012_v61, %v1012_v61  ;;  %1557 = vmatpush.bf16.msra.mxu1 %v3215_v11  ;;  %v3207_v30 = vor.u32 %v3833_v25, %v3204_v26 }
 0x231   :  { %1582 = vmatpush.bf16.msra.mxu3 %v3239_v21 }
 0x232   :  { %1224 = vmatmul.bf16.vlgmr.msrb.gmra.mxu0 %v1023_v62  ;;  %1237 = vmatmul.bf16.vlgmr.msrb.gmra.mxu1 %v1023_v62 }
 0x233   :  { %1250 = vmatmul.bf16.vlgmr.msrb.gmra.mxu2 %v1023_v62  ;;  %1263 = vmatmul.bf16.vlgmr.msrb.gmra.mxu3 %v1023_v62 }
 0x234   :  { %1542 = vmatpush.bf16.msra.mxu0 %v3243_v37  ;;  %v3180_v37 = vld [vmem:[#allocation7 + $0x10] sm:$0xf0]  ;;  %1558 = vmatpush.bf16.msra.mxu1 %v3199_v23 }
 0x235   :  { %1583 = vmatpush.bf16.msra.mxu3 %v3223_v17  ;;  %1571 = vmatpush.bf16.msra.mxu2 %v3203_v29  ;;  %v3183_v40 = vor.u32 %v3828_v32, %v3180_v37 }
 0x238   :  { %1543 = vmatpush.bf16.msra.mxu0 %v3227_v51  ;;  %1559 = vmatpush.bf16.msra.mxu1 %v3183_v40  ;;  %v3434_v40 = vor.u32 %v3889_v38, %v3431_v39  ;;  %v3871_v38 = vld [vmem:[#allocation7 + $0x54] sm:$0xf0] }
 0x239   :  { %1584 = vmatpush.bf16.msra.mxu3 %v3207_v30  ;;  %1572 = vmatpush.bf16.msra.mxu2 %v3187_v41  ;;  %v3405_v41 = vld [vmem:[#allocation7 + $0xc0] sm:$0xf] }
 0x23c   :  { %1544 = vmatpush.bf16.msra.mxu0 %v3211_v4 }
 0x240   :  { %1545 = vmatpush.bf16.msra.mxu0 %v3195_v18 }
 0x244   :  { %1546 = vmatpush.bf16.msra.mxu0 %v3179_v36 }
 0x2af   :  { %v1225_v61 = vpop.f32.mrf.mxu0  ;;  %v1238_v62 = vpop.f32.mrf.mxu1 }
 0x2b0   :  { %v1268_v63 = vadd.f32 %v1225_v61, %v1018_v45  ;;  %v1269_v0 = vadd.f32 %v1238_v62, %v1019_v46  ;;  %v3191_v46 = vor.u32 %v3829_v42, %v3188_v43  ;;  %v3886_v42 = vld [vmem:[#allocation7 + $0xcc] sm:$0xf0]  ;;  %v3884_v43 = vld [vmem:[#allocation7 + $0xc4] sm:$0xf] }
 0x2b2   :  { %v3173_v8 = vmul.f32 -1.442695, %v1268_v63  ;;  %v3174_v9 = vmul.f32 -1.442695, %v1269_v0  ;;  %1585 = vmatpush.bf16.msra.mxu3 %v3191_v46  ;;  %v3413_v46 = vld [vmem:[#allocation7 + $0xc8] sm:$0xf] }
 0x2b4   :  { %4014 = vpow2.f32 %v3173_v8 }
 0x2b5   :  { %4016 = vpow2.f32 %v3174_v9 }
 0x2b6   :  { %v1251_v27 = vpop.f32.mrf.mxu2  ;;  %v1264_v28 = vpop.f32.mrf.mxu3  ;;  %1901 = vmatpush.bf16.msrb.mxu3 %v3434_v40 }
 0x2b7   :  { %v1271_v33 = vadd.f32 %v1264_v28, %v1021_v10  ;;  %v1227_v34 = vpop.f32.mrf.mxu0  ;;  %v1240_v35 = vpop.f32.mrf.mxu1  ;;  %v1270_v58 = vadd.f32 %v1251_v27, %v1020_v54 }
 0x2b8   :  { %v3429_v34 = vld [vmem:[#allocation7 + $0xe8] sm:$0xf]  ;;  %v3891_v35 = vld [vmem:[#allocation7 + $0xf4] sm:$0xf0] }
 0x2b9   :  { %v3175_v44 = vmul.f32 -1.442695, %v1271_v33  ;;  %v3423_v33 = vld [vmem:[#allocation7 + $0xf0] sm:$0xf0]  ;;  %v3430_v37 = vor.u32 %v3891_v35, %v3429_v34  ;;  %v3868_v34 = vld [vmem:[#allocation7 + $0x44] sm:$0xf] }
 0x2ba   :  { %v4015_v45 = vpop.eup %4014  ;;  %v3426_v36 = vor.u32 %v3888_v31, %v3423_v33  ;;  %v3870_v33 = vld [vmem:[#allocation7 + $0x4c] sm:$0xf0] }
 0x2bb   :  { %v4017_v47 = vpop.eup %4016  ;;  %v1275_v48 = vadd.f32 1.0, %v4015_v45  ;;  %4018 = vpow2.f32 %v3175_v44  ;;  %1888 = vmatpush.bf16.msrb.mxu2 %v3430_v37  ;;  %v3406_v44 = vor.u32 %v3886_v42, %v3405_v41  ;;  %v3407_v45 = vld [vmem:[#allocation7 + $0xd0] sm:$0xf0]  ;;  %v3349_v37 = vld [vmem:[#allocation7 + $0x48] sm:$0xf]  ;;  %v1344_v41 = vld [vmem:[#allocation4 + $0x98] sm:$0xff] }
 0x2bc   :  { %v1294_v49 = vadd.f32 1.0, %v4017_v47  ;;  %1875 = vmatpush.bf16.msrb.mxu1 %v3426_v36  ;;  %v3887_v47 = vld [vmem:[#allocation7 + $0xd4] sm:$0xf0]  ;;  %v3343_v36 = vld [vmem:[#allocation7 + $0x50] sm:$0xf0] }
 0x2bd   :  { %4020 = vrcp.f32 %v1275_v48  ;;  %v1287_v63 = vand.u32 2147483648, %v1275_v48  ;;  %v1285_v2 = vand.u32 2147483647, %v1275_v48  ;;  %vm1281_vm6 = vweird.f32 %v1275_v48 }
 0x2be   :  { %4022 = vrcp.f32 %v1294_v49  ;;  %v1253_v50 = vpop.f32.mrf.mxu2  ;;  %v1266_v51 = vpop.f32.mrf.mxu3  ;;  %v1306_v0 = vand.u32 2147483648, %v1294_v49  ;;  %v1304_v4 = vand.u32 2147483647, %v1294_v49  ;;  %vm1300_vm7 = vweird.f32 %v1294_v49 }
 0x2bf   :  { %v1288_v7 = vor.u32 1.1754944e-38, %v1287_v63  ;;  %vm1286_vm10 = vcmp.eq.f32.partialorder %v1285_v2, 8.507059e+37  ;;  %v3885_v50 = vld [vmem:[#allocation7 + $0xcc] sm:$0xf]  ;;  %v3415_v51 = vld [vmem:[#allocation7 + $0xd8] sm:$0xf0]  ;;  %v3346_v42 = vor.u32 %v3868_v34, %v3343_v36 }
 0x2c0   :  { %v1307_v10 = vor.u32 1.1754944e-38, %v1306_v0  ;;  %vm1305_vm11 = vcmp.eq.f32.partialorder %v1304_v4, 8.507059e+37  ;;  %v3418_v54 = vor.u32 %v3885_v50, %v3415_v51  ;;  %v3881_v63 = vld [vmem:[#allocation7 + $0xac] sm:$0xf]  ;;  %v3399_v0 = vld [vmem:[#allocation7 + $0xb8] sm:$0xf0] }
 0x2c1   :  { %v4019_v55 = vpop.eup %4018  ;;  %v3373_v2 = vld [vmem:[#allocation7 + $0x80] sm:$0xf]  ;;  %v3876_v4 = vld [vmem:[#allocation7 + $0x84] sm:$0xf]  ;;  %v3327_v51 = vld [vmem:[#allocation7 + $0x30] sm:$0xf0] }
 0x2c2   :  { %v1314_v56 = vadd.f32 1.0, %v4019_v55  ;;  %v3389_v55 = vld [vmem:[#allocation7 + $0xa0] sm:$0xf]  ;;  %1902 = vmatpush.bf16.msrb.mxu3 %v3418_v54  ;;  %v3864_v50 = vld [vmem:[#allocation7 + $0x24] sm:$0xf] }
 0x2c3   :  { %v4021_v57 = vpop.eup %4020  ;;  %v3333_v54 = vld [vmem:[#allocation7 + $0x28] sm:$0xf] }
 0x2c4   :  { %v4023_v59 = vpop.eup %4022  ;;  %v1277_v60 = vmul.f32 %v4021_v57, %v1275_v48  ;;  %4024 = vrcp.f32 %v1314_v56  ;;  %vm1282_vm4 = vweird.f32 %v4021_v57  ;;  %v1326_v23 = vand.u32 2147483648, %v1314_v56 }
 0x2c5   :  { %v1296_v61 = vmul.f32 %v4023_v59, %v1294_v49  ;;  %4026 = vtanh.f32 %v1270_v58  ;;  %vm1301_vm5 = vweird.f32 %v4023_v59  ;;  %vm1283_vm8 = vmor %vm1281_vm6, %vm1282_vm4  ;;  %vm1320_vm13 = vweird.f32 %v1314_v56 }
 0x2c6   :  { %v1278_v62 = vsub.f32 1.0, %v1277_v60  ;;  %vm1302_vm9 = vmor %vm1300_vm7, %vm1301_vm5  ;;  %v1324_v24 = vand.u32 2147483647, %v1314_v56  ;;  %v1327_v26 = vor.u32 1.1754944e-38, %v1326_v23  ;;  %v3410_v48 = vor.u32 %v3884_v43, %v3407_v45  ;;  %v3397_v60 = vld [vmem:[#allocation7 + $0xa8] sm:$0xf] }
 0x2c7   :  { %v1297_v21 = vsub.f32 1.0, %v1296_v61  ;;  %v3414_v49 = vor.u32 %v3887_v47, %v3413_v46  ;;  %v3883_v61 = vld [vmem:[#allocation7 + $0xb4] sm:$0xf0]  ;;  %v3365_v23 = vld [vmem:[#allocation7 + $0x68] sm:$0xf]  ;;  %v3350_v43 = vor.u32 %v3871_v38, %v3349_v37 }
 0x2c8   :  { %v1279_v1 = vmul.f32 %v4021_v57, %v1278_v62  ;;  %vm1325_vm15 = vcmp.eq.f32.partialorder %v1324_v24, 8.507059e+37  ;;  %1876 = vmatpush.bf16.msrb.mxu1 %v3410_v48  ;;  %v3875_v24 = vld [vmem:[#allocation7 + $0x74] sm:$0xf0]  ;;  %v3351_v45 = vld [vmem:[#allocation7 + $0x58] sm:$0xf0] }
 0x2c9   :  { %v1298_v3 = vmul.f32 %v4023_v59, %v1297_v21  ;;  %1889 = vmatpush.bf16.msrb.mxu2 %v3414_v49  ;;  %v3398_v21 = vor.u32 %v3883_v61, %v3397_v60  ;;  %v3325_v46 = vld [vmem:[#allocation7 + $0x20] sm:$0xf]  ;;  %v3866_v47 = vld [vmem:[#allocation7 + $0x2c] sm:$0xf0] }
 0x2ca   :  { %v4025_v5 = vpop.eup %4024  ;;  %v1280_v6 = vadd.f32 %v4021_v57, %v1279_v1  ;;  %v3402_v1 = vor.u32 %v3881_v63, %v3399_v0  ;;  %v3326_v49 = vor.u32 %v3866_v47, %v3325_v46  ;;  %v3862_v63 = vld [vmem:[#allocation7 + $0xc] sm:$0xf0]  ;;  %v3860_v0 = vld [vmem:[#allocation7 + $0x4] sm:$0xf] }
 0x2cb   :  { %v1299_v8 = vadd.f32 %v4023_v59, %v1298_v3  ;;  %v1316_v9 = vmul.f32 %v4025_v5, %v1314_v56  ;;  %v4027_v12 = vpop.eup %4026  ;;  %vm1321_vm12 = vweird.f32 %v4025_v5  ;;  %v3882_v56 = vld [vmem:[#allocation7 + $0xac] sm:$0xf0] }
 0x2cc   :  { %v1284_v11 = vsel %vm1283_vm8, %v4021_v57, %v1280_v6  ;;  %vm1322_vm14 = vmor %vm1320_vm13, %vm1321_vm12  ;;  %v3880_v57 = vld [vmem:[#allocation7 + $0xa4] sm:$0xf]  ;;  %v3390_v58 = vor.u32 %v3882_v56, %v3389_v55  ;;  %v3878_v3 = vld [vmem:[#allocation7 + $0x8c] sm:$0xf0]  ;;  %1903 = vmatpush.bf16.msrb.mxu3 %v3402_v1  ;;  %v3330_v55 = vor.u32 %v3864_v50, %v3327_v51 }
 0x2cd   :  { %v1289_v13 = vsel %vm1286_vm10, %v1288_v7, %v1284_v11  ;;  %v1303_v14 = vsel %vm1302_vm9, %v4023_v59, %v1299_v8  ;;  %v1317_v15 = vsub.f32 1.0, %v1316_v9  ;;  %v3391_v59 = vld [vmem:[#allocation7 + $0xb0] sm:$0xf0]  ;;  %1890 = vmatpush.bf16.msrb.mxu2 %v3398_v21  ;;  %v3381_v7 = vld [vmem:[#allocation7 + $0x88] sm:$0xf] }
 0x2ce   :  { %v1308_v16 = vsel %vm1305_vm11, %v1307_v10, %v1303_v14  ;;  %v1332_v17 = vmul.f32 %v4027_v12, %v1289_v13  ;;  %v3394_v62 = vor.u32 %v3880_v57, %v3391_v59  ;;  %v3375_v6 = vld [vmem:[#allocation7 + $0x90] sm:$0xf0]  ;;  %v3879_v8 = vld [vmem:[#allocation7 + $0x94] sm:$0xf0]  ;;  %v3877_v11 = vld [vmem:[#allocation7 + $0x8c] sm:$0xf] }
 0x2cf   :  { %v1331_v18 = vmul.f32 %v1308_v16, %v4211_v52  ;;  %v1318_v19 = vmul.f32 %v4025_v5, %v1317_v15  ;;  %v3421_v52 = vld [vmem:[#allocation7 + $0xe0] sm:$0xf]  ;;  %v3378_v9 = vor.u32 %v3876_v4, %v3375_v6  ;;  %v3382_v10 = vor.u32 %v3879_v8, %v3381_v7  ;;  %v3383_v12 = vld [vmem:[#allocation7 + $0x98] sm:$0xf0]  ;;  %v1342_v14 = vld [vmem:[#allocation4 + $0x88] sm:$0xff] }
 0x2d0   :  { %v3422_v32 = vor.u32 %v3890_v53, %v3421_v52  ;;  %1877 = vmatpush.bf16.msrb.mxu1 %v3394_v62  ;;  %v1341_v13 = vld [vmem:[#allocation4 + $0x80] sm:$0xff]  ;;  %v3386_v15 = vor.u32 %v3877_v11, %v3383_v12  ;;  %v3867_v56 = vld [vmem:[#allocation7 + $0x34] sm:$0xf0]  ;;  %v3865_v57 = vld [vmem:[#allocation7 + $0x2c] sm:$0xf] }
 0x2d1   :  { %v4215_v20 = vadd.f32 %v1332_v17, %v1331_v18  ;;  %v1319_v22 = vadd.f32 %v4025_v5, %v1318_v19  ;;  %1891 = vmatpush.bf16.msrb.mxu2 %v3382_v10  ;;  %v3357_v16 = vld [vmem:[#allocation7 + $0x60] sm:$0xf]  ;;  %v3874_v17 = vld [vmem:[#allocation7 + $0x6c] sm:$0xf0]  ;;  %v3872_v18 = vld [vmem:[#allocation7 + $0x64] sm:$0xf]  ;;  %v3334_v61 = vor.u32 %v3867_v56, %v3333_v54 }
 0x2d2   :  { %1862 = vmatpush.bf16.msrb.mxu0 %v3422_v32  ;;  %1904 = vmatpush.bf16.msrb.mxu3 %v3386_v15  ;;  %v3358_v19 = vor.u32 %v3874_v17, %v3357_v16  ;;  %v3341_v32 = vld [vmem:[#allocation7 + $0x40] sm:$0xf]  ;;  %v3317_v6 = vld [vmem:[#allocation7 + $0x8] sm:$0xf]  ;;  %v3863_v7 = vld [vmem:[#allocation7 + $0x14] sm:$0xf0] }
 0x2d3   :  { %4028 = vtanh.f32 %v4215_v20  ;;  %v1323_v25 = vsel %vm1322_vm14, %v4025_v5, %v1319_v22  ;;  %v3374_v5 = vor.u32 %v3878_v3, %v3373_v2  ;;  %v3359_v22 = vld [vmem:[#allocation7 + $0x70] sm:$0xf0]  ;;  %v3342_v35 = vor.u32 %v3870_v33, %v3341_v32  ;;  %v3309_v21 = vld [vmem:[#allocation7] sm:$0xf]  ;;  %v3861_v10 = vld [vmem:[#allocation7 + $0xc] sm:$0xf] }
 0x2d4   :  { %v1328_v28 = vsel %vm1325_vm15, %v1327_v26, %v1323_v25  ;;  %1878 = vmatpush.bf16.msrb.mxu1 %v3378_v9  ;;  %v3362_v25 = vor.u32 %v3872_v18, %v3359_v22  ;;  %v3366_v26 = vor.u32 %v3875_v24, %v3365_v23  ;;  %v3310_v4 = vor.u32 %v3862_v63, %v3309_v21  ;;  %v3319_v11 = vld [vmem:[#allocation7 + $0x18] sm:$0xf0]  ;;  %v1343_v22 = vld [vmem:[#allocation4 + $0x90] sm:$0xff]  ;;  %v3920_v63 = vld [vmem:[#allocation7 + $0xe4] sm:$0xf] }
 0x2d5   :  { %v3318_v9 = vor.u32 %v3863_v7, %v3317_v6  ;;  %v3922_v21 = vld [vmem:[#allocation7 + $0xec] sm:$0xf0]  ;;  %v3921_v6 = vld [vmem:[#allocation7 + $0xec] sm:$0xf]  ;;  %v3562_v7 = vld [vmem:[#allocation7 + $0xf8] sm:$0xf0] }
 0x2d6   :  { %1863 = vmatpush.bf16.msrb.mxu0 %v3406_v44  ;;  %1892 = vmatpush.bf16.msrb.mxu2 %v3366_v26  ;;  %v3869_v44 = vld [vmem:[#allocation7 + $0x4c] sm:$0xf] }
 0x2d7   :  { %v3354_v48 = vor.u32 %v3869_v44, %v3351_v45 }
 0x2d8   :  { %1879 = vmatpush.bf16.msrb.mxu1 %v3362_v25 }
 0x2d9   :  { %v4029_v27 = vpop.eup %4028 }
 0x2da   :  { %v1335_v29 = vmul.f32 %v4029_v27, %v1328_v28  ;;  %1864 = vmatpush.bf16.msrb.mxu0 %v3390_v58  ;;  %v3873_v27 = vld [vmem:[#allocation7 + $0x6c] sm:$0xf]  ;;  %v3367_v28 = vld [vmem:[#allocation7 + $0x78] sm:$0xf0]  ;;  %1893 = vmatpush.bf16.msrb.mxu2 %v3350_v43 }
 0x2db   :  { %v3370_v52 = vor.u32 %v3873_v27, %v3367_v28  ;;  %v3335_v58 = vld [vmem:[#allocation7 + $0x38] sm:$0xf0] }
 0x2dc   :  { %1339 = vst [vmem:[#allocation9 + $0x18] sm:$0xff] %v1335_v29  ;;  %v1346_v30 = vpack.c.bf16 %v1335_v29, %v1335_v29  ;;  %1880 = vmatpush.bf16.msrb.mxu1 %v3346_v42  ;;  %v3338_v62 = vor.u32 %v3865_v57, %v3335_v58 }
 0x2dd   :  { %1905 = vmatpush.bf16.msrb.mxu3 %v3370_v52 }
 0x2de   :  { %1547 = vmatmul.bf16.vlgmr.msra.gmra.mxu0 %v1346_v30  ;;  %1560 = vmatmul.bf16.vlgmr.msra.gmra.mxu1 %v1346_v30 }
 0x2df   :  { %1573 = vmatmul.bf16.vlgmr.msra.gmra.mxu2 %v1346_v30  ;;  %1586 = vmatmul.bf16.vlgmr.msra.gmra.mxu3 %v1346_v30 }
 0x2e0   :  { %1865 = vmatpush.bf16.msrb.mxu0 %v3374_v5  ;;  %v3311_v5 = vld [vmem:[#allocation7 + $0x10] sm:$0xf0]  ;;  %1881 = vmatpush.bf16.msrb.mxu1 %v3330_v55 }
 0x2e1   :  { %1906 = vmatpush.bf16.msrb.mxu3 %v3354_v48  ;;  %1894 = vmatpush.bf16.msrb.mxu2 %v3334_v61  ;;  %v3314_v8 = vor.u32 %v3860_v0, %v3311_v5 }
 0x2e4   :  { %1866 = vmatpush.bf16.msrb.mxu0 %v3358_v19  ;;  %1882 = vmatpush.bf16.msrb.mxu1 %v3314_v8  ;;  %v3565_v8 = vor.u32 %v3921_v6, %v3562_v7  ;;  %v3903_v6 = vld [vmem:[#allocation7 + $0x54] sm:$0xf0] }
 0x2e5   :  { %1907 = vmatpush.bf16.msrb.mxu3 %v3338_v62  ;;  %1895 = vmatpush.bf16.msrb.mxu2 %v3318_v9  ;;  %v3536_v9 = vld [vmem:[#allocation7 + $0xc0] sm:$0xf] }
 0x2e8   :  { %1867 = vmatpush.bf16.msrb.mxu0 %v3342_v35 }
 0x2ec   :  { %1868 = vmatpush.bf16.msrb.mxu0 %v3326_v49 }
 0x2f0   :  { %1869 = vmatpush.bf16.msrb.mxu0 %v3310_v4 }
 0x35b   :  { %v1548_v29 = vpop.f32.mrf.mxu0  ;;  %v1561_v30 = vpop.f32.mrf.mxu1 }
 0x35c   :  { %v1591_v53 = vadd.f32 %v1548_v29, %v1341_v13  ;;  %v1592_v31 = vadd.f32 %v1561_v30, %v1342_v14  ;;  %v3322_v14 = vor.u32 %v3861_v10, %v3319_v11  ;;  %v3918_v10 = vld [vmem:[#allocation7 + $0xcc] sm:$0xf0]  ;;  %v3916_v11 = vld [vmem:[#allocation7 + $0xc4] sm:$0xf] }
 0x35e   :  { %v3304_v39 = vmul.f32 -1.442695, %v1591_v53  ;;  %v3305_v40 = vmul.f32 -1.442695, %v1592_v31  ;;  %1908 = vmatpush.bf16.msrb.mxu3 %v3322_v14  ;;  %v3544_v14 = vld [vmem:[#allocation7 + $0xc8] sm:$0xf] }
 0x360   :  { %4030 = vpow2.f32 %v3304_v39 }
 0x361   :  { %4032 = vpow2.f32 %v3305_v40 }
 0x362   :  { %v1574_v59 = vpop.f32.mrf.mxu2  ;;  %v1587_v60 = vpop.f32.mrf.mxu3  ;;  %2224 = vmatpush.bf16.msra.mxu3 %v3565_v8 }
 0x363   :  { %v1594_v1 = vadd.f32 %v1587_v60, %v1344_v41  ;;  %v1550_v2 = vpop.f32.mrf.mxu0  ;;  %v1563_v3 = vpop.f32.mrf.mxu1  ;;  %v1593_v26 = vadd.f32 %v1574_v59, %v1343_v22 }
 0x364   :  { %v3560_v2 = vld [vmem:[#allocation7 + $0xe8] sm:$0xf]  ;;  %v3923_v3 = vld [vmem:[#allocation7 + $0xf4] sm:$0xf0] }
 0x365   :  { %v3306_v12 = vmul.f32 -1.442695, %v1594_v1  ;;  %v3554_v1 = vld [vmem:[#allocation7 + $0xf0] sm:$0xf0]  ;;  %v3561_v5 = vor.u32 %v3923_v3, %v3560_v2  ;;  %v3900_v2 = vld [vmem:[#allocation7 + $0x44] sm:$0xf] }
 0x366   :  { %v4031_v13 = vpop.eup %4030  ;;  %v3557_v4 = vor.u32 %v3920_v63, %v3554_v1  ;;  %v3902_v1 = vld [vmem:[#allocation7 + $0x4c] sm:$0xf0] }
 0x367   :  { %v4033_v15 = vpop.eup %4032  ;;  %v1598_v16 = vadd.f32 1.0, %v4031_v13  ;;  %4034 = vpow2.f32 %v3306_v12  ;;  %2211 = vmatpush.bf16.msra.mxu2 %v3561_v5  ;;  %v3537_v12 = vor.u32 %v3918_v10, %v3536_v9  ;;  %v3538_v13 = vld [vmem:[#allocation7 + $0xd0] sm:$0xf0]  ;;  %v3480_v5 = vld [vmem:[#allocation7 + $0x48] sm:$0xf]  ;;  %v1667_v9 = vld [vmem:[#allocation4 + $0xb8] sm:$0xff] }
 0x368   :  { %v1617_v17 = vadd.f32 1.0, %v4033_v15  ;;  %2198 = vmatpush.bf16.msra.mxu1 %v3557_v4  ;;  %v3919_v15 = vld [vmem:[#allocation7 + $0xd4] sm:$0xf0]  ;;  %v3474_v4 = vld [vmem:[#allocation7 + $0x50] sm:$0xf0] }
 0x369   :  { %4036 = vrcp.f32 %v1598_v16  ;;  %v1610_v53 = vand.u32 2147483648, %v1598_v16  ;;  %v1608_v33 = vand.u32 2147483647, %v1598_v16  ;;  %vm1604_vm2 = vweird.f32 %v1598_v16 }
 0x36a   :  { %4038 = vrcp.f32 %v1617_v17  ;;  %v1576_v18 = vpop.f32.mrf.mxu2  ;;  %v1589_v19 = vpop.f32.mrf.mxu3  ;;  %v1629_v31 = vand.u32 2147483648, %v1617_v17  ;;  %v1627_v35 = vand.u32 2147483647, %v1617_v17  ;;  %vm1623_vm3 = vweird.f32 %v1617_v17 }
 0x36b   :  { %v1611_v38 = vor.u32 1.1754944e-38, %v1610_v53  ;;  %vm1609_vm6 = vcmp.eq.f32.partialorder %v1608_v33, 8.507059e+37  ;;  %v3917_v18 = vld [vmem:[#allocation7 + $0xcc] sm:$0xf]  ;;  %v3546_v19 = vld [vmem:[#allocation7 + $0xd8] sm:$0xf0]  ;;  %v3477_v10 = vor.u32 %v3900_v2, %v3474_v4 }
 0x36c   :  { %v1630_v41 = vor.u32 1.1754944e-38, %v1629_v31  ;;  %vm1628_vm7 = vcmp.eq.f32.partialorder %v1627_v35, 8.507059e+37  ;;  %v3549_v22 = vor.u32 %v3917_v18, %v3546_v19  ;;  %v3913_v53 = vld [vmem:[#allocation7 + $0xac] sm:$0xf]  ;;  %v3530_v31 = vld [vmem:[#allocation7 + $0xb8] sm:$0xf0] }
 0x36d   :  { %v4035_v23 = vpop.eup %4034  ;;  %v3504_v33 = vld [vmem:[#allocation7 + $0x80] sm:$0xf]  ;;  %v3908_v35 = vld [vmem:[#allocation7 + $0x84] sm:$0xf]  ;;  %v3458_v19 = vld [vmem:[#allocation7 + $0x30] sm:$0xf0] }
 0x36e   :  { %v1637_v24 = vadd.f32 1.0, %v4035_v23  ;;  %v3520_v23 = vld [vmem:[#allocation7 + $0xa0] sm:$0xf]  ;;  %2225 = vmatpush.bf16.msra.mxu3 %v3549_v22  ;;  %v3896_v18 = vld [vmem:[#allocation7 + $0x24] sm:$0xf] }
 0x36f   :  { %v4037_v25 = vpop.eup %4036  ;;  %v3464_v22 = vld [vmem:[#allocation7 + $0x28] sm:$0xf] }
 0x370   :  { %v4039_v27 = vpop.eup %4038  ;;  %v1600_v28 = vmul.f32 %v4037_v25, %v1598_v16  ;;  %4040 = vrcp.f32 %v1637_v24  ;;  %vm1605_vm0 = vweird.f32 %v4037_v25  ;;  %v1649_v55 = vand.u32 2147483648, %v1637_v24 }
 0x371   :  { %v1619_v29 = vmul.f32 %v4039_v27, %v1617_v17  ;;  %4042 = vtanh.f32 %v1593_v26  ;;  %vm1624_vm1 = vweird.f32 %v4039_v27  ;;  %vm1606_vm4 = vmor %vm1604_vm2, %vm1605_vm0  ;;  %vm1643_vm9 = vweird.f32 %v1637_v24 }
 0x372   :  { %v1601_v30 = vsub.f32 1.0, %v1600_v28  ;;  %vm1625_vm5 = vmor %vm1623_vm3, %vm1624_vm1  ;;  %v1647_v56 = vand.u32 2147483647, %v1637_v24  ;;  %v1650_v58 = vor.u32 1.1754944e-38, %v1649_v55  ;;  %v3541_v16 = vor.u32 %v3916_v11, %v3538_v13  ;;  %v3528_v28 = vld [vmem:[#allocation7 + $0xa8] sm:$0xf] }
 0x373   :  { %v1620_v52 = vsub.f32 1.0, %v1619_v29  ;;  %v3545_v17 = vor.u32 %v3919_v15, %v3544_v14  ;;  %v3915_v29 = vld [vmem:[#allocation7 + $0xb4] sm:$0xf0]  ;;  %v3496_v55 = vld [vmem:[#allocation7 + $0x68] sm:$0xf]  ;;  %v3481_v11 = vor.u32 %v3903_v6, %v3480_v5 }
 0x374   :  { %v1602_v32 = vmul.f32 %v4037_v25, %v1601_v30  ;;  %vm1648_vm11 = vcmp.eq.f32.partialorder %v1647_v56, 8.507059e+37  ;;  %2199 = vmatpush.bf16.msra.mxu1 %v3541_v16  ;;  %v3907_v56 = vld [vmem:[#allocation7 + $0x74] sm:$0xf0]  ;;  %v3482_v13 = vld [vmem:[#allocation7 + $0x58] sm:$0xf0] }
 0x375   :  { %v1621_v34 = vmul.f32 %v4039_v27, %v1620_v52  ;;  %2212 = vmatpush.bf16.msra.mxu2 %v3545_v17  ;;  %v3529_v52 = vor.u32 %v3915_v29, %v3528_v28  ;;  %v3456_v14 = vld [vmem:[#allocation7 + $0x20] sm:$0xf]  ;;  %v3898_v15 = vld [vmem:[#allocation7 + $0x2c] sm:$0xf0] }
 0x376   :  { %v4041_v36 = vpop.eup %4040  ;;  %v1603_v37 = vadd.f32 %v4037_v25, %v1602_v32  ;;  %v3533_v32 = vor.u32 %v3913_v53, %v3530_v31  ;;  %v3457_v17 = vor.u32 %v3898_v15, %v3456_v14  ;;  %v3894_v53 = vld [vmem:[#allocation7 + $0xc] sm:$0xf0]  ;;  %v3892_v31 = vld [vmem:[#allocation7 + $0x4] sm:$0xf] }
 0x377   :  { %v1622_v39 = vadd.f32 %v4039_v27, %v1621_v34  ;;  %v1639_v40 = vmul.f32 %v4041_v36, %v1637_v24  ;;  %v4043_v43 = vpop.eup %4042  ;;  %vm1644_vm8 = vweird.f32 %v4041_v36  ;;  %v3914_v24 = vld [vmem:[#allocation7 + $0xac] sm:$0xf0] }
 0x378   :  { %v1607_v42 = vsel %vm1606_vm4, %v4037_v25, %v1603_v37  ;;  %vm1645_vm10 = vmor %vm1643_vm9, %vm1644_vm8  ;;  %v3912_v25 = vld [vmem:[#allocation7 + $0xa4] sm:$0xf]  ;;  %v3521_v26 = vor.u32 %v3914_v24, %v3520_v23  ;;  %v3910_v34 = vld [vmem:[#allocation7 + $0x8c] sm:$0xf0]  ;;  %2226 = vmatpush.bf16.msra.mxu3 %v3533_v32  ;;  %v3461_v23 = vor.u32 %v3896_v18, %v3458_v19 }
 0x379   :  { %v1612_v44 = vsel %vm1609_vm6, %v1611_v38, %v1607_v42  ;;  %v1626_v45 = vsel %vm1625_vm5, %v4039_v27, %v1622_v39  ;;  %v1640_v46 = vsub.f32 1.0, %v1639_v40  ;;  %v3522_v27 = vld [vmem:[#allocation7 + $0xb0] sm:$0xf0]  ;;  %2213 = vmatpush.bf16.msra.mxu2 %v3529_v52  ;;  %v3512_v38 = vld [vmem:[#allocation7 + $0x88] sm:$0xf] }
 0x37a   :  { %v1631_v47 = vsel %vm1628_vm7, %v1630_v41, %v1626_v45  ;;  %v1655_v48 = vmul.f32 %v4043_v43, %v1612_v44  ;;  %v3525_v30 = vor.u32 %v3912_v25, %v3522_v27  ;;  %v3506_v37 = vld [vmem:[#allocation7 + $0x90] sm:$0xf0]  ;;  %v3911_v39 = vld [vmem:[#allocation7 + $0x94] sm:$0xf0]  ;;  %v3909_v42 = vld [vmem:[#allocation7 + $0x8c] sm:$0xf] }
 0x37b   :  { %v1654_v49 = vmul.f32 %v1631_v47, %v4215_v20  ;;  %v1641_v50 = vmul.f32 %v4041_v36, %v1640_v46  ;;  %v3552_v20 = vld [vmem:[#allocation7 + $0xe0] sm:$0xf]  ;;  %v3509_v40 = vor.u32 %v3908_v35, %v3506_v37  ;;  %v3513_v41 = vor.u32 %v3911_v39, %v3512_v38  ;;  %v3514_v43 = vld [vmem:[#allocation7 + $0x98] sm:$0xf0]  ;;  %v1665_v45 = vld [vmem:[#allocation4 + $0xa8] sm:$0xff] }
 0x37c   :  { %v3553_v0 = vor.u32 %v3922_v21, %v3552_v20  ;;  %2200 = vmatpush.bf16.msra.mxu1 %v3525_v30  ;;  %v1664_v44 = vld [vmem:[#allocation4 + $0xa0] sm:$0xff]  ;;  %v3517_v46 = vor.u32 %v3909_v42, %v3514_v43  ;;  %v3899_v24 = vld [vmem:[#allocation7 + $0x34] sm:$0xf0]  ;;  %v3897_v25 = vld [vmem:[#allocation7 + $0x2c] sm:$0xf] }
 0x37d   :  { %v4219_v51 = vadd.f32 %v1655_v48, %v1654_v49  ;;  %v1642_v54 = vadd.f32 %v4041_v36, %v1641_v50  ;;  %2214 = vmatpush.bf16.msra.mxu2 %v3513_v41  ;;  %v3488_v47 = vld [vmem:[#allocation7 + $0x60] sm:$0xf]  ;;  %v3906_v48 = vld [vmem:[#allocation7 + $0x6c] sm:$0xf0]  ;;  %v3904_v49 = vld [vmem:[#allocation7 + $0x64] sm:$0xf]  ;;  %v3465_v29 = vor.u32 %v3899_v24, %v3464_v22 }
 0x37e   :  { %2185 = vmatpush.bf16.msra.mxu0 %v3553_v0  ;;  %2227 = vmatpush.bf16.msra.mxu3 %v3517_v46  ;;  %v3489_v50 = vor.u32 %v3906_v48, %v3488_v47  ;;  %v3472_v0 = vld [vmem:[#allocation7 + $0x40] sm:$0xf]  ;;  %v3448_v37 = vld [vmem:[#allocation7 + $0x8] sm:$0xf]  ;;  %v3895_v38 = vld [vmem:[#allocation7 + $0x14] sm:$0xf0] }
 0x37f   :  { %4044 = vtanh.f32 %v4219_v51  ;;  %v1646_v57 = vsel %vm1645_vm10, %v4041_v36, %v1642_v54  ;;  %v3505_v36 = vor.u32 %v3910_v34, %v3504_v33  ;;  %v3490_v54 = vld [vmem:[#allocation7 + $0x70] sm:$0xf0]  ;;  %v3473_v3 = vor.u32 %v3902_v1, %v3472_v0  ;;  %v3440_v52 = vld [vmem:[#allocation7] sm:$0xf]  ;;  %v3893_v41 = vld [vmem:[#allocation7 + $0xc] sm:$0xf] }
 0x380   :  { %v1651_v60 = vsel %vm1648_vm11, %v1650_v58, %v1646_v57  ;;  %2201 = vmatpush.bf16.msra.mxu1 %v3509_v40  ;;  %v3493_v57 = vor.u32 %v3904_v49, %v3490_v54  ;;  %v3497_v58 = vor.u32 %v3907_v56, %v3496_v55  ;;  %v3441_v35 = vor.u32 %v3894_v53, %v3440_v52  ;;  %v3450_v42 = vld [vmem:[#allocation7 + $0x18] sm:$0xf0]  ;;  %v1666_v54 = vld [vmem:[#allocation4 + $0xb0] sm:$0xff]  ;;  %v3952_v53 = vld [vmem:[#allocation7 + $0xe4] sm:$0xf] }
 0x381   :  { %v3449_v40 = vor.u32 %v3895_v38, %v3448_v37  ;;  %v3954_v52 = vld [vmem:[#allocation7 + $0xec] sm:$0xf0]  ;;  %v3953_v37 = vld [vmem:[#allocation7 + $0xec] sm:$0xf]  ;;  %v3693_v38 = vld [vmem:[#allocation7 + $0xf8] sm:$0xf0] }
 0x382   :  { %2186 = vmatpush.bf16.msra.mxu0 %v3537_v12  ;;  %2215 = vmatpush.bf16.msra.mxu2 %v3497_v58  ;;  %v3901_v12 = vld [vmem:[#allocation7 + $0x4c] sm:$0xf] }
 0x383   :  { %v3485_v16 = vor.u32 %v3901_v12, %v3482_v13 }
 0x384   :  { %2202 = vmatpush.bf16.msra.mxu1 %v3493_v57 }
 0x385   :  { %v4045_v59 = vpop.eup %4044 }
 0x386   :  { %v1658_v61 = vmul.f32 %v4045_v59, %v1651_v60  ;;  %2187 = vmatpush.bf16.msra.mxu0 %v3521_v26  ;;  %v3905_v59 = vld [vmem:[#allocation7 + $0x6c] sm:$0xf]  ;;  %v3498_v60 = vld [vmem:[#allocation7 + $0x78] sm:$0xf0]  ;;  %2216 = vmatpush.bf16.msra.mxu2 %v3481_v11 }
 0x387   :  { %v3501_v20 = vor.u32 %v3905_v59, %v3498_v60  ;;  %v3466_v26 = vld [vmem:[#allocation7 + $0x38] sm:$0xf0] }
 0x388   :  { %1662 = vst [vmem:[#allocation9 + $0x20] sm:$0xff] %v1658_v61  ;;  %v1669_v62 = vpack.c.bf16 %v1658_v61, %v1658_v61  ;;  %2203 = vmatpush.bf16.msra.mxu1 %v3477_v10  ;;  %v3469_v30 = vor.u32 %v3897_v25, %v3466_v26 }
 0x389   :  { %2228 = vmatpush.bf16.msra.mxu3 %v3501_v20 }
 0x38a   :  { %1870 = vmatmul.bf16.vlgmr.msrb.gmra.mxu0 %v1669_v62  ;;  %1883 = vmatmul.bf16.vlgmr.msrb.gmra.mxu1 %v1669_v62 }
 0x38b   :  { %1896 = vmatmul.bf16.vlgmr.msrb.gmra.mxu2 %v1669_v62  ;;  %1909 = vmatmul.bf16.vlgmr.msrb.gmra.mxu3 %v1669_v62 }
 0x38c   :  { %2188 = vmatpush.bf16.msra.mxu0 %v3505_v36  ;;  %v3442_v36 = vld [vmem:[#allocation7 + $0x10] sm:$0xf0]  ;;  %2204 = vmatpush.bf16.msra.mxu1 %v3461_v23 }
 0x38d   :  { %2229 = vmatpush.bf16.msra.mxu3 %v3485_v16  ;;  %2217 = vmatpush.bf16.msra.mxu2 %v3465_v29  ;;  %v3445_v39 = vor.u32 %v3892_v31, %v3442_v36 }
 0x390   :  { %2189 = vmatpush.bf16.msra.mxu0 %v3489_v50  ;;  %2205 = vmatpush.bf16.msra.mxu1 %v3445_v39  ;;  %v3696_v39 = vor.u32 %v3953_v37, %v3693_v38  ;;  %v3935_v37 = vld [vmem:[#allocation7 + $0x54] sm:$0xf0] }
 0x391   :  { %2230 = vmatpush.bf16.msra.mxu3 %v3469_v30  ;;  %2218 = vmatpush.bf16.msra.mxu2 %v3449_v40  ;;  %v3667_v40 = vld [vmem:[#allocation7 + $0xc0] sm:$0xf] }
 0x394   :  { %2190 = vmatpush.bf16.msra.mxu0 %v3473_v3 }
 0x398   :  { %2191 = vmatpush.bf16.msra.mxu0 %v3457_v17 }
 0x39c   :  { %2192 = vmatpush.bf16.msra.mxu0 %v3441_v35 }
 0x407   :  { %v1871_v61 = vpop.f32.mrf.mxu0  ;;  %v1884_v62 = vpop.f32.mrf.mxu1 }
 0x408   :  { %v1914_v21 = vadd.f32 %v1871_v61, %v1664_v44  ;;  %v1915_v63 = vadd.f32 %v1884_v62, %v1665_v45  ;;  %v3453_v45 = vor.u32 %v3893_v41, %v3450_v42  ;;  %v3950_v41 = vld [vmem:[#allocation7 + $0xcc] sm:$0xf0]  ;;  %v3948_v42 = vld [vmem:[#allocation7 + $0xc4] sm:$0xf] }
 0x40a   :  { %v3435_v7 = vmul.f32 -1.442695, %v1914_v21  ;;  %v3436_v8 = vmul.f32 -1.442695, %v1915_v63  ;;  %2231 = vmatpush.bf16.msra.mxu3 %v3453_v45  ;;  %v3675_v45 = vld [vmem:[#allocation7 + $0xc8] sm:$0xf] }
 0x40c   :  { %4046 = vpow2.f32 %v3435_v7 }
 0x40d   :  { %4048 = vpow2.f32 %v3436_v8 }
 0x40e   :  { %v1897_v27 = vpop.f32.mrf.mxu2  ;;  %v1910_v28 = vpop.f32.mrf.mxu3  ;;  %2547 = vmatpush.bf16.msrb.mxu3 %v3696_v39 }
 0x40f   :  { %v1917_v32 = vadd.f32 %v1910_v28, %v1667_v9  ;;  %v1873_v33 = vpop.f32.mrf.mxu0  ;;  %v1886_v34 = vpop.f32.mrf.mxu1  ;;  %v1916_v58 = vadd.f32 %v1897_v27, %v1666_v54 }
 0x410   :  { %v3691_v33 = vld [vmem:[#allocation7 + $0xe8] sm:$0xf]  ;;  %v3955_v34 = vld [vmem:[#allocation7 + $0xf4] sm:$0xf0] }
 0x411   :  { %v3437_v43 = vmul.f32 -1.442695, %v1917_v32  ;;  %v3685_v32 = vld [vmem:[#allocation7 + $0xf0] sm:$0xf0]  ;;  %v3692_v36 = vor.u32 %v3955_v34, %v3691_v33  ;;  %v3932_v33 = vld [vmem:[#allocation7 + $0x44] sm:$0xf] }
 0x412   :  { %v4047_v44 = vpop.eup %4046  ;;  %v3688_v35 = vor.u32 %v3952_v53, %v3685_v32  ;;  %v3934_v32 = vld [vmem:[#allocation7 + $0x4c] sm:$0xf0] }
 0x413   :  { %v4049_v46 = vpop.eup %4048  ;;  %v1921_v47 = vadd.f32 1.0, %v4047_v44  ;;  %4050 = vpow2.f32 %v3437_v43  ;;  %2534 = vmatpush.bf16.msrb.mxu2 %v3692_v36  ;;  %v3668_v43 = vor.u32 %v3950_v41, %v3667_v40  ;;  %v3669_v44 = vld [vmem:[#allocation7 + $0xd0] sm:$0xf0]  ;;  %v3611_v36 = vld [vmem:[#allocation7 + $0x48] sm:$0xf]  ;;  %v1990_v40 = vld [vmem:[#allocation4 + $0xd8] sm:$0xff] }
 0x414   :  { %v1940_v48 = vadd.f32 1.0, %v4049_v46  ;;  %2521 = vmatpush.bf16.msrb.mxu1 %v3688_v35  ;;  %v3951_v46 = vld [vmem:[#allocation7 + $0xd4] sm:$0xf0]  ;;  %v3605_v35 = vld [vmem:[#allocation7 + $0x50] sm:$0xf0] }
 0x415   :  { %4052 = vrcp.f32 %v1921_v47  ;;  %v1933_v21 = vand.u32 2147483648, %v1921_v47  ;;  %v1931_v1 = vand.u32 2147483647, %v1921_v47  ;;  %vm1927_vm14 = vweird.f32 %v1921_v47 }
 0x416   :  { %4054 = vrcp.f32 %v1940_v48  ;;  %v1899_v49 = vpop.f32.mrf.mxu2  ;;  %v1912_v50 = vpop.f32.mrf.mxu3  ;;  %v1952_v63 = vand.u32 2147483648, %v1940_v48  ;;  %v1950_v3 = vand.u32 2147483647, %v1940_v48  ;;  %vm1946_vm15 = vweird.f32 %v1940_v48 }
 0x417   :  { %v1934_v6 = vor.u32 1.1754944e-38, %v1933_v21  ;;  %vm1932_vm2 = vcmp.eq.f32.partialorder %v1931_v1, 8.507059e+37  ;;  %v3949_v49 = vld [vmem:[#allocation7 + $0xcc] sm:$0xf]  ;;  %v3677_v50 = vld [vmem:[#allocation7 + $0xd8] sm:$0xf0]  ;;  %v3608_v41 = vor.u32 %v3932_v33, %v3605_v35 }
 0x418   :  { %v1953_v9 = vor.u32 1.1754944e-38, %v1952_v63  ;;  %vm1951_vm3 = vcmp.eq.f32.partialorder %v1950_v3, 8.507059e+37  ;;  %v3680_v54 = vor.u32 %v3949_v49, %v3677_v50  ;;  %v3945_v21 = vld [vmem:[#allocation7 + $0xac] sm:$0xf]  ;;  %v3661_v63 = vld [vmem:[#allocation7 + $0xb8] sm:$0xf0] }
 0x419   :  { %v4051_v55 = vpop.eup %4050  ;;  %v3635_v1 = vld [vmem:[#allocation7 + $0x80] sm:$0xf]  ;;  %v3940_v3 = vld [vmem:[#allocation7 + $0x84] sm:$0xf]  ;;  %v3589_v50 = vld [vmem:[#allocation7 + $0x30] sm:$0xf0] }
 0x41a   :  { %v1960_v56 = vadd.f32 1.0, %v4051_v55  ;;  %v3651_v55 = vld [vmem:[#allocation7 + $0xa0] sm:$0xf]  ;;  %2548 = vmatpush.bf16.msrb.mxu3 %v3680_v54  ;;  %v3928_v49 = vld [vmem:[#allocation7 + $0x24] sm:$0xf] }
 0x41b   :  { %v4053_v57 = vpop.eup %4052  ;;  %v3595_v54 = vld [vmem:[#allocation7 + $0x28] sm:$0xf] }
 0x41c   :  { %v4055_v59 = vpop.eup %4054  ;;  %v1923_v60 = vmul.f32 %v4053_v57, %v1921_v47  ;;  %4056 = vrcp.f32 %v1960_v56  ;;  %vm1928_vm12 = vweird.f32 %v4053_v57  ;;  %v1972_v23 = vand.u32 2147483648, %v1960_v56 }
 0x41d   :  { %v1942_v61 = vmul.f32 %v4055_v59, %v1940_v48  ;;  %4058 = vtanh.f32 %v1916_v58  ;;  %vm1947_vm13 = vweird.f32 %v4055_v59  ;;  %vm1929_vm0 = vmor %vm1927_vm14, %vm1928_vm12  ;;  %vm1966_vm5 = vweird.f32 %v1960_v56 }
 0x41e   :  { %v1924_v62 = vsub.f32 1.0, %v1923_v60  ;;  %vm1948_vm1 = vmor %vm1946_vm15, %vm1947_vm13  ;;  %v1970_v24 = vand.u32 2147483647, %v1960_v56  ;;  %v1973_v26 = vor.u32 1.1754944e-38, %v1972_v23  ;;  %v3672_v47 = vor.u32 %v3948_v42, %v3669_v44  ;;  %v3659_v60 = vld [vmem:[#allocation7 + $0xa8] sm:$0xf] }
 0x41f   :  { %v1943_v20 = vsub.f32 1.0, %v1942_v61  ;;  %v3676_v48 = vor.u32 %v3951_v46, %v3675_v45  ;;  %v3947_v61 = vld [vmem:[#allocation7 + $0xb4] sm:$0xf0]  ;;  %v3627_v23 = vld [vmem:[#allocation7 + $0x68] sm:$0xf]  ;;  %v3612_v42 = vor.u32 %v3935_v37, %v3611_v36 }
 0x420   :  { %v1925_v0 = vmul.f32 %v4053_v57, %v1924_v62  ;;  %vm1971_vm7 = vcmp.eq.f32.partialorder %v1970_v24, 8.507059e+37  ;;  %2522 = vmatpush.bf16.msrb.mxu1 %v3672_v47  ;;  %v3939_v24 = vld [vmem:[#allocation7 + $0x74] sm:$0xf0]  ;;  %v3613_v44 = vld [vmem:[#allocation7 + $0x58] sm:$0xf0] }
 0x421   :  { %v1944_v2 = vmul.f32 %v4055_v59, %v1943_v20  ;;  %2535 = vmatpush.bf16.msrb.mxu2 %v3676_v48  ;;  %v3660_v20 = vor.u32 %v3947_v61, %v3659_v60  ;;  %v3587_v45 = vld [vmem:[#allocation7 + $0x20] sm:$0xf]  ;;  %v3930_v46 = vld [vmem:[#allocation7 + $0x2c] sm:$0xf0] }
 0x422   :  { %v4057_v4 = vpop.eup %4056  ;;  %v1926_v5 = vadd.f32 %v4053_v57, %v1925_v0  ;;  %v3664_v0 = vor.u32 %v3945_v21, %v3661_v63  ;;  %v3588_v48 = vor.u32 %v3930_v46, %v3587_v45  ;;  %v3926_v21 = vld [vmem:[#allocation7 + $0xc] sm:$0xf0]  ;;  %v3924_v63 = vld [vmem:[#allocation7 + $0x4] sm:$0xf] }
 0x423   :  { %v1945_v7 = vadd.f32 %v4055_v59, %v1944_v2  ;;  %v1962_v8 = vmul.f32 %v4057_v4, %v1960_v56  ;;  %v4059_v11 = vpop.eup %4058  ;;  %vm1967_vm4 = vweird.f32 %v4057_v4  ;;  %v3946_v56 = vld [vmem:[#allocation7 + $0xac] sm:$0xf0] }
 0x424   :  { %v1930_v10 = vsel %vm1929_vm0, %v4053_v57, %v1926_v5  ;;  %vm1968_vm6 = vmor %vm1966_vm5, %vm1967_vm4  ;;  %v3944_v57 = vld [vmem:[#allocation7 + $0xa4] sm:$0xf]  ;;  %v3652_v58 = vor.u32 %v3946_v56, %v3651_v55  ;;  %v3942_v2 = vld [vmem:[#allocation7 + $0x8c] sm:$0xf0]  ;;  %2549 = vmatpush.bf16.msrb.mxu3 %v3664_v0  ;;  %v3592_v55 = vor.u32 %v3928_v49, %v3589_v50 }
 0x425   :  { %v1935_v12 = vsel %vm1932_vm2, %v1934_v6, %v1930_v10  ;;  %v1949_v13 = vsel %vm1948_vm1, %v4055_v59, %v1945_v7  ;;  %v1963_v14 = vsub.f32 1.0, %v1962_v8  ;;  %v3653_v59 = vld [vmem:[#allocation7 + $0xb0] sm:$0xf0]  ;;  %2536 = vmatpush.bf16.msrb.mxu2 %v3660_v20  ;;  %v3643_v6 = vld [vmem:[#allocation7 + $0x88] sm:$0xf] }
 0x426   :  { %v1954_v15 = vsel %vm1951_vm3, %v1953_v9, %v1949_v13  ;;  %v1978_v16 = vmul.f32 %v4059_v11, %v1935_v12  ;;  %v3656_v62 = vor.u32 %v3944_v57, %v3653_v59  ;;  %v3637_v5 = vld [vmem:[#allocation7 + $0x90] sm:$0xf0]  ;;  %v3943_v7 = vld [vmem:[#allocation7 + $0x94] sm:$0xf0]  ;;  %v3941_v10 = vld [vmem:[#allocation7 + $0x8c] sm:$0xf] }
 0x427   :  { %v1977_v17 = vmul.f32 %v1954_v15, %v4219_v51  ;;  %v1964_v18 = vmul.f32 %v4057_v4, %v1963_v14  ;;  %v3683_v51 = vld [vmem:[#allocation7 + $0xe0] sm:$0xf]  ;;  %v3640_v8 = vor.u32 %v3940_v3, %v3637_v5  ;;  %v3644_v9 = vor.u32 %v3943_v7, %v3643_v6  ;;  %v3645_v11 = vld [vmem:[#allocation7 + $0x98] sm:$0xf0]  ;;  %v1988_v13 = vld [vmem:[#allocation4 + $0xc8] sm:$0xff] }
 0x428   :  { %v3684_v31 = vor.u32 %v3954_v52, %v3683_v51  ;;  %2523 = vmatpush.bf16.msrb.mxu1 %v3656_v62  ;;  %v1987_v12 = vld [vmem:[#allocation4 + $0xc0] sm:$0xff]  ;;  %v3648_v14 = vor.u32 %v3941_v10, %v3645_v11  ;;  %v3931_v56 = vld [vmem:[#allocation7 + $0x34] sm:$0xf0]  ;;  %v3929_v57 = vld [vmem:[#allocation7 + $0x2c] sm:$0xf] }
 0x429   :  { %v4223_v19 = vadd.f32 %v1978_v16, %v1977_v17  ;;  %v1965_v22 = vadd.f32 %v4057_v4, %v1964_v18  ;;  %2537 = vmatpush.bf16.msrb.mxu2 %v3644_v9  ;;  %v3619_v15 = vld [vmem:[#allocation7 + $0x60] sm:$0xf]  ;;  %v3938_v16 = vld [vmem:[#allocation7 + $0x6c] sm:$0xf0]  ;;  %v3936_v17 = vld [vmem:[#allocation7 + $0x64] sm:$0xf]  ;;  %v3596_v61 = vor.u32 %v3931_v56, %v3595_v54 }
 0x42a   :  { %2508 = vmatpush.bf16.msrb.mxu0 %v3684_v31  ;;  %2550 = vmatpush.bf16.msrb.mxu3 %v3648_v14  ;;  %v3620_v18 = vor.u32 %v3938_v16, %v3619_v15  ;;  %v3603_v31 = vld [vmem:[#allocation7 + $0x40] sm:$0xf]  ;;  %v3579_v5 = vld [vmem:[#allocation7 + $0x8] sm:$0xf]  ;;  %v3927_v6 = vld [vmem:[#allocation7 + $0x14] sm:$0xf0] }
 0x42b   :  { %4060 = vtanh.f32 %v4223_v19  ;;  %v1969_v25 = vsel %vm1968_vm6, %v4057_v4, %v1965_v22  ;;  %v3636_v4 = vor.u32 %v3942_v2, %v3635_v1  ;;  %v3621_v22 = vld [vmem:[#allocation7 + $0x70] sm:$0xf0]  ;;  %v3604_v34 = vor.u32 %v3934_v32, %v3603_v31  ;;  %v3571_v20 = vld [vmem:[#allocation7] sm:$0xf]  ;;  %v3925_v9 = vld [vmem:[#allocation7 + $0xc] sm:$0xf] }
 0x42c   :  { %v1974_v28 = vsel %vm1971_vm7, %v1973_v26, %v1969_v25  ;;  %2524 = vmatpush.bf16.msrb.mxu1 %v3640_v8  ;;  %v3624_v25 = vor.u32 %v3936_v17, %v3621_v22  ;;  %v3628_v26 = vor.u32 %v3939_v24, %v3627_v23  ;;  %v3572_v3 = vor.u32 %v3926_v21, %v3571_v20  ;;  %v3581_v10 = vld [vmem:[#allocation7 + $0x18] sm:$0xf0]  ;;  %v1989_v22 = vld [vmem:[#allocation4 + $0xd0] sm:$0xff]  ;;  %v2311_v20 = vld [vmem:[#allocation4 + $0xe8] sm:$0xff] }
 0x42d   :  { %v3580_v8 = vor.u32 %v3927_v6, %v3579_v5 }
 0x42e   :  { %2509 = vmatpush.bf16.msrb.mxu0 %v3668_v43  ;;  %2538 = vmatpush.bf16.msrb.mxu2 %v3628_v26  ;;  %v3933_v43 = vld [vmem:[#allocation7 + $0x4c] sm:$0xf] }
 0x42f   :  { %v3616_v47 = vor.u32 %v3933_v43, %v3613_v44 }
 0x430   :  { %2525 = vmatpush.bf16.msrb.mxu1 %v3624_v25 }
 0x431   :  { %v4061_v27 = vpop.eup %4060 }
 0x432   :  { %v1981_v29 = vmul.f32 %v4061_v27, %v1974_v28  ;;  %2510 = vmatpush.bf16.msrb.mxu0 %v3652_v58  ;;  %v3937_v27 = vld [vmem:[#allocation7 + $0x6c] sm:$0xf]  ;;  %v3629_v28 = vld [vmem:[#allocation7 + $0x78] sm:$0xf0]  ;;  %2539 = vmatpush.bf16.msrb.mxu2 %v3612_v42 }
 0x433   :  { %v3632_v51 = vor.u32 %v3937_v27, %v3629_v28  ;;  %v3597_v58 = vld [vmem:[#allocation7 + $0x38] sm:$0xf0] }
 0x434   :  { %1985 = vst [vmem:[#allocation9 + $0x28] sm:$0xff] %v1981_v29  ;;  %v1992_v30 = vpack.c.bf16 %v1981_v29, %v1981_v29  ;;  %2526 = vmatpush.bf16.msrb.mxu1 %v3608_v41  ;;  %v3600_v62 = vor.u32 %v3929_v57, %v3597_v58 }
 0x435   :  { %2551 = vmatpush.bf16.msrb.mxu3 %v3632_v51 }
 0x436   :  { %2193 = vmatmul.bf16.vlgmr.msra.gmra.mxu0 %v1992_v30  ;;  %2206 = vmatmul.bf16.vlgmr.msra.gmra.mxu1 %v1992_v30 }
 0x437   :  { %2219 = vmatmul.bf16.vlgmr.msra.gmra.mxu2 %v1992_v30  ;;  %2232 = vmatmul.bf16.vlgmr.msra.gmra.mxu3 %v1992_v30 }
 0x438   :  { %2511 = vmatpush.bf16.msrb.mxu0 %v3636_v4  ;;  %v3573_v4 = vld [vmem:[#allocation7 + $0x10] sm:$0xf0]  ;;  %2527 = vmatpush.bf16.msrb.mxu1 %v3592_v55 }
 0x439   :  { %2552 = vmatpush.bf16.msrb.mxu3 %v3616_v47  ;;  %2540 = vmatpush.bf16.msrb.mxu2 %v3596_v61  ;;  %v3576_v7 = vor.u32 %v3924_v63, %v3573_v4  ;;  %v2313_v4 = vld [vmem:[#allocation4 + $0xf8] sm:$0xff] }
 0x43c   :  { %2512 = vmatpush.bf16.msrb.mxu0 %v3620_v18  ;;  %2528 = vmatpush.bf16.msrb.mxu1 %v3576_v7 }
 0x43d   :  { %2553 = vmatpush.bf16.msrb.mxu3 %v3600_v62  ;;  %2541 = vmatpush.bf16.msrb.mxu2 %v3580_v8 }
 0x440   :  { %2513 = vmatpush.bf16.msrb.mxu0 %v3604_v34 }
 0x444   :  { %2514 = vmatpush.bf16.msrb.mxu0 %v3588_v48 }
 0x448   :  { %2515 = vmatpush.bf16.msrb.mxu0 %v3572_v3 }
 0x4b3   :  { %v2194_v29 = vpop.f32.mrf.mxu0  ;;  %v2207_v30 = vpop.f32.mrf.mxu1 }
 0x4b4   :  { %v2237_v52 = vadd.f32 %v2194_v29, %v1987_v12  ;;  %v2238_v53 = vadd.f32 %v2207_v30, %v1988_v13  ;;  %v3584_v13 = vor.u32 %v3925_v9, %v3581_v10 }
 0x4b6   :  { %v3566_v38 = vmul.f32 -1.442695, %v2237_v52  ;;  %v3567_v39 = vmul.f32 -1.442695, %v2238_v53  ;;  %2554 = vmatpush.bf16.msrb.mxu3 %v3584_v13 }
 0x4b8   :  { %4062 = vpow2.f32 %v3566_v38 }
 0x4b9   :  { %4064 = vpow2.f32 %v3567_v39 }
 0x4ba   :  { %v2220_v59 = vpop.f32.mrf.mxu2  ;;  %v2233_v60 = vpop.f32.mrf.mxu3 }
 0x4bb   :  { %v2240_v0 = vadd.f32 %v2233_v60, %v1990_v40  ;;  %v2196_v1 = vpop.f32.mrf.mxu0  ;;  %v2209_v2 = vpop.f32.mrf.mxu1  ;;  %v2239_v26 = vadd.f32 %v2220_v59, %v1989_v22 }
 0x4bd   :  { %v3568_v11 = vmul.f32 -1.442695, %v2240_v0 }
 0x4be   :  { %v4063_v12 = vpop.eup %4062 }
 0x4bf   :  { %v4065_v14 = vpop.eup %4064  ;;  %v2244_v15 = vadd.f32 1.0, %v4063_v12  ;;  %4066 = vpow2.f32 %v3568_v11 }
 0x4c0   :  { %v2263_v16 = vadd.f32 1.0, %v4065_v14 }
 0x4c1   :  { %4068 = vrcp.f32 %v2244_v15  ;;  %v2256_v52 = vand.u32 2147483648, %v2244_v15  ;;  %v2254_v32 = vand.u32 2147483647, %v2244_v15  ;;  %vm2250_vm10 = vweird.f32 %v2244_v15 }
 0x4c2   :  { %4070 = vrcp.f32 %v2263_v16  ;;  %v2222_v17 = vpop.f32.mrf.mxu2  ;;  %v2235_v18 = vpop.f32.mrf.mxu3  ;;  %v2275_v53 = vand.u32 2147483648, %v2263_v16  ;;  %v2273_v34 = vand.u32 2147483647, %v2263_v16  ;;  %vm2269_vm11 = vweird.f32 %v2263_v16 }
 0x4c3   :  { %v2257_v37 = vor.u32 1.1754944e-38, %v2256_v52  ;;  %vm2255_vm14 = vcmp.eq.f32.partialorder %v2254_v32, 8.507059e+37  ;;  %v2312_v17 = vld [vmem:[#allocation4 + $0xf0] sm:$0xff] }
 0x4c4   :  { %v2276_v40 = vor.u32 1.1754944e-38, %v2275_v53  ;;  %vm2274_vm15 = vcmp.eq.f32.partialorder %v2273_v34, 8.507059e+37 }
 0x4c5   :  { %v4067_v23 = vpop.eup %4066 }
 0x4c6   :  { %v2283_v24 = vadd.f32 1.0, %v4067_v23 }
 0x4c7   :  { %v4069_v25 = vpop.eup %4068 }
 0x4c8   :  { %v4071_v27 = vpop.eup %4070  ;;  %v2246_v28 = vmul.f32 %v4069_v25, %v2244_v15  ;;  %4072 = vrcp.f32 %v2283_v24  ;;  %vm2251_vm8 = vweird.f32 %v4069_v25  ;;  %v2295_v55 = vand.u32 2147483648, %v2283_v24 }
 0x4c9   :  { %v2265_v29 = vmul.f32 %v4071_v27, %v2263_v16  ;;  %4074 = vtanh.f32 %v2239_v26  ;;  %vm2270_vm9 = vweird.f32 %v4071_v27  ;;  %vm2252_vm12 = vmor %vm2250_vm10, %vm2251_vm8  ;;  %vm2289_vm1 = vweird.f32 %v2283_v24 }
 0x4ca   :  { %v2247_v30 = vsub.f32 1.0, %v2246_v28  ;;  %vm2271_vm13 = vmor %vm2269_vm11, %vm2270_vm9  ;;  %v2293_v56 = vand.u32 2147483647, %v2283_v24  ;;  %v2296_v58 = vor.u32 1.1754944e-38, %v2295_v55 }
 0x4cb   :  { %v2266_v51 = vsub.f32 1.0, %v2265_v29 }
 0x4cc   :  { %v2248_v31 = vmul.f32 %v4069_v25, %v2247_v30  ;;  %vm2294_vm3 = vcmp.eq.f32.partialorder %v2293_v56, 8.507059e+37 }
 0x4cd   :  { %v2267_v33 = vmul.f32 %v4071_v27, %v2266_v51 }
 0x4ce   :  { %v4073_v35 = vpop.eup %4072  ;;  %v2249_v36 = vadd.f32 %v4069_v25, %v2248_v31 }
 0x4cf   :  { %v2268_v38 = vadd.f32 %v4071_v27, %v2267_v33  ;;  %v2285_v39 = vmul.f32 %v4073_v35, %v2283_v24  ;;  %v4075_v42 = vpop.eup %4074  ;;  %vm2290_vm0 = vweird.f32 %v4073_v35 }
 0x4d0   :  { %v2253_v41 = vsel %vm2252_vm12, %v4069_v25, %v2249_v36  ;;  %vm2291_vm2 = vmor %vm2289_vm1, %vm2290_vm0 }
 0x4d1   :  { %v2258_v43 = vsel %vm2255_vm14, %v2257_v37, %v2253_v41  ;;  %v2272_v44 = vsel %vm2271_vm13, %v4071_v27, %v2268_v38  ;;  %v2286_v45 = vsub.f32 1.0, %v2285_v39 }
 0x4d2   :  { %v2277_v46 = vsel %vm2274_vm15, %v2276_v40, %v2272_v44  ;;  %v2301_v47 = vmul.f32 %v4075_v42, %v2258_v43 }
 0x4d3   :  { %v2300_v48 = vmul.f32 %v2277_v46, %v4223_v19  ;;  %v2287_v49 = vmul.f32 %v4073_v35, %v2286_v45  ;;  %v2310_v19 = vld [vmem:[#allocation4 + $0xe0] sm:$0xff] }
 0x4d5   :  { %v4227_v50 = vadd.f32 %v2301_v47, %v2300_v48  ;;  %v2288_v54 = vadd.f32 %v4073_v35, %v2287_v49 }
 0x4d7   :  { %4076 = vtanh.f32 %v4227_v50  ;;  %v2292_v57 = vsel %vm2291_vm2, %v4073_v35, %v2288_v54 }
 0x4d8   :  { %v2297_v60 = vsel %vm2294_vm3, %v2296_v58, %v2292_v57 }
 0x4dd   :  { %v4077_v59 = vpop.eup %4076 }
 0x4de   :  { %v2304_v61 = vmul.f32 %v4077_v59, %v2297_v60 }
 0x4e0   :  { %2308 = vst [vmem:[#allocation9 + $0x30] sm:$0xff] %v2304_v61  ;;  %v2315_v62 = vpack.c.bf16 %v2304_v61, %v2304_v61 }
 0x4e2   :  { %2516 = vmatmul.bf16.vlgmr.msrb.gmra.mxu0 %v2315_v62  ;;  %2529 = vmatmul.bf16.vlgmr.msrb.gmra.mxu1 %v2315_v62 }
 0x4e3   :  { %2542 = vmatmul.bf16.vlgmr.msrb.gmra.mxu2 %v2315_v62  ;;  %2555 = vmatmul.bf16.vlgmr.msrb.gmra.mxu3 %v2315_v62 }
 0x55f   :  { %v2517_v21 = vpop.f32.mrf.mxu0  ;;  %v2530_v63 = vpop.f32.mrf.mxu1 }
 0x560   :  { %v2560_v0 = vadd.f32 %v2517_v21, %v2310_v19  ;;  %v2561_v1 = vadd.f32 %v2530_v63, %v2311_v20 }
 0x562   :  { %v3697_v2 = vmul.f32 -1.442695, %v2560_v0  ;;  %v3698_v3 = vmul.f32 -1.442695, %v2561_v1 }
 0x564   :  { %4078 = vpow2.f32 %v3697_v2 }
 0x565   :  { %4080 = vpow2.f32 %v3698_v3 }
 0x566   :  { %v2543_v5 = vpop.f32.mrf.mxu2  ;;  %v2556_v6 = vpop.f32.mrf.mxu3 }
 0x567   :  { %v2563_v7 = vadd.f32 %v2556_v6, %v2313_v4  ;;  %v2519_v8 = vpop.f32.mrf.mxu0  ;;  %v2532_v9 = vpop.f32.mrf.mxu1  ;;  %v2562_v24 = vadd.f32 %v2543_v5, %v2312_v17 }
 0x569   :  { %v3699_v10 = vmul.f32 -1.442695, %v2563_v7 }
 0x56a   :  { %v4079_v11 = vpop.eup %4078 }
 0x56b   :  { %v4081_v12 = vpop.eup %4080  ;;  %v2567_v13 = vadd.f32 1.0, %v4079_v11  ;;  %4082 = vpow2.f32 %v3699_v10 }
 0x56c   :  { %v2586_v14 = vadd.f32 1.0, %v4081_v12 }
 0x56d   :  { %4084 = vrcp.f32 %v2567_v13  ;;  %v2579_v30 = vand.u32 2147483648, %v2567_v13  ;;  %v2577_v53 = vand.u32 2147483647, %v2567_v13  ;;  %vm2573_vm6 = vweird.f32 %v2567_v13 }
 0x56e   :  { %4086 = vrcp.f32 %v2586_v14  ;;  %v2545_v15 = vpop.f32.mrf.mxu2  ;;  %v2558_v16 = vpop.f32.mrf.mxu3  ;;  %v2598_v51 = vand.u32 2147483648, %v2586_v14  ;;  %v2596_v32 = vand.u32 2147483647, %v2586_v14  ;;  %vm2592_vm7 = vweird.f32 %v2586_v14 }
 0x56f   :  { %v2580_v35 = vor.u32 1.1754944e-38, %v2579_v30  ;;  %vm2578_vm10 = vcmp.eq.f32.partialorder %v2577_v53, 8.507059e+37 }
 0x570   :  { %v2599_v38 = vor.u32 1.1754944e-38, %v2598_v51  ;;  %vm2597_vm11 = vcmp.eq.f32.partialorder %v2596_v32, 8.507059e+37 }
 0x571   :  { %v4083_v18 = vpop.eup %4082 }
 0x572   :  { %v2606_v22 = vadd.f32 1.0, %v4083_v18 }
 0x573   :  { %v4085_v23 = vpop.eup %4084 }
 0x574   :  { %v4087_v25 = vpop.eup %4086  ;;  %v2569_v26 = vmul.f32 %v4085_v23, %v2567_v13  ;;  %4088 = vrcp.f32 %v2606_v22  ;;  %vm2574_vm4 = vweird.f32 %v4085_v23  ;;  %v2618_v54 = vand.u32 2147483648, %v2606_v22 }
 0x575   :  { %v2588_v27 = vmul.f32 %v4087_v25, %v2586_v14  ;;  %4090 = vtanh.f32 %v2562_v24  ;;  %vm2593_vm5 = vweird.f32 %v4087_v25  ;;  %vm2575_vm8 = vmor %vm2573_vm6, %vm2574_vm4  ;;  %vm2612_vm13 = vweird.f32 %v2606_v22 }
 0x576   :  { %v2570_v28 = vsub.f32 1.0, %v2569_v26  ;;  %vm2594_vm9 = vmor %vm2592_vm7, %vm2593_vm5  ;;  %v2616_v55 = vand.u32 2147483647, %v2606_v22  ;;  %v2619_v57 = vor.u32 1.1754944e-38, %v2618_v54 }
 0x577   :  { %v2589_v29 = vsub.f32 1.0, %v2588_v27 }
 0x578   :  { %v2571_v52 = vmul.f32 %v4085_v23, %v2570_v28  ;;  %vm2617_vm15 = vcmp.eq.f32.partialorder %v2616_v55, 8.507059e+37 }
 0x579   :  { %v2590_v31 = vmul.f32 %v4087_v25, %v2589_v29 }
 0x57a   :  { %v4089_v33 = vpop.eup %4088  ;;  %v2572_v34 = vadd.f32 %v4085_v23, %v2571_v52 }
 0x57b   :  { %v2591_v36 = vadd.f32 %v4087_v25, %v2590_v31  ;;  %v2608_v37 = vmul.f32 %v4089_v33, %v2606_v22  ;;  %v4091_v40 = vpop.eup %4090  ;;  %vm2613_vm12 = vweird.f32 %v4089_v33 }
 0x57c   :  { %v2576_v39 = vsel %vm2575_vm8, %v4085_v23, %v2572_v34  ;;  %vm2614_vm14 = vmor %vm2612_vm13, %vm2613_vm12 }
 0x57d   :  { %v2581_v41 = vsel %vm2578_vm10, %v2580_v35, %v2576_v39  ;;  %v2595_v42 = vsel %vm2594_vm9, %v4087_v25, %v2591_v36  ;;  %v2609_v43 = vsub.f32 1.0, %v2608_v37 }
 0x57e   :  { %v2600_v44 = vsel %vm2597_vm11, %v2599_v38, %v2595_v42  ;;  %v2624_v45 = vmul.f32 %v4091_v40, %v2581_v41 }
 0x57f   :  { %v2623_v46 = vmul.f32 %v2600_v44, %v4227_v50  ;;  %v2610_v47 = vmul.f32 %v4089_v33, %v2609_v43 }
 0x581   :  { %v2625_v48 = vadd.f32 %v2624_v45, %v2623_v46  ;;  %v2611_v49 = vadd.f32 %v4089_v33, %v2610_v47 }
 0x583   :  { %4092 = vtanh.f32 %v2625_v48  ;;  %v2615_v56 = vsel %vm2614_vm14, %v4089_v33, %v2611_v49 }
 0x584   :  { %v2620_v50 = vsel %vm2617_vm15, %v2619_v57, %v2615_v56 }
 0x589   :  { %v4093_v58 = vpop.eup %4092 }
 0x58a   :  { %v2627_v59 = vmul.f32 %v4093_v58, %v2620_v50 }
 0x58c   :  { %2631 = vst [vmem:[#allocation9 + $0x38] sm:$0xff] %v2627_v59 }
 0x58d   :  { %2644 = dma.vmem_to_hbm [thread:$0]  %s2637_s1, 1024, %s2639_s25, [#allocation6], %s4180_s26, %s4180_s26, %s4181_s27  }
 0x58e   :  { %4170 = dma.done.wait [#allocation6], 1024  }
 0x58f   :  { %4171 = vsyncadd [#allocation6], 4294966272 }
 0x590   :  { %2649 = vsyncpa [#allocation5], 1 }
 0x591   :  { %2650 = vsyncpa [#allocation8], 1 }
 0x592   :  { %2651 = vsyncpa [#allocation6], 1 }

</bundles_post_ra>
